<compile_context>
chip_gen: v7x
topology: tpu7x:2x2x1
jax: 0.10.0
libtpu: 0.0.40
codegen_flags: <defaults>
</compile_context>

<pallas_src>
import functools

import jax
import jax.numpy as jnp
from jax import lax
from jax.experimental import pallas as pl
from jax.experimental.pallas import tpu as pltpu


def _round_up(x, m):
    return ((x + m - 1) // m) * m


def _pad_gate_cols(w, h, hp):
    """(rows, 4*h) -> (rows, 4*hp): each of the 4 gate blocks zero-padded to hp."""
    rows = w.shape[0]
    w4 = w.reshape(rows, 4, h)
    w4 = jnp.pad(w4, ((0, 0), (0, 0), (0, hp - h)))
    return w4.reshape(rows, 4 * hp)


def _single_buffer_spec(shape, index_map):
    """Resident operand (constant index map): request a single VMEM buffer so
    big weights don't double-buffer (critical on v7x's 64 MiB VMEM)."""
    if hasattr(pl, "Buffered"):
        try:
            return pl.BlockSpec(shape, index_map, pipeline_mode=pl.Buffered(1))
        except TypeError:
            pass
    return pl.BlockSpec(shape, index_map)


def _vmem_limit_bytes():
    """Generation-aware VMEM cap: ~75% of physical per-core VMEM (48 MiB on v7x,
    96 MiB on v5e/v6e), leaving headroom for compiler-internal scratch."""
    cap = 128 * 1024 * 1024
    try:
        cap = int(pltpu.get_tpu_info().vmem_capacity_bytes)
    except Exception:
        pass
    return int(min(100 * 1024 * 1024, (cap * 3) // 4))


# ----------------------------------------------------------------------------
# Pallas kernel: one LSTM layer, one time block per grid step.
#   grid = (S_pad // T_BLK,)  sequential ("arbitrary").
#   Per block: gx = x_blk @ W_ih^T + b  (M = T_BLK*Bp, MXU well filled, stays in
#   VMEM scratch), then the unavoidable recurrence  h @ W_hh^T + gx[t].
# ----------------------------------------------------------------------------
def _lstm_block_kernel(x_ref, h0_ref, c0_ref, wih_ref, whh_ref, b_ref,
                       y_ref, hN_ref, cN_ref,
                       gx_sc, h_sc, c_sc, hx_sc,
                       *, seq_len, chunk, needs_guard):
    blk = pl.program_id(0)
    t_blk, bp, in_dim = x_ref.shape
    hp = h_sc.shape[-1]

    @pl.when(blk == 0)
    def _():
        h_sc[...] = h0_ref[...]
        c_sc[...] = c0_ref[...]
        hx_sc[...] = h0_ref[...].astype(hx_sc.dtype)

    # --- fused input projection for the whole time block (never hits HBM) ---
    x2d = x_ref[...].reshape(t_blk * bp, in_dim)
    gx = jnp.dot(x2d, wih_ref[...], preferred_element_type=jnp.float32) + b_ref[...]
    gx_sc[...] = gx.reshape(t_blk, bp, 4 * hp)

    whh = whh_ref[...]

    def _sig(v):
        # sigmoid(v) == 0.5 * tanh(0.5 * v) + 0.5  -> single EUP transcendental.
        return 0.5 * jnp.tanh(0.5 * v) + 0.5

    def step(i, carry):
        hx = hx_sc[...]                                             # (Bp, Hp) stream dtype
        gates = jnp.dot(hx, whh, preferred_element_type=jnp.float32) + gx_sc[i]
        if needs_guard:
            valid = (blk * t_blk + i) < seq_len
        # Gate nonlinearities / c,h update in lane chunks: bounds vreg pressure at
        # large Hp; every slice is lane-aligned because hp % 128 == 0.
        for c0 in range(0, hp, chunk):
            csz = min(chunk, hp - c0)
            ig = _sig(gates[:, 0 * hp + c0: 0 * hp + c0 + csz])
            fg = _sig(gates[:, 1 * hp + c0: 1 * hp + c0 + csz])
            gg = jnp.tanh(gates[:, 2 * hp + c0: 2 * hp + c0 + csz])
            og = _sig(gates[:, 3 * hp + c0: 3 * hp + c0 + csz])
            c_new = fg * c_sc[:, c0:c0 + csz] + ig * gg
            h_new = og * jnp.tanh(c_new)
            if needs_guard:                    # padded tail timesteps: keep old state
                c_new = jnp.where(valid, c_new, c_sc[:, c0:c0 + csz])
                h_new = jnp.where(valid, h_new, h_sc[:, c0:c0 + csz])
            h_lo = h_new.astype(y_ref.dtype)   # shared cast: y store + next-step LHS
            y_ref[i, :, c0:c0 + csz] = h_lo
            hx_sc[:, c0:c0 + csz] = h_lo
            h_sc[:, c0:c0 + csz] = h_new       # f32 carry -> exact h_n output
            c_sc[:, c0:c0 + csz] = c_new
        return carry

    lax.fori_loop(0, t_blk, step, 0, unroll=True)

    @pl.when(blk == pl.num_programs(0) - 1)
    def _():
        hN_ref[...] = h_sc[...]
        cN_ref[...] = c_sc[...]


def lstm_layer_pallas(x, h0, c0, w_ih, w_hh, b_ih, b_hh,
                      *, stream_dtype=jnp.bfloat16, t_blk_req=16):
    """One LSTM layer (torch.nn.LSTM semantics, single layer, unidirectional).

    x: (S, B, In); h0,c0: (B, H) f32
    w_ih: (4H, In), w_hh: (4H, H), b_ih/b_hh: (4H,)  (torch parameter shapes)
    returns y (S, B, H) in stream_dtype, h_n (B, H) f32, c_n (B, H) f32
    """
    S, B, In = x.shape
    H = h0.shape[-1]
    Bp = max(_round_up(B, 8), 8)
    Hp = max(_round_up(H, 128), 128)

    t_blk = int(min(t_blk_req, S))
    S_pad = _round_up(S, t_blk)
    needs_guard = (S_pad != S)
    chunk = Hp if Hp <= 512 else 256

    # --- one-time parameter layout prep (gate-blocked, zero-padded) ---
    w_ih_t = _pad_gate_cols(jnp.asarray(w_ih, jnp.float32).T, H, Hp)          # (In, 4Hp)
    w_ih_t = w_ih_t.astype(stream_dtype)
    w_hh_t = _pad_gate_cols(jnp.asarray(w_hh, jnp.float32).T, H, Hp)          # (H, 4Hp)
    w_hh_t = jnp.pad(w_hh_t, ((0, Hp - H), (0, 0))).astype(stream_dtype)      # (Hp, 4Hp)
    bias = _pad_gate_cols((jnp.asarray(b_ih, jnp.float32)
                           + jnp.asarray(b_hh, jnp.float32)).reshape(1, 4 * H),
                          H, Hp)                                              # (1, 4Hp) f32

    # --- activations / initial state, padded; x streamed in stream_dtype ---
    x_p = jnp.pad(jnp.asarray(x),
                  ((0, S_pad - S), (0, Bp - B), (0, 0))).astype(stream_dtype)
    h0_p = jnp.pad(jnp.asarray(h0, jnp.float32), ((0, Bp - B), (0, Hp - H)))
    c0_p = jnp.pad(jnp.asarray(c0, jnp.float32), ((0, Bp - B), (0, Hp - H)))

    grid = (S_pad // t_blk,)
    kernel = functools.partial(_lstm_block_kernel, seq_len=S, chunk=chunk,
                               needs_guard=needs_guard)

    # TODO(synk): on v7x the second TensorCore could be engaged by adding a
    # batch-block "parallel" grid axis with per-core h/c scratch; not done here
    # (only pays off for Bp >= 16, and v5e/v6e have a single TensorCore).
    y_p, hN_p, cN_p = pl.pallas_call(
        kernel,
        out_shape=(jax.ShapeDtypeStruct((S_pad, Bp, Hp), stream_dtype),
                   jax.ShapeDtypeStruct((Bp, Hp), jnp.float32),
                   jax.ShapeDtypeStruct((Bp, Hp), jnp.float32)),
        grid_spec=pltpu.PrefetchScalarGridSpec(
            num_scalar_prefetch=0,
            grid=grid,
            in_specs=[
                pl.BlockSpec((t_blk, Bp, In), lambda t: (t, 0, 0)),      # x block
                pl.BlockSpec((Bp, Hp), lambda t: (0, 0)),                # h0
                pl.BlockSpec((Bp, Hp), lambda t: (0, 0)),                # c0
                _single_buffer_spec((In, 4 * Hp), lambda t: (0, 0)),     # W_ih^T (resident)
                _single_buffer_spec((Hp, 4 * Hp), lambda t: (0, 0)),     # W_hh^T (resident)
                pl.BlockSpec((1, 4 * Hp), lambda t: (0, 0)),             # fused bias
            ],
            out_specs=[
                pl.BlockSpec((t_blk, Bp, Hp), lambda t: (t, 0, 0)),      # y (stream dtype)
                pl.BlockSpec((Bp, Hp), lambda t: (0, 0)),                # h_n (f32)
                pl.BlockSpec((Bp, Hp), lambda t: (0, 0)),                # c_n (f32)
            ],
            scratch_shapes=[
                pltpu.VMEM((t_blk, Bp, 4 * Hp), jnp.float32),   # per-block gx
                pltpu.VMEM((Bp, Hp), jnp.float32),              # h carry (f32)
                pltpu.VMEM((Bp, Hp), jnp.float32),              # c carry (f32)
                pltpu.VMEM((Bp, Hp), stream_dtype),             # h carry (matmul dtype)
            ],
        ),
        compiler_params=pltpu.CompilerParams(
            dimension_semantics=("arbitrary",),                 # sequential recurrence
            vmem_limit_bytes=_vmem_limit_bytes(),
        ),
    )(x_p, h0_p, c0_p, w_ih_t, w_hh_t, bias)

    y = y_p[:S, :B, :H]
    h_n = hN_p[:B, :H]
    c_n = cN_p[:B, :H]
    return y, h_n, c_n


# ----------------------------------------------------------------------------
# RNNModel (rnn_type='LSTM', tie_weights=False, eval mode) — params + forward.
# ----------------------------------------------------------------------------
def init_params(key, ntoken, ninp, nhid, nlayers):
    keys = jax.random.split(key, 1 + 4 * nlayers)
    params = {}
    initrange = 0.1
    params["encoder"] = jax.random.uniform(
        keys[0], (ntoken, ninp), jnp.float32, -initrange, initrange)
    layers = []
    for l in range(nlayers):
        in_sz = ninp if l == 0 else nhid
        out_sz = nhid  # last layer also nhid (tie_weights=False)
        k = 1.0 / jnp.sqrt(out_sz)  # torch.nn.LSTM default init range
        kw = keys[1 + 4 * l: 1 + 4 * (l + 1)]
        layers.append(dict(
            w_ih=jax.random.uniform(kw[0], (4 * out_sz, in_sz), jnp.float32, -k, k),
            w_hh=jax.random.uniform(kw[1], (4 * out_sz, out_sz), jnp.float32, -k, k),
            b_ih=jax.random.uniform(kw[2], (4 * out_sz,), jnp.float32, -k, k),
            b_hh=jax.random.uniform(kw[3], (4 * out_sz,), jnp.float32, -k, k),
        ))
    params["rnns"] = layers
    # TODO(synk): decoder Linear exists in __init__ but is unused in forward().
    return params


def rnn_model_forward(params, tokens, hidden, *, stream_dtype=jnp.bfloat16, t_blk=16):
    """tokens: (S, B) int32; hidden: list of (h0 (B,H), c0 (B,H)) per layer.

    Returns (result (S*B, H_last), new_hidden). embedded_dropout / LockedDropout /
    nn.Dropout are identity in eval mode, so forward is embedding -> LSTM stack
    -> reshape.
    """
    emb = params["encoder"][tokens]            # embedding gather kept in JAX glue
    raw_output = emb
    new_hidden = []
    for l, layer in enumerate(params["rnns"]):
        h0, c0 = hidden[l]
        raw_output, h_n, c_n = lstm_layer_pallas(
            raw_output, h0, c0,
            layer["w_ih"], layer["w_hh"], layer["b_ih"], layer["b_hh"],
            stream_dtype=stream_dtype, t_blk_req=t_blk)
        new_hidden.append((h_n, c_n))
    S, B, Hl = raw_output.shape
    return raw_output.reshape(S * B, Hl), new_hidden


# ----------------------------------------------------------------------------
# Pure-JAX reference (lax.scan) for correctness check.
# ----------------------------------------------------------------------------
def _lstm_layer_ref(x, h0, c0, w_ih, w_hh, b_ih, b_hh):
    H = h0.shape[-1]

    def step(carry, x_t):
        h, c = carry
        gates = x_t @ w_ih.T + b_ih + h @ w_hh.T + b_hh
        i = jax.nn.sigmoid(gates[:, 0 * H:1 * H])
        f = jax.nn.sigmoid(gates[:, 1 * H:2 * H])
        g = jnp.tanh(gates[:, 2 * H:3 * H])
        o = jax.nn.sigmoid(gates[:, 3 * H:4 * H])
        c = f * c + i * g
        h = o * jnp.tanh(c)
        return (h, c), h

    (h_n, c_n), ys = lax.scan(step, (h0, c0), x)
    return ys, h_n, c_n


def rnn_model_forward_ref(params, tokens, hidden):
    out = params["encoder"][tokens]
    new_hidden = []
    for l, layer in enumerate(params["rnns"]):
        h0, c0 = hidden[l]
        out, h_n, c_n = _lstm_layer_ref(out, h0, c0, layer["w_ih"], layer["w_hh"],
                                        layer["b_ih"], layer["b_hh"])
        new_hidden.append((h_n, c_n))
    S, B, H = out.shape
    return out.reshape(S * B, H), new_hidden


if __name__ == "__main__":
    # Small shapes consistent with the module.
    ntoken, ninp, nhid, nlayers = 64, 32, 32, 2
    seq_len, batch = 16, 2

    key = jax.random.PRNGKey(0)
    kp, kt = jax.random.split(key)
    params = init_params(kp, ntoken, ninp, nhid, nlayers)

    tokens = jax.random.randint(kt, (seq_len, batch), 0, ntoken, dtype=jnp.int32)
    # init_hidden(bsz): zeros per layer; leading (1,) axis squeezed -> (B, H).
    hidden = [(jnp.zeros((batch, nhid), jnp.float32),
               jnp.zeros((batch, nhid), jnp.float32)) for _ in range(nlayers)]

    ref_result, ref_hidden = rnn_model_forward_ref(params, tokens, hidden)

    # --- f32 stream: numerical check (correctness path, never the perf path) ---
    res32, hid32 = rnn_model_forward(params, tokens, hidden, stream_dtype=jnp.float32)
    jax.block_until_ready(res32)
    assert res32.shape == (seq_len * batch, nhid), res32.shape
    assert jnp.allclose(res32, ref_result, atol=1e-3, rtol=1e-3), "f32 result mismatch"
    for (h, c), (hr, cr) in zip(hid32, ref_hidden):
        assert jnp.allclose(h, hr, atol=1e-3, rtol=1e-3), "f32 h_n mismatch"
        assert jnp.allclose(c, cr, atol=1e-3, rtol=1e-3), "f32 c_n mismatch"

    # --- odd sequence length: exercises multi-block carry + guarded tail ---
    seq_odd = 10
    tokens_odd = tokens[:seq_odd]
    ref_odd, ref_hid_odd = rnn_model_forward_ref(params, tokens_odd, hidden)
    res_odd, hid_odd = rnn_model_forward(params, tokens_odd, hidden,
                                         stream_dtype=jnp.float32, t_blk=8)
    jax.block_until_ready(res_odd)
    assert res_odd.shape == (seq_odd * batch, nhid), res_odd.shape
    assert jnp.allclose(res_odd, ref_odd, atol=1e-3, rtol=1e-3), "tail result mismatch"
    for (h, c), (hr, cr) in zip(hid_odd, ref_hid_odd):
        assert jnp.allclose(h, hr, atol=1e-3, rtol=1e-3), "tail h_n mismatch"
        assert jnp.allclose(c, cr, atol=1e-3, rtol=1e-3), "tail c_n mismatch"

    # --- bf16 stream (default perf path): loose check ---
    result, new_hidden = rnn_model_forward(params, tokens, hidden)
    jax.block_until_ready(result)
    for h, c in new_hidden:
        jax.block_until_ready(h)
        jax.block_until_ready(c)
    assert result.shape == (seq_len * batch, nhid), result.shape
    assert jnp.allclose(result.astype(jnp.float32), ref_result,
                        atol=3e-2, rtol=3e-2), "bf16 result mismatch"

    print("KERNEL_OK")
</pallas_src>

<mosaic_0001>
module attributes {stable_mosaic.version = 11 : i64} {
  func.func @_lstm_block_kernel(%arg0: i32, %arg1: memref<16x8x32xf32, #tpu.memory_space<vmem>>, %arg2: memref<8x128xf32, #tpu.memory_space<vmem>>, %arg3: memref<8x128xf32, #tpu.memory_space<vmem>>, %arg4: memref<32x512xf32, #tpu.memory_space<vmem>>, %arg5: memref<128x512xf32, #tpu.memory_space<vmem>>, %arg6: memref<1x512xf32, #tpu.memory_space<vmem>>, %arg7: memref<16x8x128xf32, #tpu.memory_space<vmem>>, %arg8: memref<8x128xf32, #tpu.memory_space<vmem>>, %arg9: memref<8x128xf32, #tpu.memory_space<vmem>>, %arg10: memref<16x8x512xf32, #tpu.memory_space<vmem>>, %arg11: memref<8x128xf32, #tpu.memory_space<vmem>>, %arg12: memref<8x128xf32, #tpu.memory_space<vmem>>, %arg13: memref<8x128xf32, #tpu.memory_space<vmem>>) attributes {dimension_semantics = [#tpu.dimension_semantics<arbitrary>], iteration_bounds = array<i64: 1>, scalar_prefetch = 0 : i64, scratch_operands = 4 : i64, tpu.core_type = #tpu.core_type<tc>, window_params = [{transform_indices = @transform_0, window_bounds = array<i64: 16, 8, 32>}, {pipeline_mode = #tpu.pipeline_mode<synchronous>, transform_indices = @transform_1, window_bounds = array<i64: 8, 128>}, {pipeline_mode = #tpu.pipeline_mode<synchronous>, transform_indices = @transform_2, window_bounds = array<i64: 8, 128>}, {pipeline_mode = #tpu.pipeline_mode<synchronous>, transform_indices = @transform_3, window_bounds = array<i64: 32, 512>}, {pipeline_mode = #tpu.pipeline_mode<synchronous>, transform_indices = @transform_4, window_bounds = array<i64: 128, 512>}, {pipeline_mode = #tpu.pipeline_mode<synchronous>, transform_indices = @transform_5, window_bounds = array<i64: 1, 512>}, {transform_indices = @transform_6, window_bounds = array<i64: 16, 8, 128>}, {pipeline_mode = #tpu.pipeline_mode<synchronous>, transform_indices = @transform_7, window_bounds = array<i64: 8, 128>}, {pipeline_mode = #tpu.pipeline_mode<synchronous>, transform_indices = @transform_8, window_bounds = array<i64: 8, 128>}]} {
    %c0_i32 = arith.constant 0 : i32
    %0 = arith.cmpi eq, %arg0, %c0_i32 : i32
    %1 = arith.extui %0 : i1 to i32
    %c0_i32_0 = arith.constant 0 : i32
    %2 = arith.cmpi ne, %1, %c0_i32_0 : i32
    scf.if %2 {
      %c0_399 = arith.constant 0 : index
      %c0_400 = arith.constant 0 : index
      %736 = vector.load %arg2[%c0_399, %c0_400] : memref<8x128xf32, #tpu.memory_space<vmem>>, vector<8x128xf32>
      %c0_401 = arith.constant 0 : index
      %c0_402 = arith.constant 0 : index
      %737 = vector.load %arg11[%c0_401, %c0_402] : memref<8x128xf32, #tpu.memory_space<vmem>>, vector<8x128xf32>
      tpu.vector_store %arg11[%c0_401, %c0_402], %736 {strides = array<i32>} : memref<8x128xf32, #tpu.memory_space<vmem>>, vector<8x128xf32>,
      %c0_403 = arith.constant 0 : index
      %c0_404 = arith.constant 0 : index
      %738 = vector.load %arg3[%c0_403, %c0_404] : memref<8x128xf32, #tpu.memory_space<vmem>>, vector<8x128xf32>
      %c0_405 = arith.constant 0 : index
      %c0_406 = arith.constant 0 : index
      %739 = vector.load %arg12[%c0_405, %c0_406] : memref<8x128xf32, #tpu.memory_space<vmem>>, vector<8x128xf32>
      tpu.vector_store %arg12[%c0_405, %c0_406], %738 {strides = array<i32>} : memref<8x128xf32, #tpu.memory_space<vmem>>, vector<8x128xf32>,
      %c0_407 = arith.constant 0 : index
      %c0_408 = arith.constant 0 : index
      %740 = vector.load %arg2[%c0_407, %c0_408] : memref<8x128xf32, #tpu.memory_space<vmem>>, vector<8x128xf32>
      %c0_409 = arith.constant 0 : index
      %c0_410 = arith.constant 0 : index
      %741 = vector.load %arg13[%c0_409, %c0_410] : memref<8x128xf32, #tpu.memory_space<vmem>>, vector<8x128xf32>
      tpu.vector_store %arg13[%c0_409, %c0_410], %740 {strides = array<i32>} : memref<8x128xf32, #tpu.memory_space<vmem>>, vector<8x128xf32>,
    } else {
    }
    %c0 = arith.constant 0 : index
    %c0_1 = arith.constant 0 : index
    %c0_2 = arith.constant 0 : index
    %3 = vector.load %arg1[%c0, %c0_1, %c0_2] : memref<16x8x32xf32, #tpu.memory_space<vmem>>, vector<16x8x32xf32>
    %4 = vector.shape_cast %3 : vector<16x8x32xf32> to vector<128x32xf32>
    %c0_3 = arith.constant 0 : index
    %c0_4 = arith.constant 0 : index
    %5 = vector.load %arg4[%c0_3, %c0_4] : memref<32x512xf32, #tpu.memory_space<vmem>>, vector<32x512xf32>
    %cst = arith.constant dense<0.000000e+00> : vector<128x512xf32>
    %6 = tpu.matmul %4, %5, %cst {dimension_numbers = #tpu.dot_dimension_numbers<[1], [0], [0], [1], [0, 0, 1, 1], [], []>} : vector<128x32xf32>, vector<32x512xf32>, vector<128x512xf32> -> vector<128x512xf32>
    %c0_5 = arith.constant 0 : index
    %c0_6 = arith.constant 0 : index
    %7 = vector.load %arg6[%c0_5, %c0_6] : memref<1x512xf32, #tpu.memory_space<vmem>>, vector<1x512xf32>
    %8 = vector.broadcast %7 : vector<1x512xf32> to vector<128x512xf32>
    %9 = arith.addf %6, %8 : vector<128x512xf32>
    %10 = vector.shape_cast %9 : vector<128x512xf32> to vector<16x8x512xf32>
    %c0_7 = arith.constant 0 : index
    %c0_8 = arith.constant 0 : index
    %c0_9 = arith.constant 0 : index
    %11 = vector.load %arg10[%c0_7, %c0_8, %c0_9] : memref<16x8x512xf32, #tpu.memory_space<vmem>>, vector<16x8x512xf32>
    tpu.vector_store %arg10[%c0_7, %c0_8, %c0_9], %10 {strides = array<i32>} : memref<16x8x512xf32, #tpu.memory_space<vmem>>, vector<16x8x512xf32>,
    %c0_10 = arith.constant 0 : index
    %c0_11 = arith.constant 0 : index
    %12 = vector.load %arg5[%c0_10, %c0_11] : memref<128x512xf32, #tpu.memory_space<vmem>>, vector<128x512xf32>
    %c0_i32_12 = arith.constant 0 : i32
    %c0_13 = arith.constant 0 : index
    %c0_14 = arith.constant 0 : index
    %13 = vector.load %arg13[%c0_13, %c0_14] : memref<8x128xf32, #tpu.memory_space<vmem>>, vector<8x128xf32>
    %cst_15 = arith.constant dense<0.000000e+00> : vector<8x512xf32>
    %14 = tpu.matmul %13, %12, %cst_15 {dimension_numbers = #tpu.dot_dimension_numbers<[1], [0], [0], [1], [0, 0, 1, 1], [], []>} : vector<8x128xf32>, vector<128x512xf32>, vector<8x512xf32> -> vector<8x512xf32>
    %15 = arith.index_cast %c0_i32_12 : i32 to index
    %c0_16 = arith.constant 0 : index
    %c0_17 = arith.constant 0 : index
    %16 = vector.load %arg10[%15, %c0_16, %c0_17] : memref<16x8x512xf32, #tpu.memory_space<vmem>>, vector<1x8x512xf32>
    %17 = vector.shape_cast %16 : vector<1x8x512xf32> to vector<8x512xf32>
    %18 = arith.addf %14, %17 : vector<8x512xf32>
    %19 = vector.extract_strided_slice %18 {offsets = [0, 0], sizes = [8, 128], strides = [1, 1]} : vector<8x512xf32> to vector<8x128xf32>
    %cst_18 = arith.constant 5.000000e-01 : f32
    %20 = vector.broadcast %cst_18 : f32 to vector<8x128xf32>
    %21 = arith.mulf %20, %19 : vector<8x128xf32>
    %22 = math.tanh %21 : vector<8x128xf32>
    %cst_19 = arith.constant 5.000000e-01 : f32
    %23 = vector.broadcast %cst_19 : f32 to vector<8x128xf32>
    %24 = arith.mulf %23, %22 : vector<8x128xf32>
    %cst_20 = arith.constant 5.000000e-01 : f32
    %25 = vector.broadcast %cst_20 : f32 to vector<8x128xf32>
    %26 = arith.addf %24, %25 : vector<8x128xf32>
    %27 = vector.extract_strided_slice %18 {offsets = [0, 128], sizes = [8, 128], strides = [1, 1]} : vector<8x512xf32> to vector<8x128xf32>
    %cst_21 = arith.constant 5.000000e-01 : f32
    %28 = vector.broadcast %cst_21 : f32 to vector<8x128xf32>
    %29 = arith.mulf %28, %27 : vector<8x128xf32>
    %30 = math.tanh %29 : vector<8x128xf32>
    %cst_22 = arith.constant 5.000000e-01 : f32
    %31 = vector.broadcast %cst_22 : f32 to vector<8x128xf32>
    %32 = arith.mulf %31, %30 : vector<8x128xf32>
    %cst_23 = arith.constant 5.000000e-01 : f32
    %33 = vector.broadcast %cst_23 : f32 to vector<8x128xf32>
    %34 = arith.addf %32, %33 : vector<8x128xf32>
    %35 = vector.extract_strided_slice %18 {offsets = [0, 256], sizes = [8, 128], strides = [1, 1]} : vector<8x512xf32> to vector<8x128xf32>
    %36 = math.tanh %35 : vector<8x128xf32>
    %37 = vector.extract_strided_slice %18 {offsets = [0, 384], sizes = [8, 128], strides = [1, 1]} : vector<8x512xf32> to vector<8x128xf32>
    %cst_24 = arith.constant 5.000000e-01 : f32
    %38 = vector.broadcast %cst_24 : f32 to vector<8x128xf32>
    %39 = arith.mulf %38, %37 : vector<8x128xf32>
    %40 = math.tanh %39 : vector<8x128xf32>
    %cst_25 = arith.constant 5.000000e-01 : f32
    %41 = vector.broadcast %cst_25 : f32 to vector<8x128xf32>
    %42 = arith.mulf %41, %40 : vector<8x128xf32>
    %cst_26 = arith.constant 5.000000e-01 : f32
    %43 = vector.broadcast %cst_26 : f32 to vector<8x128xf32>
    %44 = arith.addf %42, %43 : vector<8x128xf32>
    %c0_27 = arith.constant 0 : index
    %c0_28 = arith.constant 0 : index
    %45 = vector.load %arg12[%c0_27, %c0_28] : memref<8x128xf32, #tpu.memory_space<vmem>>, vector<8x128xf32>
    %46 = arith.mulf %34, %45 : vector<8x128xf32>
    %47 = arith.mulf %26, %36 : vector<8x128xf32>
    %48 = arith.addf %46, %47 : vector<8x128xf32>
    %49 = math.tanh %48 : vector<8x128xf32>
    %50 = arith.mulf %44, %49 : vector<8x128xf32>
    %51 = arith.index_cast %c0_i32_12 : i32 to index
    %c0_29 = arith.constant 0 : index
    %c0_30 = arith.constant 0 : index
    %52 = vector.load %arg7[%51, %c0_29, %c0_30] : memref<16x8x128xf32, #tpu.memory_space<vmem>>, vector<1x8x128xf32>
    %53 = vector.shape_cast %52 : vector<1x8x128xf32> to vector<8x128xf32>
    %54 = vector.shape_cast %50 : vector<8x128xf32> to vector<1x8x128xf32>
    tpu.vector_store %arg7[%51, %c0_29, %c0_30], %54 {strides = array<i32>} : memref<16x8x128xf32, #tpu.memory_space<vmem>>, vector<1x8x128xf32>,
    %c0_31 = arith.constant 0 : index
    %c0_32 = arith.constant 0 : index
    %55 = vector.load %arg13[%c0_31, %c0_32] : memref<8x128xf32, #tpu.memory_space<vmem>>, vector<8x128xf32>
    tpu.vector_store %arg13[%c0_31, %c0_32], %50 {strides = array<i32>} : memref<8x128xf32, #tpu.memory_space<vmem>>, vector<8x128xf32>,
    %c0_33 = arith.constant 0 : index
    %c0_34 = arith.constant 0 : index
    %56 = vector.load %arg11[%c0_33, %c0_34] : memref<8x128xf32, #tpu.memory_space<vmem>>, vector<8x128xf32>
    tpu.vector_store %arg11[%c0_33, %c0_34], %50 {strides = array<i32>} : memref<8x128xf32, #tpu.memory_space<vmem>>, vector<8x128xf32>,
    %c0_35 = arith.constant 0 : index
    %c0_36 = arith.constant 0 : index
    %57 = vector.load %arg12[%c0_35, %c0_36] : memref<8x128xf32, #tpu.memory_space<vmem>>, vector<8x128xf32>
    tpu.vector_store %arg12[%c0_35, %c0_36], %48 {strides = array<i32>} : memref<8x128xf32, #tpu.memory_space<vmem>>, vector<8x128xf32>,
    %c1_i32 = arith.constant 1 : i32
    %c0_37 = arith.constant 0 : index
    %c0_38 = arith.constant 0 : index
    %58 = vector.load %arg13[%c0_37, %c0_38] : memref<8x128xf32, #tpu.memory_space<vmem>>, vector<8x128xf32>
    %cst_39 = arith.constant dense<0.000000e+00> : vector<8x512xf32>
    %59 = tpu.matmul %58, %12, %cst_39 {dimension_numbers = #tpu.dot_dimension_numbers<[1], [0], [0], [1], [0, 0, 1, 1], [], []>} : vector<8x128xf32>, vector<128x512xf32>, vector<8x512xf32> -> vector<8x512xf32>
    %60 = arith.index_cast %c1_i32 : i32 to index
    %c0_40 = arith.constant 0 : index
    %c0_41 = arith.constant 0 : index
    %61 = vector.load %arg10[%60, %c0_40, %c0_41] : memref<16x8x512xf32, #tpu.memory_space<vmem>>, vector<1x8x512xf32>
    %62 = vector.shape_cast %61 : vector<1x8x512xf32> to vector<8x512xf32>
    %63 = arith.addf %59, %62 : vector<8x512xf32>
    %64 = vector.extract_strided_slice %63 {offsets = [0, 0], sizes = [8, 128], strides = [1, 1]} : vector<8x512xf32> to vector<8x128xf32>
    %cst_42 = arith.constant 5.000000e-01 : f32
    %65 = vector.broadcast %cst_42 : f32 to vector<8x128xf32>
    %66 = arith.mulf %65, %64 : vector<8x128xf32>
    %67 = math.tanh %66 : vector<8x128xf32>
    %cst_43 = arith.constant 5.000000e-01 : f32
    %68 = vector.broadcast %cst_43 : f32 to vector<8x128xf32>
    %69 = arith.mulf %68, %67 : vector<8x128xf32>
    %cst_44 = arith.constant 5.000000e-01 : f32
    %70 = vector.broadcast %cst_44 : f32 to vector<8x128xf32>
    %71 = arith.addf %69, %70 : vector<8x128xf32>
    %72 = vector.extract_strided_slice %63 {offsets = [0, 128], sizes = [8, 128], strides = [1, 1]} : vector<8x512xf32> to vector<8x128xf32>
    %cst_45 = arith.constant 5.000000e-01 : f32
    %73 = vector.broadcast %cst_45 : f32 to vector<8x128xf32>
    %74 = arith.mulf %73, %72 : vector<8x128xf32>
    %75 = math.tanh %74 : vector<8x128xf32>
    %cst_46 = arith.constant 5.000000e-01 : f32
    %76 = vector.broadcast %cst_46 : f32 to vector<8x128xf32>
    %77 = arith.mulf %76, %75 : vector<8x128xf32>
    %cst_47 = arith.constant 5.000000e-01 : f32
    %78 = vector.broadcast %cst_47 : f32 to vector<8x128xf32>
    %79 = arith.addf %77, %78 : vector<8x128xf32>
    %80 = vector.extract_strided_slice %63 {offsets = [0, 256], sizes = [8, 128], strides = [1, 1]} : vector<8x512xf32> to vector<8x128xf32>
    %81 = math.tanh %80 : vector<8x128xf32>
    %82 = vector.extract_strided_slice %63 {offsets = [0, 384], sizes = [8, 128], strides = [1, 1]} : vector<8x512xf32> to vector<8x128xf32>
    %cst_48 = arith.constant 5.000000e-01 : f32
    %83 = vector.broadcast %cst_48 : f32 to vector<8x128xf32>
    %84 = arith.mulf %83, %82 : vector<8x128xf32>
    %85 = math.tanh %84 : vector<8x128xf32>
    %cst_49 = arith.constant 5.000000e-01 : f32
    %86 = vector.broadcast %cst_49 : f32 to vector<8x128xf32>
    %87 = arith.mulf %86, %85 : vector<8x128xf32>
    %cst_50 = arith.constant 5.000000e-01 : f32
    %88 = vector.broadcast %cst_50 : f32 to vector<8x128xf32>
    %89 = arith.addf %87, %88 : vector<8x128xf32>
    %c0_51 = arith.constant 0 : index
    %c0_52 = arith.constant 0 : index
    %90 = vector.load %arg12[%c0_51, %c0_52] : memref<8x128xf32, #tpu.memory_space<vmem>>, vector<8x128xf32>
    %91 = arith.mulf %79, %90 : vector<8x128xf32>
    %92 = arith.mulf %71, %81 : vector<8x128xf32>
    %93 = arith.addf %91, %92 : vector<8x128xf32>
    %94 = math.tanh %93 : vector<8x128xf32>
    %95 = arith.mulf %89, %94 : vector<8x128xf32>
    %96 = arith.index_cast %c1_i32 : i32 to index
    %c0_53 = arith.constant 0 : index
    %c0_54 = arith.constant 0 : index
    %97 = vector.load %arg7[%96, %c0_53, %c0_54] : memref<16x8x128xf32, #tpu.memory_space<vmem>>, vector<1x8x128xf32>
    %98 = vector.shape_cast %97 : vector<1x8x128xf32> to vector<8x128xf32>
    %99 = vector.shape_cast %95 : vector<8x128xf32> to vector<1x8x128xf32>
    tpu.vector_store %arg7[%96, %c0_53, %c0_54], %99 {strides = array<i32>} : memref<16x8x128xf32, #tpu.memory_space<vmem>>, vector<1x8x128xf32>,
    %c0_55 = arith.constant 0 : index
    %c0_56 = arith.constant 0 : index
    %100 = vector.load %arg13[%c0_55, %c0_56] : memref<8x128xf32, #tpu.memory_space<vmem>>, vector<8x128xf32>
    tpu.vector_store %arg13[%c0_55, %c0_56], %95 {strides = array<i32>} : memref<8x128xf32, #tpu.memory_space<vmem>>, vector<8x128xf32>,
    %c0_57 = arith.constant 0 : index
    %c0_58 = arith.constant 0 : index
    %101 = vector.load %arg11[%c0_57, %c0_58] : memref<8x128xf32, #tpu.memory_space<vmem>>, vector<8x128xf32>
    tpu.vector_store %arg11[%c0_57, %c0_58], %95 {strides = array<i32>} : memref<8x128xf32, #tpu.memory_space<vmem>>, vector<8x128xf32>,
    %c0_59 = arith.constant 0 : index
    %c0_60 = arith.constant 0 : index
    %102 = vector.load %arg12[%c0_59, %c0_60] : memref<8x128xf32, #tpu.memory_space<vmem>>, vector<8x128xf32>
    tpu.vector_store %arg12[%c0_59, %c0_60], %93 {strides = array<i32>} : memref<8x128xf32, #tpu.memory_space<vmem>>, vector<8x128xf32>,
    %c2_i32 = arith.constant 2 : i32
    %c0_61 = arith.constant 0 : index
    %c0_62 = arith.constant 0 : index
    %103 = vector.load %arg13[%c0_61, %c0_62] : memref<8x128xf32, #tpu.memory_space<vmem>>, vector<8x128xf32>
    %cst_63 = arith.constant dense<0.000000e+00> : vector<8x512xf32>
    %104 = tpu.matmul %103, %12, %cst_63 {dimension_numbers = #tpu.dot_dimension_numbers<[1], [0], [0], [1], [0, 0, 1, 1], [], []>} : vector<8x128xf32>, vector<128x512xf32>, vector<8x512xf32> -> vector<8x512xf32>
    %105 = arith.index_cast %c2_i32 : i32 to index
    %c0_64 = arith.constant 0 : index
    %c0_65 = arith.constant 0 : index
    %106 = vector.load %arg10[%105, %c0_64, %c0_65] : memref<16x8x512xf32, #tpu.memory_space<vmem>>, vector<1x8x512xf32>
    %107 = vector.shape_cast %106 : vector<1x8x512xf32> to vector<8x512xf32>
    %108 = arith.addf %104, %107 : vector<8x512xf32>
    %109 = vector.extract_strided_slice %108 {offsets = [0, 0], sizes = [8, 128], strides = [1, 1]} : vector<8x512xf32> to vector<8x128xf32>
    %cst_66 = arith.constant 5.000000e-01 : f32
    %110 = vector.broadcast %cst_66 : f32 to vector<8x128xf32>
    %111 = arith.mulf %110, %109 : vector<8x128xf32>
    %112 = math.tanh %111 : vector<8x128xf32>
    %cst_67 = arith.constant 5.000000e-01 : f32
    %113 = vector.broadcast %cst_67 : f32 to vector<8x128xf32>
    %114 = arith.mulf %113, %112 : vector<8x128xf32>
    %cst_68 = arith.constant 5.000000e-01 : f32
    %115 = vector.broadcast %cst_68 : f32 to vector<8x128xf32>
    %116 = arith.addf %114, %115 : vector<8x128xf32>
    %117 = vector.extract_strided_slice %108 {offsets = [0, 128], sizes = [8, 128], strides = [1, 1]} : vector<8x512xf32> to vector<8x128xf32>
    %cst_69 = arith.constant 5.000000e-01 : f32
    %118 = vector.broadcast %cst_69 : f32 to vector<8x128xf32>
    %119 = arith.mulf %118, %117 : vector<8x128xf32>
    %120 = math.tanh %119 : vector<8x128xf32>
    %cst_70 = arith.constant 5.000000e-01 : f32
    %121 = vector.broadcast %cst_70 : f32 to vector<8x128xf32>
    %122 = arith.mulf %121, %120 : vector<8x128xf32>
    %cst_71 = arith.constant 5.000000e-01 : f32
    %123 = vector.broadcast %cst_71 : f32 to vector<8x128xf32>
    %124 = arith.addf %122, %123 : vector<8x128xf32>
    %125 = vector.extract_strided_slice %108 {offsets = [0, 256], sizes = [8, 128], strides = [1, 1]} : vector<8x512xf32> to vector<8x128xf32>
    %126 = math.tanh %125 : vector<8x128xf32>
    %127 = vector.extract_strided_slice %108 {offsets = [0, 384], sizes = [8, 128], strides = [1, 1]} : vector<8x512xf32> to vector<8x128xf32>
    %cst_72 = arith.constant 5.000000e-01 : f32
    %128 = vector.broadcast %cst_72 : f32 to vector<8x128xf32>
    %129 = arith.mulf %128, %127 : vector<8x128xf32>
    %130 = math.tanh %129 : vector<8x128xf32>
    %cst_73 = arith.constant 5.000000e-01 : f32
    %131 = vector.broadcast %cst_73 : f32 to vector<8x128xf32>
    %132 = arith.mulf %131, %130 : vector<8x128xf32>
    %cst_74 = arith.constant 5.000000e-01 : f32
    %133 = vector.broadcast %cst_74 : f32 to vector<8x128xf32>
    %134 = arith.addf %132, %133 : vector<8x128xf32>
    %c0_75 = arith.constant 0 : index
    %c0_76 = arith.constant 0 : index
    %135 = vector.load %arg12[%c0_75, %c0_76] : memref<8x128xf32, #tpu.memory_space<vmem>>, vector<8x128xf32>
    %136 = arith.mulf %124, %135 : vector<8x128xf32>
    %137 = arith.mulf %116, %126 : vector<8x128xf32>
    %138 = arith.addf %136, %137 : vector<8x128xf32>
    %139 = math.tanh %138 : vector<8x128xf32>
    %140 = arith.mulf %134, %139 : vector<8x128xf32>
    %141 = arith.index_cast %c2_i32 : i32 to index
    %c0_77 = arith.constant 0 : index
    %c0_78 = arith.constant 0 : index
    %142 = vector.load %arg7[%141, %c0_77, %c0_78] : memref<16x8x128xf32, #tpu.memory_space<vmem>>, vector<1x8x128xf32>
    %143 = vector.shape_cast %142 : vector<1x8x128xf32> to vector<8x128xf32>
    %144 = vector.shape_cast %140 : vector<8x128xf32> to vector<1x8x128xf32>
    tpu.vector_store %arg7[%141, %c0_77, %c0_78], %144 {strides = array<i32>} : memref<16x8x128xf32, #tpu.memory_space<vmem>>, vector<1x8x128xf32>,
    %c0_79 = arith.constant 0 : index
    %c0_80 = arith.constant 0 : index
    %145 = vector.load %arg13[%c0_79, %c0_80] : memref<8x128xf32, #tpu.memory_space<vmem>>, vector<8x128xf32>
    tpu.vector_store %arg13[%c0_79, %c0_80], %140 {strides = array<i32>} : memref<8x128xf32, #tpu.memory_space<vmem>>, vector<8x128xf32>,
    %c0_81 = arith.constant 0 : index
    %c0_82 = arith.constant 0 : index
    %146 = vector.load %arg11[%c0_81, %c0_82] : memref<8x128xf32, #tpu.memory_space<vmem>>, vector<8x128xf32>
    tpu.vector_store %arg11[%c0_81, %c0_82], %140 {strides = array<i32>} : memref<8x128xf32, #tpu.memory_space<vmem>>, vector<8x128xf32>,
    %c0_83 = arith.constant 0 : index
    %c0_84 = arith.constant 0 : index
    %147 = vector.load %arg12[%c0_83, %c0_84] : memref<8x128xf32, #tpu.memory_space<vmem>>, vector<8x128xf32>
    tpu.vector_store %arg12[%c0_83, %c0_84], %138 {strides = array<i32>} : memref<8x128xf32, #tpu.memory_space<vmem>>, vector<8x128xf32>,
    %c3_i32 = arith.constant 3 : i32
    %c0_85 = arith.constant 0 : index
    %c0_86 = arith.constant 0 : index
    %148 = vector.load %arg13[%c0_85, %c0_86] : memref<8x128xf32, #tpu.memory_space<vmem>>, vector<8x128xf32>
    %cst_87 = arith.constant dense<0.000000e+00> : vector<8x512xf32>
    %149 = tpu.matmul %148, %12, %cst_87 {dimension_numbers = #tpu.dot_dimension_numbers<[1], [0], [0], [1], [0, 0, 1, 1], [], []>} : vector<8x128xf32>, vector<128x512xf32>, vector<8x512xf32> -> vector<8x512xf32>
    %150 = arith.index_cast %c3_i32 : i32 to index
    %c0_88 = arith.constant 0 : index
    %c0_89 = arith.constant 0 : index
    %151 = vector.load %arg10[%150, %c0_88, %c0_89] : memref<16x8x512xf32, #tpu.memory_space<vmem>>, vector<1x8x512xf32>
    %152 = vector.shape_cast %151 : vector<1x8x512xf32> to vector<8x512xf32>
    %153 = arith.addf %149, %152 : vector<8x512xf32>
    %154 = vector.extract_strided_slice %153 {offsets = [0, 0], sizes = [8, 128], strides = [1, 1]} : vector<8x512xf32> to vector<8x128xf32>
    %cst_90 = arith.constant 5.000000e-01 : f32
    %155 = vector.broadcast %cst_90 : f32 to vector<8x128xf32>
    %156 = arith.mulf %155, %154 : vector<8x128xf32>
    %157 = math.tanh %156 : vector<8x128xf32>
    %cst_91 = arith.constant 5.000000e-01 : f32
    %158 = vector.broadcast %cst_91 : f32 to vector<8x128xf32>
    %159 = arith.mulf %158, %157 : vector<8x128xf32>
    %cst_92 = arith.constant 5.000000e-01 : f32
    %160 = vector.broadcast %cst_92 : f32 to vector<8x128xf32>
    %161 = arith.addf %159, %160 : vector<8x128xf32>
    %162 = vector.extract_strided_slice %153 {offsets = [0, 128], sizes = [8, 128], strides = [1, 1]} : vector<8x512xf32> to vector<8x128xf32>
    %cst_93 = arith.constant 5.000000e-01 : f32
    %163 = vector.broadcast %cst_93 : f32 to vector<8x128xf32>
    %164 = arith.mulf %163, %162 : vector<8x128xf32>
    %165 = math.tanh %164 : vector<8x128xf32>
    %cst_94 = arith.constant 5.000000e-01 : f32
    %166 = vector.broadcast %cst_94 : f32 to vector<8x128xf32>
    %167 = arith.mulf %166, %165 : vector<8x128xf32>
    %cst_95 = arith.constant 5.000000e-01 : f32
    %168 = vector.broadcast %cst_95 : f32 to vector<8x128xf32>
    %169 = arith.addf %167, %168 : vector<8x128xf32>
    %170 = vector.extract_strided_slice %153 {offsets = [0, 256], sizes = [8, 128], strides = [1, 1]} : vector<8x512xf32> to vector<8x128xf32>
    %171 = math.tanh %170 : vector<8x128xf32>
    %172 = vector.extract_strided_slice %153 {offsets = [0, 384], sizes = [8, 128], strides = [1, 1]} : vector<8x512xf32> to vector<8x128xf32>
    %cst_96 = arith.constant 5.000000e-01 : f32
    %173 = vector.broadcast %cst_96 : f32 to vector<8x128xf32>
    %174 = arith.mulf %173, %172 : vector<8x128xf32>
    %175 = math.tanh %174 : vector<8x128xf32>
    %cst_97 = arith.constant 5.000000e-01 : f32
    %176 = vector.broadcast %cst_97 : f32 to vector<8x128xf32>
    %177 = arith.mulf %176, %175 : vector<8x128xf32>
    %cst_98 = arith.constant 5.000000e-01 : f32
    %178 = vector.broadcast %cst_98 : f32 to vector<8x128xf32>
    %179 = arith.addf %177, %178 : vector<8x128xf32>
    %c0_99 = arith.constant 0 : index
    %c0_100 = arith.constant 0 : index
    %180 = vector.load %arg12[%c0_99, %c0_100] : memref<8x128xf32, #tpu.memory_space<vmem>>, vector<8x128xf32>
    %181 = arith.mulf %169, %180 : vector<8x128xf32>
    %182 = arith.mulf %161, %171 : vector<8x128xf32>
    %183 = arith.addf %181, %182 : vector<8x128xf32>
    %184 = math.tanh %183 : vector<8x128xf32>
    %185 = arith.mulf %179, %184 : vector<8x128xf32>
    %186 = arith.index_cast %c3_i32 : i32 to index
    %c0_101 = arith.constant 0 : index
    %c0_102 = arith.constant 0 : index
    %187 = vector.load %arg7[%186, %c0_101, %c0_102] : memref<16x8x128xf32, #tpu.memory_space<vmem>>, vector<1x8x128xf32>
    %188 = vector.shape_cast %187 : vector<1x8x128xf32> to vector<8x128xf32>
    %189 = vector.shape_cast %185 : vector<8x128xf32> to vector<1x8x128xf32>
    tpu.vector_store %arg7[%186, %c0_101, %c0_102], %189 {strides = array<i32>} : memref<16x8x128xf32, #tpu.memory_space<vmem>>, vector<1x8x128xf32>,
    %c0_103 = arith.constant 0 : index
    %c0_104 = arith.constant 0 : index
    %190 = vector.load %arg13[%c0_103, %c0_104] : memref<8x128xf32, #tpu.memory_space<vmem>>, vector<8x128xf32>
    tpu.vector_store %arg13[%c0_103, %c0_104], %185 {strides = array<i32>} : memref<8x128xf32, #tpu.memory_space<vmem>>, vector<8x128xf32>,
    %c0_105 = arith.constant 0 : index
    %c0_106 = arith.constant 0 : index
    %191 = vector.load %arg11[%c0_105, %c0_106] : memref<8x128xf32, #tpu.memory_space<vmem>>, vector<8x128xf32>
    tpu.vector_store %arg11[%c0_105, %c0_106], %185 {strides = array<i32>} : memref<8x128xf32, #tpu.memory_space<vmem>>, vector<8x128xf32>,
    %c0_107 = arith.constant 0 : index
    %c0_108 = arith.constant 0 : index
    %192 = vector.load %arg12[%c0_107, %c0_108] : memref<8x128xf32, #tpu.memory_space<vmem>>, vector<8x128xf32>
    tpu.vector_store %arg12[%c0_107, %c0_108], %183 {strides = array<i32>} : memref<8x128xf32, #tpu.memory_space<vmem>>, vector<8x128xf32>,
    %c4_i32 = arith.constant 4 : i32
    %c0_109 = arith.constant 0 : index
    %c0_110 = arith.constant 0 : index
    %193 = vector.load %arg13[%c0_109, %c0_110] : memref<8x128xf32, #tpu.memory_space<vmem>>, vector<8x128xf32>
    %cst_111 = arith.constant dense<0.000000e+00> : vector<8x512xf32>
    %194 = tpu.matmul %193, %12, %cst_111 {dimension_numbers = #tpu.dot_dimension_numbers<[1], [0], [0], [1], [0, 0, 1, 1], [], []>} : vector<8x128xf32>, vector<128x512xf32>, vector<8x512xf32> -> vector<8x512xf32>
    %195 = arith.index_cast %c4_i32 : i32 to index
    %c0_112 = arith.constant 0 : index
    %c0_113 = arith.constant 0 : index
    %196 = vector.load %arg10[%195, %c0_112, %c0_113] : memref<16x8x512xf32, #tpu.memory_space<vmem>>, vector<1x8x512xf32>
    %197 = vector.shape_cast %196 : vector<1x8x512xf32> to vector<8x512xf32>
    %198 = arith.addf %194, %197 : vector<8x512xf32>
    %199 = vector.extract_strided_slice %198 {offsets = [0, 0], sizes = [8, 128], strides = [1, 1]} : vector<8x512xf32> to vector<8x128xf32>
    %cst_114 = arith.constant 5.000000e-01 : f32
    %200 = vector.broadcast %cst_114 : f32 to vector<8x128xf32>
    %201 = arith.mulf %200, %199 : vector<8x128xf32>
    %202 = math.tanh %201 : vector<8x128xf32>
    %cst_115 = arith.constant 5.000000e-01 : f32
    %203 = vector.broadcast %cst_115 : f32 to vector<8x128xf32>
    %204 = arith.mulf %203, %202 : vector<8x128xf32>
    %cst_116 = arith.constant 5.000000e-01 : f32
    %205 = vector.broadcast %cst_116 : f32 to vector<8x128xf32>
    %206 = arith.addf %204, %205 : vector<8x128xf32>
    %207 = vector.extract_strided_slice %198 {offsets = [0, 128], sizes = [8, 128], strides = [1, 1]} : vector<8x512xf32> to vector<8x128xf32>
    %cst_117 = arith.constant 5.000000e-01 : f32
    %208 = vector.broadcast %cst_117 : f32 to vector<8x128xf32>
    %209 = arith.mulf %208, %207 : vector<8x128xf32>
    %210 = math.tanh %209 : vector<8x128xf32>
    %cst_118 = arith.constant 5.000000e-01 : f32
    %211 = vector.broadcast %cst_118 : f32 to vector<8x128xf32>
    %212 = arith.mulf %211, %210 : vector<8x128xf32>
    %cst_119 = arith.constant 5.000000e-01 : f32
    %213 = vector.broadcast %cst_119 : f32 to vector<8x128xf32>
    %214 = arith.addf %212, %213 : vector<8x128xf32>
    %215 = vector.extract_strided_slice %198 {offsets = [0, 256], sizes = [8, 128], strides = [1, 1]} : vector<8x512xf32> to vector<8x128xf32>
    %216 = math.tanh %215 : vector<8x128xf32>
    %217 = vector.extract_strided_slice %198 {offsets = [0, 384], sizes = [8, 128], strides = [1, 1]} : vector<8x512xf32> to vector<8x128xf32>
    %cst_120 = arith.constant 5.000000e-01 : f32
    %218 = vector.broadcast %cst_120 : f32 to vector<8x128xf32>
    %219 = arith.mulf %218, %217 : vector<8x128xf32>
    %220 = math.tanh %219 : vector<8x128xf32>
    %cst_121 = arith.constant 5.000000e-01 : f32
    %221 = vector.broadcast %cst_121 : f32 to vector<8x128xf32>
    %222 = arith.mulf %221, %220 : vector<8x128xf32>
    %cst_122 = arith.constant 5.000000e-01 : f32
    %223 = vector.broadcast %cst_122 : f32 to vector<8x128xf32>
    %224 = arith.addf %222, %223 : vector<8x128xf32>
    %c0_123 = arith.constant 0 : index
    %c0_124 = arith.constant 0 : index
    %225 = vector.load %arg12[%c0_123, %c0_124] : memref<8x128xf32, #tpu.memory_space<vmem>>, vector<8x128xf32>
    %226 = arith.mulf %214, %225 : vector<8x128xf32>
    %227 = arith.mulf %206, %216 : vector<8x128xf32>
    %228 = arith.addf %226, %227 : vector<8x128xf32>
    %229 = math.tanh %228 : vector<8x128xf32>
    %230 = arith.mulf %224, %229 : vector<8x128xf32>
    %231 = arith.index_cast %c4_i32 : i32 to index
    %c0_125 = arith.constant 0 : index
    %c0_126 = arith.constant 0 : index
    %232 = vector.load %arg7[%231, %c0_125, %c0_126] : memref<16x8x128xf32, #tpu.memory_space<vmem>>, vector<1x8x128xf32>
    %233 = vector.shape_cast %232 : vector<1x8x128xf32> to vector<8x128xf32>
    %234 = vector.shape_cast %230 : vector<8x128xf32> to vector<1x8x128xf32>
    tpu.vector_store %arg7[%231, %c0_125, %c0_126], %234 {strides = array<i32>} : memref<16x8x128xf32, #tpu.memory_space<vmem>>, vector<1x8x128xf32>,
    %c0_127 = arith.constant 0 : index
    %c0_128 = arith.constant 0 : index
    %235 = vector.load %arg13[%c0_127, %c0_128] : memref<8x128xf32, #tpu.memory_space<vmem>>, vector<8x128xf32>
    tpu.vector_store %arg13[%c0_127, %c0_128], %230 {strides = array<i32>} : memref<8x128xf32, #tpu.memory_space<vmem>>, vector<8x128xf32>,
    %c0_129 = arith.constant 0 : index
    %c0_130 = arith.constant 0 : index
    %236 = vector.load %arg11[%c0_129, %c0_130] : memref<8x128xf32, #tpu.memory_space<vmem>>, vector<8x128xf32>
    tpu.vector_store %arg11[%c0_129, %c0_130], %230 {strides = array<i32>} : memref<8x128xf32, #tpu.memory_space<vmem>>, vector<8x128xf32>,
    %c0_131 = arith.constant 0 : index
    %c0_132 = arith.constant 0 : index
    %237 = vector.load %arg12[%c0_131, %c0_132] : memref<8x128xf32, #tpu.memory_space<vmem>>, vector<8x128xf32>
    tpu.vector_store %arg12[%c0_131, %c0_132], %228 {strides = array<i32>} : memref<8x128xf32, #tpu.memory_space<vmem>>, vector<8x128xf32>,
    %c5_i32 = arith.constant 5 : i32
    %c0_133 = arith.constant 0 : index
    %c0_134 = arith.constant 0 : index
    %238 = vector.load %arg13[%c0_133, %c0_134] : memref<8x128xf32, #tpu.memory_space<vmem>>, vector<8x128xf32>
    %cst_135 = arith.constant dense<0.000000e+00> : vector<8x512xf32>
    %239 = tpu.matmul %238, %12, %cst_135 {dimension_numbers = #tpu.dot_dimension_numbers<[1], [0], [0], [1], [0, 0, 1, 1], [], []>} : vector<8x128xf32>, vector<128x512xf32>, vector<8x512xf32> -> vector<8x512xf32>
    %240 = arith.index_cast %c5_i32 : i32 to index
    %c0_136 = arith.constant 0 : index
    %c0_137 = arith.constant 0 : index
    %241 = vector.load %arg10[%240, %c0_136, %c0_137] : memref<16x8x512xf32, #tpu.memory_space<vmem>>, vector<1x8x512xf32>
    %242 = vector.shape_cast %241 : vector<1x8x512xf32> to vector<8x512xf32>
    %243 = arith.addf %239, %242 : vector<8x512xf32>
    %244 = vector.extract_strided_slice %243 {offsets = [0, 0], sizes = [8, 128], strides = [1, 1]} : vector<8x512xf32> to vector<8x128xf32>
    %cst_138 = arith.constant 5.000000e-01 : f32
    %245 = vector.broadcast %cst_138 : f32 to vector<8x128xf32>
    %246 = arith.mulf %245, %244 : vector<8x128xf32>
    %247 = math.tanh %246 : vector<8x128xf32>
    %cst_139 = arith.constant 5.000000e-01 : f32
    %248 = vector.broadcast %cst_139 : f32 to vector<8x128xf32>
    %249 = arith.mulf %248, %247 : vector<8x128xf32>
    %cst_140 = arith.constant 5.000000e-01 : f32
    %250 = vector.broadcast %cst_140 : f32 to vector<8x128xf32>
    %251 = arith.addf %249, %250 : vector<8x128xf32>
    %252 = vector.extract_strided_slice %243 {offsets = [0, 128], sizes = [8, 128], strides = [1, 1]} : vector<8x512xf32> to vector<8x128xf32>
    %cst_141 = arith.constant 5.000000e-01 : f32
    %253 = vector.broadcast %cst_141 : f32 to vector<8x128xf32>
    %254 = arith.mulf %253, %252 : vector<8x128xf32>
    %255 = math.tanh %254 : vector<8x128xf32>
    %cst_142 = arith.constant 5.000000e-01 : f32
    %256 = vector.broadcast %cst_142 : f32 to vector<8x128xf32>
    %257 = arith.mulf %256, %255 : vector<8x128xf32>
    %cst_143 = arith.constant 5.000000e-01 : f32
    %258 = vector.broadcast %cst_143 : f32 to vector<8x128xf32>
    %259 = arith.addf %257, %258 : vector<8x128xf32>
    %260 = vector.extract_strided_slice %243 {offsets = [0, 256], sizes = [8, 128], strides = [1, 1]} : vector<8x512xf32> to vector<8x128xf32>
    %261 = math.tanh %260 : vector<8x128xf32>
    %262 = vector.extract_strided_slice %243 {offsets = [0, 384], sizes = [8, 128], strides = [1, 1]} : vector<8x512xf32> to vector<8x128xf32>
    %cst_144 = arith.constant 5.000000e-01 : f32
    %263 = vector.broadcast %cst_144 : f32 to vector<8x128xf32>
    %264 = arith.mulf %263, %262 : vector<8x128xf32>
    %265 = math.tanh %264 : vector<8x128xf32>
    %cst_145 = arith.constant 5.000000e-01 : f32
    %266 = vector.broadcast %cst_145 : f32 to vector<8x128xf32>
    %267 = arith.mulf %266, %265 : vector<8x128xf32>
    %cst_146 = arith.constant 5.000000e-01 : f32
    %268 = vector.broadcast %cst_146 : f32 to vector<8x128xf32>
    %269 = arith.addf %267, %268 : vector<8x128xf32>
    %c0_147 = arith.constant 0 : index
    %c0_148 = arith.constant 0 : index
    %270 = vector.load %arg12[%c0_147, %c0_148] : memref<8x128xf32, #tpu.memory_space<vmem>>, vector<8x128xf32>
    %271 = arith.mulf %259, %270 : vector<8x128xf32>
    %272 = arith.mulf %251, %261 : vector<8x128xf32>
    %273 = arith.addf %271, %272 : vector<8x128xf32>
    %274 = math.tanh %273 : vector<8x128xf32>
    %275 = arith.mulf %269, %274 : vector<8x128xf32>
    %276 = arith.index_cast %c5_i32 : i32 to index
    %c0_149 = arith.constant 0 : index
    %c0_150 = arith.constant 0 : index
    %277 = vector.load %arg7[%276, %c0_149, %c0_150] : memref<16x8x128xf32, #tpu.memory_space<vmem>>, vector<1x8x128xf32>
    %278 = vector.shape_cast %277 : vector<1x8x128xf32> to vector<8x128xf32>
    %279 = vector.shape_cast %275 : vector<8x128xf32> to vector<1x8x128xf32>
    tpu.vector_store %arg7[%276, %c0_149, %c0_150], %279 {strides = array<i32>} : memref<16x8x128xf32, #tpu.memory_space<vmem>>, vector<1x8x128xf32>,
    %c0_151 = arith.constant 0 : index
    %c0_152 = arith.constant 0 : index
    %280 = vector.load %arg13[%c0_151, %c0_152] : memref<8x128xf32, #tpu.memory_space<vmem>>, vector<8x128xf32>
    tpu.vector_store %arg13[%c0_151, %c0_152], %275 {strides = array<i32>} : memref<8x128xf32, #tpu.memory_space<vmem>>, vector<8x128xf32>,
    %c0_153 = arith.constant 0 : index
    %c0_154 = arith.constant 0 : index
    %281 = vector.load %arg11[%c0_153, %c0_154] : memref<8x128xf32, #tpu.memory_space<vmem>>, vector<8x128xf32>
    tpu.vector_store %arg11[%c0_153, %c0_154], %275 {strides = array<i32>} : memref<8x128xf32, #tpu.memory_space<vmem>>, vector<8x128xf32>,
    %c0_155 = arith.constant 0 : index
    %c0_156 = arith.constant 0 : index
    %282 = vector.load %arg12[%c0_155, %c0_156] : memref<8x128xf32, #tpu.memory_space<vmem>>, vector<8x128xf32>
    tpu.vector_store %arg12[%c0_155, %c0_156], %273 {strides = array<i32>} : memref<8x128xf32, #tpu.memory_space<vmem>>, vector<8x128xf32>,
    %c6_i32 = arith.constant 6 : i32
    %c0_157 = arith.constant 0 : index
    %c0_158 = arith.constant 0 : index
    %283 = vector.load %arg13[%c0_157, %c0_158] : memref<8x128xf32, #tpu.memory_space<vmem>>, vector<8x128xf32>
    %cst_159 = arith.constant dense<0.000000e+00> : vector<8x512xf32>
    %284 = tpu.matmul %283, %12, %cst_159 {dimension_numbers = #tpu.dot_dimension_numbers<[1], [0], [0], [1], [0, 0, 1, 1], [], []>} : vector<8x128xf32>, vector<128x512xf32>, vector<8x512xf32> -> vector<8x512xf32>
    %285 = arith.index_cast %c6_i32 : i32 to index
    %c0_160 = arith.constant 0 : index
    %c0_161 = arith.constant 0 : index
    %286 = vector.load %arg10[%285, %c0_160, %c0_161] : memref<16x8x512xf32, #tpu.memory_space<vmem>>, vector<1x8x512xf32>
    %287 = vector.shape_cast %286 : vector<1x8x512xf32> to vector<8x512xf32>
    %288 = arith.addf %284, %287 : vector<8x512xf32>
    %289 = vector.extract_strided_slice %288 {offsets = [0, 0], sizes = [8, 128], strides = [1, 1]} : vector<8x512xf32> to vector<8x128xf32>
    %cst_162 = arith.constant 5.000000e-01 : f32
    %290 = vector.broadcast %cst_162 : f32 to vector<8x128xf32>
    %291 = arith.mulf %290, %289 : vector<8x128xf32>
    %292 = math.tanh %291 : vector<8x128xf32>
    %cst_163 = arith.constant 5.000000e-01 : f32
    %293 = vector.broadcast %cst_163 : f32 to vector<8x128xf32>
    %294 = arith.mulf %293, %292 : vector<8x128xf32>
    %cst_164 = arith.constant 5.000000e-01 : f32
    %295 = vector.broadcast %cst_164 : f32 to vector<8x128xf32>
    %296 = arith.addf %294, %295 : vector<8x128xf32>
    %297 = vector.extract_strided_slice %288 {offsets = [0, 128], sizes = [8, 128], strides = [1, 1]} : vector<8x512xf32> to vector<8x128xf32>
    %cst_165 = arith.constant 5.000000e-01 : f32
    %298 = vector.broadcast %cst_165 : f32 to vector<8x128xf32>
    %299 = arith.mulf %298, %297 : vector<8x128xf32>
    %300 = math.tanh %299 : vector<8x128xf32>
    %cst_166 = arith.constant 5.000000e-01 : f32
    %301 = vector.broadcast %cst_166 : f32 to vector<8x128xf32>
    %302 = arith.mulf %301, %300 : vector<8x128xf32>
    %cst_167 = arith.constant 5.000000e-01 : f32
    %303 = vector.broadcast %cst_167 : f32 to vector<8x128xf32>
    %304 = arith.addf %302, %303 : vector<8x128xf32>
    %305 = vector.extract_strided_slice %288 {offsets = [0, 256], sizes = [8, 128], strides = [1, 1]} : vector<8x512xf32> to vector<8x128xf32>
    %306 = math.tanh %305 : vector<8x128xf32>
    %307 = vector.extract_strided_slice %288 {offsets = [0, 384], sizes = [8, 128], strides = [1, 1]} : vector<8x512xf32> to vector<8x128xf32>
    %cst_168 = arith.constant 5.000000e-01 : f32
    %308 = vector.broadcast %cst_168 : f32 to vector<8x128xf32>
    %309 = arith.mulf %308, %307 : vector<8x128xf32>
    %310 = math.tanh %309 : vector<8x128xf32>
    %cst_169 = arith.constant 5.000000e-01 : f32
    %311 = vector.broadcast %cst_169 : f32 to vector<8x128xf32>
    %312 = arith.mulf %311, %310 : vector<8x128xf32>
    %cst_170 = arith.constant 5.000000e-01 : f32
    %313 = vector.broadcast %cst_170 : f32 to vector<8x128xf32>
    %314 = arith.addf %312, %313 : vector<8x128xf32>
    %c0_171 = arith.constant 0 : index
    %c0_172 = arith.constant 0 : index
    %315 = vector.load %arg12[%c0_171, %c0_172] : memref<8x128xf32, #tpu.memory_space<vmem>>, vector<8x128xf32>
    %316 = arith.mulf %304, %315 : vector<8x128xf32>
    %317 = arith.mulf %296, %306 : vector<8x128xf32>
    %318 = arith.addf %316, %317 : vector<8x128xf32>
    %319 = math.tanh %318 : vector<8x128xf32>
    %320 = arith.mulf %314, %319 : vector<8x128xf32>
    %321 = arith.index_cast %c6_i32 : i32 to index
    %c0_173 = arith.constant 0 : index
    %c0_174 = arith.constant 0 : index
    %322 = vector.load %arg7[%321, %c0_173, %c0_174] : memref<16x8x128xf32, #tpu.memory_space<vmem>>, vector<1x8x128xf32>
    %323 = vector.shape_cast %322 : vector<1x8x128xf32> to vector<8x128xf32>
    %324 = vector.shape_cast %320 : vector<8x128xf32> to vector<1x8x128xf32>
    tpu.vector_store %arg7[%321, %c0_173, %c0_174], %324 {strides = array<i32>} : memref<16x8x128xf32, #tpu.memory_space<vmem>>, vector<1x8x128xf32>,
    %c0_175 = arith.constant 0 : index
    %c0_176 = arith.constant 0 : index
    %325 = vector.load %arg13[%c0_175, %c0_176] : memref<8x128xf32, #tpu.memory_space<vmem>>, vector<8x128xf32>
    tpu.vector_store %arg13[%c0_175, %c0_176], %320 {strides = array<i32>} : memref<8x128xf32, #tpu.memory_space<vmem>>, vector<8x128xf32>,
    %c0_177 = arith.constant 0 : index
    %c0_178 = arith.constant 0 : index
    %326 = vector.load %arg11[%c0_177, %c0_178] : memref<8x128xf32, #tpu.memory_space<vmem>>, vector<8x128xf32>
    tpu.vector_store %arg11[%c0_177, %c0_178], %320 {strides = array<i32>} : memref<8x128xf32, #tpu.memory_space<vmem>>, vector<8x128xf32>,
    %c0_179 = arith.constant 0 : index
    %c0_180 = arith.constant 0 : index
    %327 = vector.load %arg12[%c0_179, %c0_180] : memref<8x128xf32, #tpu.memory_space<vmem>>, vector<8x128xf32>
    tpu.vector_store %arg12[%c0_179, %c0_180], %318 {strides = array<i32>} : memref<8x128xf32, #tpu.memory_space<vmem>>, vector<8x128xf32>,
    %c7_i32 = arith.constant 7 : i32
    %c0_181 = arith.constant 0 : index
    %c0_182 = arith.constant 0 : index
    %328 = vector.load %arg13[%c0_181, %c0_182] : memref<8x128xf32, #tpu.memory_space<vmem>>, vector<8x128xf32>
    %cst_183 = arith.constant dense<0.000000e+00> : vector<8x512xf32>
    %329 = tpu.matmul %328, %12, %cst_183 {dimension_numbers = #tpu.dot_dimension_numbers<[1], [0], [0], [1], [0, 0, 1, 1], [], []>} : vector<8x128xf32>, vector<128x512xf32>, vector<8x512xf32> -> vector<8x512xf32>
    %330 = arith.index_cast %c7_i32 : i32 to index
    %c0_184 = arith.constant 0 : index
    %c0_185 = arith.constant 0 : index
    %331 = vector.load %arg10[%330, %c0_184, %c0_185] : memref<16x8x512xf32, #tpu.memory_space<vmem>>, vector<1x8x512xf32>
    %332 = vector.shape_cast %331 : vector<1x8x512xf32> to vector<8x512xf32>
    %333 = arith.addf %329, %332 : vector<8x512xf32>
    %334 = vector.extract_strided_slice %333 {offsets = [0, 0], sizes = [8, 128], strides = [1, 1]} : vector<8x512xf32> to vector<8x128xf32>
    %cst_186 = arith.constant 5.000000e-01 : f32
    %335 = vector.broadcast %cst_186 : f32 to vector<8x128xf32>
    %336 = arith.mulf %335, %334 : vector<8x128xf32>
    %337 = math.tanh %336 : vector<8x128xf32>
    %cst_187 = arith.constant 5.000000e-01 : f32
    %338 = vector.broadcast %cst_187 : f32 to vector<8x128xf32>
    %339 = arith.mulf %338, %337 : vector<8x128xf32>
    %cst_188 = arith.constant 5.000000e-01 : f32
    %340 = vector.broadcast %cst_188 : f32 to vector<8x128xf32>
    %341 = arith.addf %339, %340 : vector<8x128xf32>
    %342 = vector.extract_strided_slice %333 {offsets = [0, 128], sizes = [8, 128], strides = [1, 1]} : vector<8x512xf32> to vector<8x128xf32>
    %cst_189 = arith.constant 5.000000e-01 : f32
    %343 = vector.broadcast %cst_189 : f32 to vector<8x128xf32>
    %344 = arith.mulf %343, %342 : vector<8x128xf32>
    %345 = math.tanh %344 : vector<8x128xf32>
    %cst_190 = arith.constant 5.000000e-01 : f32
    %346 = vector.broadcast %cst_190 : f32 to vector<8x128xf32>
    %347 = arith.mulf %346, %345 : vector<8x128xf32>
    %cst_191 = arith.constant 5.000000e-01 : f32
    %348 = vector.broadcast %cst_191 : f32 to vector<8x128xf32>
    %349 = arith.addf %347, %348 : vector<8x128xf32>
    %350 = vector.extract_strided_slice %333 {offsets = [0, 256], sizes = [8, 128], strides = [1, 1]} : vector<8x512xf32> to vector<8x128xf32>
    %351 = math.tanh %350 : vector<8x128xf32>
    %352 = vector.extract_strided_slice %333 {offsets = [0, 384], sizes = [8, 128], strides = [1, 1]} : vector<8x512xf32> to vector<8x128xf32>
    %cst_192 = arith.constant 5.000000e-01 : f32
    %353 = vector.broadcast %cst_192 : f32 to vector<8x128xf32>
    %354 = arith.mulf %353, %352 : vector<8x128xf32>
    %355 = math.tanh %354 : vector<8x128xf32>
    %cst_193 = arith.constant 5.000000e-01 : f32
    %356 = vector.broadcast %cst_193 : f32 to vector<8x128xf32>
    %357 = arith.mulf %356, %355 : vector<8x128xf32>
    %cst_194 = arith.constant 5.000000e-01 : f32
    %358 = vector.broadcast %cst_194 : f32 to vector<8x128xf32>
    %359 = arith.addf %357, %358 : vector<8x128xf32>
    %c0_195 = arith.constant 0 : index
    %c0_196 = arith.constant 0 : index
    %360 = vector.load %arg12[%c0_195, %c0_196] : memref<8x128xf32, #tpu.memory_space<vmem>>, vector<8x128xf32>
    %361 = arith.mulf %349, %360 : vector<8x128xf32>
    %362 = arith.mulf %341, %351 : vector<8x128xf32>
    %363 = arith.addf %361, %362 : vector<8x128xf32>
    %364 = math.tanh %363 : vector<8x128xf32>
    %365 = arith.mulf %359, %364 : vector<8x128xf32>
    %366 = arith.index_cast %c7_i32 : i32 to index
    %c0_197 = arith.constant 0 : index
    %c0_198 = arith.constant 0 : index
    %367 = vector.load %arg7[%366, %c0_197, %c0_198] : memref<16x8x128xf32, #tpu.memory_space<vmem>>, vector<1x8x128xf32>
    %368 = vector.shape_cast %367 : vector<1x8x128xf32> to vector<8x128xf32>
    %369 = vector.shape_cast %365 : vector<8x128xf32> to vector<1x8x128xf32>
    tpu.vector_store %arg7[%366, %c0_197, %c0_198], %369 {strides = array<i32>} : memref<16x8x128xf32, #tpu.memory_space<vmem>>, vector<1x8x128xf32>,
    %c0_199 = arith.constant 0 : index
    %c0_200 = arith.constant 0 : index
    %370 = vector.load %arg13[%c0_199, %c0_200] : memref<8x128xf32, #tpu.memory_space<vmem>>, vector<8x128xf32>
    tpu.vector_store %arg13[%c0_199, %c0_200], %365 {strides = array<i32>} : memref<8x128xf32, #tpu.memory_space<vmem>>, vector<8x128xf32>,
    %c0_201 = arith.constant 0 : index
    %c0_202 = arith.constant 0 : index
    %371 = vector.load %arg11[%c0_201, %c0_202] : memref<8x128xf32, #tpu.memory_space<vmem>>, vector<8x128xf32>
    tpu.vector_store %arg11[%c0_201, %c0_202], %365 {strides = array<i32>} : memref<8x128xf32, #tpu.memory_space<vmem>>, vector<8x128xf32>,
    %c0_203 = arith.constant 0 : index
    %c0_204 = arith.constant 0 : index
    %372 = vector.load %arg12[%c0_203, %c0_204] : memref<8x128xf32, #tpu.memory_space<vmem>>, vector<8x128xf32>
    tpu.vector_store %arg12[%c0_203, %c0_204], %363 {strides = array<i32>} : memref<8x128xf32, #tpu.memory_space<vmem>>, vector<8x128xf32>,
    %c8_i32 = arith.constant 8 : i32
    %c0_205 = arith.constant 0 : index
    %c0_206 = arith.constant 0 : index
    %373 = vector.load %arg13[%c0_205, %c0_206] : memref<8x128xf32, #tpu.memory_space<vmem>>, vector<8x128xf32>
    %cst_207 = arith.constant dense<0.000000e+00> : vector<8x512xf32>
    %374 = tpu.matmul %373, %12, %cst_207 {dimension_numbers = #tpu.dot_dimension_numbers<[1], [0], [0], [1], [0, 0, 1, 1], [], []>} : vector<8x128xf32>, vector<128x512xf32>, vector<8x512xf32> -> vector<8x512xf32>
    %375 = arith.index_cast %c8_i32 : i32 to index
    %c0_208 = arith.constant 0 : index
    %c0_209 = arith.constant 0 : index
    %376 = vector.load %arg10[%375, %c0_208, %c0_209] : memref<16x8x512xf32, #tpu.memory_space<vmem>>, vector<1x8x512xf32>
    %377 = vector.shape_cast %376 : vector<1x8x512xf32> to vector<8x512xf32>
    %378 = arith.addf %374, %377 : vector<8x512xf32>
    %379 = vector.extract_strided_slice %378 {offsets = [0, 0], sizes = [8, 128], strides = [1, 1]} : vector<8x512xf32> to vector<8x128xf32>
    %cst_210 = arith.constant 5.000000e-01 : f32
    %380 = vector.broadcast %cst_210 : f32 to vector<8x128xf32>
    %381 = arith.mulf %380, %379 : vector<8x128xf32>
    %382 = math.tanh %381 : vector<8x128xf32>
    %cst_211 = arith.constant 5.000000e-01 : f32
    %383 = vector.broadcast %cst_211 : f32 to vector<8x128xf32>
    %384 = arith.mulf %383, %382 : vector<8x128xf32>
    %cst_212 = arith.constant 5.000000e-01 : f32
    %385 = vector.broadcast %cst_212 : f32 to vector<8x128xf32>
    %386 = arith.addf %384, %385 : vector<8x128xf32>
    %387 = vector.extract_strided_slice %378 {offsets = [0, 128], sizes = [8, 128], strides = [1, 1]} : vector<8x512xf32> to vector<8x128xf32>
    %cst_213 = arith.constant 5.000000e-01 : f32
    %388 = vector.broadcast %cst_213 : f32 to vector<8x128xf32>
    %389 = arith.mulf %388, %387 : vector<8x128xf32>
    %390 = math.tanh %389 : vector<8x128xf32>
    %cst_214 = arith.constant 5.000000e-01 : f32
    %391 = vector.broadcast %cst_214 : f32 to vector<8x128xf32>
    %392 = arith.mulf %391, %390 : vector<8x128xf32>
    %cst_215 = arith.constant 5.000000e-01 : f32
    %393 = vector.broadcast %cst_215 : f32 to vector<8x128xf32>
    %394 = arith.addf %392, %393 : vector<8x128xf32>
    %395 = vector.extract_strided_slice %378 {offsets = [0, 256], sizes = [8, 128], strides = [1, 1]} : vector<8x512xf32> to vector<8x128xf32>
    %396 = math.tanh %395 : vector<8x128xf32>
    %397 = vector.extract_strided_slice %378 {offsets = [0, 384], sizes = [8, 128], strides = [1, 1]} : vector<8x512xf32> to vector<8x128xf32>
    %cst_216 = arith.constant 5.000000e-01 : f32
    %398 = vector.broadcast %cst_216 : f32 to vector<8x128xf32>
    %399 = arith.mulf %398, %397 : vector<8x128xf32>
    %400 = math.tanh %399 : vector<8x128xf32>
    %cst_217 = arith.constant 5.000000e-01 : f32
    %401 = vector.broadcast %cst_217 : f32 to vector<8x128xf32>
    %402 = arith.mulf %401, %400 : vector<8x128xf32>
    %cst_218 = arith.constant 5.000000e-01 : f32
    %403 = vector.broadcast %cst_218 : f32 to vector<8x128xf32>
    %404 = arith.addf %402, %403 : vector<8x128xf32>
    %c0_219 = arith.constant 0 : index
    %c0_220 = arith.constant 0 : index
    %405 = vector.load %arg12[%c0_219, %c0_220] : memref<8x128xf32, #tpu.memory_space<vmem>>, vector<8x128xf32>
    %406 = arith.mulf %394, %405 : vector<8x128xf32>
    %407 = arith.mulf %386, %396 : vector<8x128xf32>
    %408 = arith.addf %406, %407 : vector<8x128xf32>
    %409 = math.tanh %408 : vector<8x128xf32>
    %410 = arith.mulf %404, %409 : vector<8x128xf32>
    %411 = arith.index_cast %c8_i32 : i32 to index
    %c0_221 = arith.constant 0 : index
    %c0_222 = arith.constant 0 : index
    %412 = vector.load %arg7[%411, %c0_221, %c0_222] : memref<16x8x128xf32, #tpu.memory_space<vmem>>, vector<1x8x128xf32>
    %413 = vector.shape_cast %412 : vector<1x8x128xf32> to vector<8x128xf32>
    %414 = vector.shape_cast %410 : vector<8x128xf32> to vector<1x8x128xf32>
    tpu.vector_store %arg7[%411, %c0_221, %c0_222], %414 {strides = array<i32>} : memref<16x8x128xf32, #tpu.memory_space<vmem>>, vector<1x8x128xf32>,
    %c0_223 = arith.constant 0 : index
    %c0_224 = arith.constant 0 : index
    %415 = vector.load %arg13[%c0_223, %c0_224] : memref<8x128xf32, #tpu.memory_space<vmem>>, vector<8x128xf32>
    tpu.vector_store %arg13[%c0_223, %c0_224], %410 {strides = array<i32>} : memref<8x128xf32, #tpu.memory_space<vmem>>, vector<8x128xf32>,
    %c0_225 = arith.constant 0 : index
    %c0_226 = arith.constant 0 : index
    %416 = vector.load %arg11[%c0_225, %c0_226] : memref<8x128xf32, #tpu.memory_space<vmem>>, vector<8x128xf32>
    tpu.vector_store %arg11[%c0_225, %c0_226], %410 {strides = array<i32>} : memref<8x128xf32, #tpu.memory_space<vmem>>, vector<8x128xf32>,
    %c0_227 = arith.constant 0 : index
    %c0_228 = arith.constant 0 : index
    %417 = vector.load %arg12[%c0_227, %c0_228] : memref<8x128xf32, #tpu.memory_space<vmem>>, vector<8x128xf32>
    tpu.vector_store %arg12[%c0_227, %c0_228], %408 {strides = array<i32>} : memref<8x128xf32, #tpu.memory_space<vmem>>, vector<8x128xf32>,
    %c9_i32 = arith.constant 9 : i32
    %c0_229 = arith.constant 0 : index
    %c0_230 = arith.constant 0 : index
    %418 = vector.load %arg13[%c0_229, %c0_230] : memref<8x128xf32, #tpu.memory_space<vmem>>, vector<8x128xf32>
    %cst_231 = arith.constant dense<0.000000e+00> : vector<8x512xf32>
    %419 = tpu.matmul %418, %12, %cst_231 {dimension_numbers = #tpu.dot_dimension_numbers<[1], [0], [0], [1], [0, 0, 1, 1], [], []>} : vector<8x128xf32>, vector<128x512xf32>, vector<8x512xf32> -> vector<8x512xf32>
    %420 = arith.index_cast %c9_i32 : i32 to index
    %c0_232 = arith.constant 0 : index
    %c0_233 = arith.constant 0 : index
    %421 = vector.load %arg10[%420, %c0_232, %c0_233] : memref<16x8x512xf32, #tpu.memory_space<vmem>>, vector<1x8x512xf32>
    %422 = vector.shape_cast %421 : vector<1x8x512xf32> to vector<8x512xf32>
    %423 = arith.addf %419, %422 : vector<8x512xf32>
    %424 = vector.extract_strided_slice %423 {offsets = [0, 0], sizes = [8, 128], strides = [1, 1]} : vector<8x512xf32> to vector<8x128xf32>
    %cst_234 = arith.constant 5.000000e-01 : f32
    %425 = vector.broadcast %cst_234 : f32 to vector<8x128xf32>
    %426 = arith.mulf %425, %424 : vector<8x128xf32>
    %427 = math.tanh %426 : vector<8x128xf32>
    %cst_235 = arith.constant 5.000000e-01 : f32
    %428 = vector.broadcast %cst_235 : f32 to vector<8x128xf32>
    %429 = arith.mulf %428, %427 : vector<8x128xf32>
    %cst_236 = arith.constant 5.000000e-01 : f32
    %430 = vector.broadcast %cst_236 : f32 to vector<8x128xf32>
    %431 = arith.addf %429, %430 : vector<8x128xf32>
    %432 = vector.extract_strided_slice %423 {offsets = [0, 128], sizes = [8, 128], strides = [1, 1]} : vector<8x512xf32> to vector<8x128xf32>
    %cst_237 = arith.constant 5.000000e-01 : f32
    %433 = vector.broadcast %cst_237 : f32 to vector<8x128xf32>
    %434 = arith.mulf %433, %432 : vector<8x128xf32>
    %435 = math.tanh %434 : vector<8x128xf32>
    %cst_238 = arith.constant 5.000000e-01 : f32
    %436 = vector.broadcast %cst_238 : f32 to vector<8x128xf32>
    %437 = arith.mulf %436, %435 : vector<8x128xf32>
    %cst_239 = arith.constant 5.000000e-01 : f32
    %438 = vector.broadcast %cst_239 : f32 to vector<8x128xf32>
    %439 = arith.addf %437, %438 : vector<8x128xf32>
    %440 = vector.extract_strided_slice %423 {offsets = [0, 256], sizes = [8, 128], strides = [1, 1]} : vector<8x512xf32> to vector<8x128xf32>
    %441 = math.tanh %440 : vector<8x128xf32>
    %442 = vector.extract_strided_slice %423 {offsets = [0, 384], sizes = [8, 128], strides = [1, 1]} : vector<8x512xf32> to vector<8x128xf32>
    %cst_240 = arith.constant 5.000000e-01 : f32
    %443 = vector.broadcast %cst_240 : f32 to vector<8x128xf32>
    %444 = arith.mulf %443, %442 : vector<8x128xf32>
    %445 = math.tanh %444 : vector<8x128xf32>
    %cst_241 = arith.constant 5.000000e-01 : f32
    %446 = vector.broadcast %cst_241 : f32 to vector<8x128xf32>
    %447 = arith.mulf %446, %445 : vector<8x128xf32>
    %cst_242 = arith.constant 5.000000e-01 : f32
    %448 = vector.broadcast %cst_242 : f32 to vector<8x128xf32>
    %449 = arith.addf %447, %448 : vector<8x128xf32>
    %c0_243 = arith.constant 0 : index
    %c0_244 = arith.constant 0 : index
    %450 = vector.load %arg12[%c0_243, %c0_244] : memref<8x128xf32, #tpu.memory_space<vmem>>, vector<8x128xf32>
    %451 = arith.mulf %439, %450 : vector<8x128xf32>
    %452 = arith.mulf %431, %441 : vector<8x128xf32>
    %453 = arith.addf %451, %452 : vector<8x128xf32>
    %454 = math.tanh %453 : vector<8x128xf32>
    %455 = arith.mulf %449, %454 : vector<8x128xf32>
    %456 = arith.index_cast %c9_i32 : i32 to index
    %c0_245 = arith.constant 0 : index
    %c0_246 = arith.constant 0 : index
    %457 = vector.load %arg7[%456, %c0_245, %c0_246] : memref<16x8x128xf32, #tpu.memory_space<vmem>>, vector<1x8x128xf32>
    %458 = vector.shape_cast %457 : vector<1x8x128xf32> to vector<8x128xf32>
    %459 = vector.shape_cast %455 : vector<8x128xf32> to vector<1x8x128xf32>
    tpu.vector_store %arg7[%456, %c0_245, %c0_246], %459 {strides = array<i32>} : memref<16x8x128xf32, #tpu.memory_space<vmem>>, vector<1x8x128xf32>,
    %c0_247 = arith.constant 0 : index
    %c0_248 = arith.constant 0 : index
    %460 = vector.load %arg13[%c0_247, %c0_248] : memref<8x128xf32, #tpu.memory_space<vmem>>, vector<8x128xf32>
    tpu.vector_store %arg13[%c0_247, %c0_248], %455 {strides = array<i32>} : memref<8x128xf32, #tpu.memory_space<vmem>>, vector<8x128xf32>,
    %c0_249 = arith.constant 0 : index
    %c0_250 = arith.constant 0 : index
    %461 = vector.load %arg11[%c0_249, %c0_250] : memref<8x128xf32, #tpu.memory_space<vmem>>, vector<8x128xf32>
    tpu.vector_store %arg11[%c0_249, %c0_250], %455 {strides = array<i32>} : memref<8x128xf32, #tpu.memory_space<vmem>>, vector<8x128xf32>,
    %c0_251 = arith.constant 0 : index
    %c0_252 = arith.constant 0 : index
    %462 = vector.load %arg12[%c0_251, %c0_252] : memref<8x128xf32, #tpu.memory_space<vmem>>, vector<8x128xf32>
    tpu.vector_store %arg12[%c0_251, %c0_252], %453 {strides = array<i32>} : memref<8x128xf32, #tpu.memory_space<vmem>>, vector<8x128xf32>,
    %c10_i32 = arith.constant 10 : i32
    %c0_253 = arith.constant 0 : index
    %c0_254 = arith.constant 0 : index
    %463 = vector.load %arg13[%c0_253, %c0_254] : memref<8x128xf32, #tpu.memory_space<vmem>>, vector<8x128xf32>
    %cst_255 = arith.constant dense<0.000000e+00> : vector<8x512xf32>
    %464 = tpu.matmul %463, %12, %cst_255 {dimension_numbers = #tpu.dot_dimension_numbers<[1], [0], [0], [1], [0, 0, 1, 1], [], []>} : vector<8x128xf32>, vector<128x512xf32>, vector<8x512xf32> -> vector<8x512xf32>
    %465 = arith.index_cast %c10_i32 : i32 to index
    %c0_256 = arith.constant 0 : index
    %c0_257 = arith.constant 0 : index
    %466 = vector.load %arg10[%465, %c0_256, %c0_257] : memref<16x8x512xf32, #tpu.memory_space<vmem>>, vector<1x8x512xf32>
    %467 = vector.shape_cast %466 : vector<1x8x512xf32> to vector<8x512xf32>
    %468 = arith.addf %464, %467 : vector<8x512xf32>
    %469 = vector.extract_strided_slice %468 {offsets = [0, 0], sizes = [8, 128], strides = [1, 1]} : vector<8x512xf32> to vector<8x128xf32>
    %cst_258 = arith.constant 5.000000e-01 : f32
    %470 = vector.broadcast %cst_258 : f32 to vector<8x128xf32>
    %471 = arith.mulf %470, %469 : vector<8x128xf32>
    %472 = math.tanh %471 : vector<8x128xf32>
    %cst_259 = arith.constant 5.000000e-01 : f32
    %473 = vector.broadcast %cst_259 : f32 to vector<8x128xf32>
    %474 = arith.mulf %473, %472 : vector<8x128xf32>
    %cst_260 = arith.constant 5.000000e-01 : f32
    %475 = vector.broadcast %cst_260 : f32 to vector<8x128xf32>
    %476 = arith.addf %474, %475 : vector<8x128xf32>
    %477 = vector.extract_strided_slice %468 {offsets = [0, 128], sizes = [8, 128], strides = [1, 1]} : vector<8x512xf32> to vector<8x128xf32>
    %cst_261 = arith.constant 5.000000e-01 : f32
    %478 = vector.broadcast %cst_261 : f32 to vector<8x128xf32>
    %479 = arith.mulf %478, %477 : vector<8x128xf32>
    %480 = math.tanh %479 : vector<8x128xf32>
    %cst_262 = arith.constant 5.000000e-01 : f32
    %481 = vector.broadcast %cst_262 : f32 to vector<8x128xf32>
    %482 = arith.mulf %481, %480 : vector<8x128xf32>
    %cst_263 = arith.constant 5.000000e-01 : f32
    %483 = vector.broadcast %cst_263 : f32 to vector<8x128xf32>
    %484 = arith.addf %482, %483 : vector<8x128xf32>
    %485 = vector.extract_strided_slice %468 {offsets = [0, 256], sizes = [8, 128], strides = [1, 1]} : vector<8x512xf32> to vector<8x128xf32>
    %486 = math.tanh %485 : vector<8x128xf32>
    %487 = vector.extract_strided_slice %468 {offsets = [0, 384], sizes = [8, 128], strides = [1, 1]} : vector<8x512xf32> to vector<8x128xf32>
    %cst_264 = arith.constant 5.000000e-01 : f32
    %488 = vector.broadcast %cst_264 : f32 to vector<8x128xf32>
    %489 = arith.mulf %488, %487 : vector<8x128xf32>
    %490 = math.tanh %489 : vector<8x128xf32>
    %cst_265 = arith.constant 5.000000e-01 : f32
    %491 = vector.broadcast %cst_265 : f32 to vector<8x128xf32>
    %492 = arith.mulf %491, %490 : vector<8x128xf32>
    %cst_266 = arith.constant 5.000000e-01 : f32
    %493 = vector.broadcast %cst_266 : f32 to vector<8x128xf32>
    %494 = arith.addf %492, %493 : vector<8x128xf32>
    %c0_267 = arith.constant 0 : index
    %c0_268 = arith.constant 0 : index
    %495 = vector.load %arg12[%c0_267, %c0_268] : memref<8x128xf32, #tpu.memory_space<vmem>>, vector<8x128xf32>
    %496 = arith.mulf %484, %495 : vector<8x128xf32>
    %497 = arith.mulf %476, %486 : vector<8x128xf32>
    %498 = arith.addf %496, %497 : vector<8x128xf32>
    %499 = math.tanh %498 : vector<8x128xf32>
    %500 = arith.mulf %494, %499 : vector<8x128xf32>
    %501 = arith.index_cast %c10_i32 : i32 to index
    %c0_269 = arith.constant 0 : index
    %c0_270 = arith.constant 0 : index
    %502 = vector.load %arg7[%501, %c0_269, %c0_270] : memref<16x8x128xf32, #tpu.memory_space<vmem>>, vector<1x8x128xf32>
    %503 = vector.shape_cast %502 : vector<1x8x128xf32> to vector<8x128xf32>
    %504 = vector.shape_cast %500 : vector<8x128xf32> to vector<1x8x128xf32>
    tpu.vector_store %arg7[%501, %c0_269, %c0_270], %504 {strides = array<i32>} : memref<16x8x128xf32, #tpu.memory_space<vmem>>, vector<1x8x128xf32>,
    %c0_271 = arith.constant 0 : index
    %c0_272 = arith.constant 0 : index
    %505 = vector.load %arg13[%c0_271, %c0_272] : memref<8x128xf32, #tpu.memory_space<vmem>>, vector<8x128xf32>
    tpu.vector_store %arg13[%c0_271, %c0_272], %500 {strides = array<i32>} : memref<8x128xf32, #tpu.memory_space<vmem>>, vector<8x128xf32>,
    %c0_273 = arith.constant 0 : index
    %c0_274 = arith.constant 0 : index
    %506 = vector.load %arg11[%c0_273, %c0_274] : memref<8x128xf32, #tpu.memory_space<vmem>>, vector<8x128xf32>
    tpu.vector_store %arg11[%c0_273, %c0_274], %500 {strides = array<i32>} : memref<8x128xf32, #tpu.memory_space<vmem>>, vector<8x128xf32>,
    %c0_275 = arith.constant 0 : index
    %c0_276 = arith.constant 0 : index
    %507 = vector.load %arg12[%c0_275, %c0_276] : memref<8x128xf32, #tpu.memory_space<vmem>>, vector<8x128xf32>
    tpu.vector_store %arg12[%c0_275, %c0_276], %498 {strides = array<i32>} : memref<8x128xf32, #tpu.memory_space<vmem>>, vector<8x128xf32>,
    %c11_i32 = arith.constant 11 : i32
    %c0_277 = arith.constant 0 : index
    %c0_278 = arith.constant 0 : index
    %508 = vector.load %arg13[%c0_277, %c0_278] : memref<8x128xf32, #tpu.memory_space<vmem>>, vector<8x128xf32>
    %cst_279 = arith.constant dense<0.000000e+00> : vector<8x512xf32>
    %509 = tpu.matmul %508, %12, %cst_279 {dimension_numbers = #tpu.dot_dimension_numbers<[1], [0], [0], [1], [0, 0, 1, 1], [], []>} : vector<8x128xf32>, vector<128x512xf32>, vector<8x512xf32> -> vector<8x512xf32>
    %510 = arith.index_cast %c11_i32 : i32 to index
    %c0_280 = arith.constant 0 : index
    %c0_281 = arith.constant 0 : index
    %511 = vector.load %arg10[%510, %c0_280, %c0_281] : memref<16x8x512xf32, #tpu.memory_space<vmem>>, vector<1x8x512xf32>
    %512 = vector.shape_cast %511 : vector<1x8x512xf32> to vector<8x512xf32>
    %513 = arith.addf %509, %512 : vector<8x512xf32>
    %514 = vector.extract_strided_slice %513 {offsets = [0, 0], sizes = [8, 128], strides = [1, 1]} : vector<8x512xf32> to vector<8x128xf32>
    %cst_282 = arith.constant 5.000000e-01 : f32
    %515 = vector.broadcast %cst_282 : f32 to vector<8x128xf32>
    %516 = arith.mulf %515, %514 : vector<8x128xf32>
    %517 = math.tanh %516 : vector<8x128xf32>
    %cst_283 = arith.constant 5.000000e-01 : f32
    %518 = vector.broadcast %cst_283 : f32 to vector<8x128xf32>
    %519 = arith.mulf %518, %517 : vector<8x128xf32>
    %cst_284 = arith.constant 5.000000e-01 : f32
    %520 = vector.broadcast %cst_284 : f32 to vector<8x128xf32>
    %521 = arith.addf %519, %520 : vector<8x128xf32>
    %522 = vector.extract_strided_slice %513 {offsets = [0, 128], sizes = [8, 128], strides = [1, 1]} : vector<8x512xf32> to vector<8x128xf32>
    %cst_285 = arith.constant 5.000000e-01 : f32
    %523 = vector.broadcast %cst_285 : f32 to vector<8x128xf32>
    %524 = arith.mulf %523, %522 : vector<8x128xf32>
    %525 = math.tanh %524 : vector<8x128xf32>
    %cst_286 = arith.constant 5.000000e-01 : f32
    %526 = vector.broadcast %cst_286 : f32 to vector<8x128xf32>
    %527 = arith.mulf %526, %525 : vector<8x128xf32>
    %cst_287 = arith.constant 5.000000e-01 : f32
    %528 = vector.broadcast %cst_287 : f32 to vector<8x128xf32>
    %529 = arith.addf %527, %528 : vector<8x128xf32>
    %530 = vector.extract_strided_slice %513 {offsets = [0, 256], sizes = [8, 128], strides = [1, 1]} : vector<8x512xf32> to vector<8x128xf32>
    %531 = math.tanh %530 : vector<8x128xf32>
    %532 = vector.extract_strided_slice %513 {offsets = [0, 384], sizes = [8, 128], strides = [1, 1]} : vector<8x512xf32> to vector<8x128xf32>
    %cst_288 = arith.constant 5.000000e-01 : f32
    %533 = vector.broadcast %cst_288 : f32 to vector<8x128xf32>
    %534 = arith.mulf %533, %532 : vector<8x128xf32>
    %535 = math.tanh %534 : vector<8x128xf32>
    %cst_289 = arith.constant 5.000000e-01 : f32
    %536 = vector.broadcast %cst_289 : f32 to vector<8x128xf32>
    %537 = arith.mulf %536, %535 : vector<8x128xf32>
    %cst_290 = arith.constant 5.000000e-01 : f32
    %538 = vector.broadcast %cst_290 : f32 to vector<8x128xf32>
    %539 = arith.addf %537, %538 : vector<8x128xf32>
    %c0_291 = arith.constant 0 : index
    %c0_292 = arith.constant 0 : index
    %540 = vector.load %arg12[%c0_291, %c0_292] : memref<8x128xf32, #tpu.memory_space<vmem>>, vector<8x128xf32>
    %541 = arith.mulf %529, %540 : vector<8x128xf32>
    %542 = arith.mulf %521, %531 : vector<8x128xf32>
    %543 = arith.addf %541, %542 : vector<8x128xf32>
    %544 = math.tanh %543 : vector<8x128xf32>
    %545 = arith.mulf %539, %544 : vector<8x128xf32>
    %546 = arith.index_cast %c11_i32 : i32 to index
    %c0_293 = arith.constant 0 : index
    %c0_294 = arith.constant 0 : index
    %547 = vector.load %arg7[%546, %c0_293, %c0_294] : memref<16x8x128xf32, #tpu.memory_space<vmem>>, vector<1x8x128xf32>
    %548 = vector.shape_cast %547 : vector<1x8x128xf32> to vector<8x128xf32>
    %549 = vector.shape_cast %545 : vector<8x128xf32> to vector<1x8x128xf32>
    tpu.vector_store %arg7[%546, %c0_293, %c0_294], %549 {strides = array<i32>} : memref<16x8x128xf32, #tpu.memory_space<vmem>>, vector<1x8x128xf32>,
    %c0_295 = arith.constant 0 : index
    %c0_296 = arith.constant 0 : index
    %550 = vector.load %arg13[%c0_295, %c0_296] : memref<8x128xf32, #tpu.memory_space<vmem>>, vector<8x128xf32>
    tpu.vector_store %arg13[%c0_295, %c0_296], %545 {strides = array<i32>} : memref<8x128xf32, #tpu.memory_space<vmem>>, vector<8x128xf32>,
    %c0_297 = arith.constant 0 : index
    %c0_298 = arith.constant 0 : index
    %551 = vector.load %arg11[%c0_297, %c0_298] : memref<8x128xf32, #tpu.memory_space<vmem>>, vector<8x128xf32>
    tpu.vector_store %arg11[%c0_297, %c0_298], %545 {strides = array<i32>} : memref<8x128xf32, #tpu.memory_space<vmem>>, vector<8x128xf32>,
    %c0_299 = arith.constant 0 : index
    %c0_300 = arith.constant 0 : index
    %552 = vector.load %arg12[%c0_299, %c0_300] : memref<8x128xf32, #tpu.memory_space<vmem>>, vector<8x128xf32>
    tpu.vector_store %arg12[%c0_299, %c0_300], %543 {strides = array<i32>} : memref<8x128xf32, #tpu.memory_space<vmem>>, vector<8x128xf32>,
    %c12_i32 = arith.constant 12 : i32
    %c0_301 = arith.constant 0 : index
    %c0_302 = arith.constant 0 : index
    %553 = vector.load %arg13[%c0_301, %c0_302] : memref<8x128xf32, #tpu.memory_space<vmem>>, vector<8x128xf32>
    %cst_303 = arith.constant dense<0.000000e+00> : vector<8x512xf32>
    %554 = tpu.matmul %553, %12, %cst_303 {dimension_numbers = #tpu.dot_dimension_numbers<[1], [0], [0], [1], [0, 0, 1, 1], [], []>} : vector<8x128xf32>, vector<128x512xf32>, vector<8x512xf32> -> vector<8x512xf32>
    %555 = arith.index_cast %c12_i32 : i32 to index
    %c0_304 = arith.constant 0 : index
    %c0_305 = arith.constant 0 : index
    %556 = vector.load %arg10[%555, %c0_304, %c0_305] : memref<16x8x512xf32, #tpu.memory_space<vmem>>, vector<1x8x512xf32>
    %557 = vector.shape_cast %556 : vector<1x8x512xf32> to vector<8x512xf32>
    %558 = arith.addf %554, %557 : vector<8x512xf32>
    %559 = vector.extract_strided_slice %558 {offsets = [0, 0], sizes = [8, 128], strides = [1, 1]} : vector<8x512xf32> to vector<8x128xf32>
    %cst_306 = arith.constant 5.000000e-01 : f32
    %560 = vector.broadcast %cst_306 : f32 to vector<8x128xf32>
    %561 = arith.mulf %560, %559 : vector<8x128xf32>
    %562 = math.tanh %561 : vector<8x128xf32>
    %cst_307 = arith.constant 5.000000e-01 : f32
    %563 = vector.broadcast %cst_307 : f32 to vector<8x128xf32>
    %564 = arith.mulf %563, %562 : vector<8x128xf32>
    %cst_308 = arith.constant 5.000000e-01 : f32
    %565 = vector.broadcast %cst_308 : f32 to vector<8x128xf32>
    %566 = arith.addf %564, %565 : vector<8x128xf32>
    %567 = vector.extract_strided_slice %558 {offsets = [0, 128], sizes = [8, 128], strides = [1, 1]} : vector<8x512xf32> to vector<8x128xf32>
    %cst_309 = arith.constant 5.000000e-01 : f32
    %568 = vector.broadcast %cst_309 : f32 to vector<8x128xf32>
    %569 = arith.mulf %568, %567 : vector<8x128xf32>
    %570 = math.tanh %569 : vector<8x128xf32>
    %cst_310 = arith.constant 5.000000e-01 : f32
    %571 = vector.broadcast %cst_310 : f32 to vector<8x128xf32>
    %572 = arith.mulf %571, %570 : vector<8x128xf32>
    %cst_311 = arith.constant 5.000000e-01 : f32
    %573 = vector.broadcast %cst_311 : f32 to vector<8x128xf32>
    %574 = arith.addf %572, %573 : vector<8x128xf32>
    %575 = vector.extract_strided_slice %558 {offsets = [0, 256], sizes = [8, 128], strides = [1, 1]} : vector<8x512xf32> to vector<8x128xf32>
    %576 = math.tanh %575 : vector<8x128xf32>
    %577 = vector.extract_strided_slice %558 {offsets = [0, 384], sizes = [8, 128], strides = [1, 1]} : vector<8x512xf32> to vector<8x128xf32>
    %cst_312 = arith.constant 5.000000e-01 : f32
    %578 = vector.broadcast %cst_312 : f32 to vector<8x128xf32>
    %579 = arith.mulf %578, %577 : vector<8x128xf32>
    %580 = math.tanh %579 : vector<8x128xf32>
    %cst_313 = arith.constant 5.000000e-01 : f32
    %581 = vector.broadcast %cst_313 : f32 to vector<8x128xf32>
    %582 = arith.mulf %581, %580 : vector<8x128xf32>
    %cst_314 = arith.constant 5.000000e-01 : f32
    %583 = vector.broadcast %cst_314 : f32 to vector<8x128xf32>
    %584 = arith.addf %582, %583 : vector<8x128xf32>
    %c0_315 = arith.constant 0 : index
    %c0_316 = arith.constant 0 : index
    %585 = vector.load %arg12[%c0_315, %c0_316] : memref<8x128xf32, #tpu.memory_space<vmem>>, vector<8x128xf32>
    %586 = arith.mulf %574, %585 : vector<8x128xf32>
    %587 = arith.mulf %566, %576 : vector<8x128xf32>
    %588 = arith.addf %586, %587 : vector<8x128xf32>
    %589 = math.tanh %588 : vector<8x128xf32>
    %590 = arith.mulf %584, %589 : vector<8x128xf32>
    %591 = arith.index_cast %c12_i32 : i32 to index
    %c0_317 = arith.constant 0 : index
    %c0_318 = arith.constant 0 : index
    %592 = vector.load %arg7[%591, %c0_317, %c0_318] : memref<16x8x128xf32, #tpu.memory_space<vmem>>, vector<1x8x128xf32>
    %593 = vector.shape_cast %592 : vector<1x8x128xf32> to vector<8x128xf32>
    %594 = vector.shape_cast %590 : vector<8x128xf32> to vector<1x8x128xf32>
    tpu.vector_store %arg7[%591, %c0_317, %c0_318], %594 {strides = array<i32>} : memref<16x8x128xf32, #tpu.memory_space<vmem>>, vector<1x8x128xf32>,
    %c0_319 = arith.constant 0 : index
    %c0_320 = arith.constant 0 : index
    %595 = vector.load %arg13[%c0_319, %c0_320] : memref<8x128xf32, #tpu.memory_space<vmem>>, vector<8x128xf32>
    tpu.vector_store %arg13[%c0_319, %c0_320], %590 {strides = array<i32>} : memref<8x128xf32, #tpu.memory_space<vmem>>, vector<8x128xf32>,
    %c0_321 = arith.constant 0 : index
    %c0_322 = arith.constant 0 : index
    %596 = vector.load %arg11[%c0_321, %c0_322] : memref<8x128xf32, #tpu.memory_space<vmem>>, vector<8x128xf32>
    tpu.vector_store %arg11[%c0_321, %c0_322], %590 {strides = array<i32>} : memref<8x128xf32, #tpu.memory_space<vmem>>, vector<8x128xf32>,
    %c0_323 = arith.constant 0 : index
    %c0_324 = arith.constant 0 : index
    %597 = vector.load %arg12[%c0_323, %c0_324] : memref<8x128xf32, #tpu.memory_space<vmem>>, vector<8x128xf32>
    tpu.vector_store %arg12[%c0_323, %c0_324], %588 {strides = array<i32>} : memref<8x128xf32, #tpu.memory_space<vmem>>, vector<8x128xf32>,
    %c13_i32 = arith.constant 13 : i32
    %c0_325 = arith.constant 0 : index
    %c0_326 = arith.constant 0 : index
    %598 = vector.load %arg13[%c0_325, %c0_326] : memref<8x128xf32, #tpu.memory_space<vmem>>, vector<8x128xf32>
    %cst_327 = arith.constant dense<0.000000e+00> : vector<8x512xf32>
    %599 = tpu.matmul %598, %12, %cst_327 {dimension_numbers = #tpu.dot_dimension_numbers<[1], [0], [0], [1], [0, 0, 1, 1], [], []>} : vector<8x128xf32>, vector<128x512xf32>, vector<8x512xf32> -> vector<8x512xf32>
    %600 = arith.index_cast %c13_i32 : i32 to index
    %c0_328 = arith.constant 0 : index
    %c0_329 = arith.constant 0 : index
    %601 = vector.load %arg10[%600, %c0_328, %c0_329] : memref<16x8x512xf32, #tpu.memory_space<vmem>>, vector<1x8x512xf32>
    %602 = vector.shape_cast %601 : vector<1x8x512xf32> to vector<8x512xf32>
    %603 = arith.addf %599, %602 : vector<8x512xf32>
    %604 = vector.extract_strided_slice %603 {offsets = [0, 0], sizes = [8, 128], strides = [1, 1]} : vector<8x512xf32> to vector<8x128xf32>
    %cst_330 = arith.constant 5.000000e-01 : f32
    %605 = vector.broadcast %cst_330 : f32 to vector<8x128xf32>
    %606 = arith.mulf %605, %604 : vector<8x128xf32>
    %607 = math.tanh %606 : vector<8x128xf32>
    %cst_331 = arith.constant 5.000000e-01 : f32
    %608 = vector.broadcast %cst_331 : f32 to vector<8x128xf32>
    %609 = arith.mulf %608, %607 : vector<8x128xf32>
    %cst_332 = arith.constant 5.000000e-01 : f32
    %610 = vector.broadcast %cst_332 : f32 to vector<8x128xf32>
    %611 = arith.addf %609, %610 : vector<8x128xf32>
    %612 = vector.extract_strided_slice %603 {offsets = [0, 128], sizes = [8, 128], strides = [1, 1]} : vector<8x512xf32> to vector<8x128xf32>
    %cst_333 = arith.constant 5.000000e-01 : f32
    %613 = vector.broadcast %cst_333 : f32 to vector<8x128xf32>
    %614 = arith.mulf %613, %612 : vector<8x128xf32>
    %615 = math.tanh %614 : vector<8x128xf32>
    %cst_334 = arith.constant 5.000000e-01 : f32
    %616 = vector.broadcast %cst_334 : f32 to vector<8x128xf32>
    %617 = arith.mulf %616, %615 : vector<8x128xf32>
    %cst_335 = arith.constant 5.000000e-01 : f32
    %618 = vector.broadcast %cst_335 : f32 to vector<8x128xf32>
    %619 = arith.addf %617, %618 : vector<8x128xf32>
    %620 = vector.extract_strided_slice %603 {offsets = [0, 256], sizes = [8, 128], strides = [1, 1]} : vector<8x512xf32> to vector<8x128xf32>
    %621 = math.tanh %620 : vector<8x128xf32>
    %622 = vector.extract_strided_slice %603 {offsets = [0, 384], sizes = [8, 128], strides = [1, 1]} : vector<8x512xf32> to vector<8x128xf32>
    %cst_336 = arith.constant 5.000000e-01 : f32
    %623 = vector.broadcast %cst_336 : f32 to vector<8x128xf32>
    %624 = arith.mulf %623, %622 : vector<8x128xf32>
    %625 = math.tanh %624 : vector<8x128xf32>
    %cst_337 = arith.constant 5.000000e-01 : f32
    %626 = vector.broadcast %cst_337 : f32 to vector<8x128xf32>
    %627 = arith.mulf %626, %625 : vector<8x128xf32>
    %cst_338 = arith.constant 5.000000e-01 : f32
    %628 = vector.broadcast %cst_338 : f32 to vector<8x128xf32>
    %629 = arith.addf %627, %628 : vector<8x128xf32>
    %c0_339 = arith.constant 0 : index
    %c0_340 = arith.constant 0 : index
    %630 = vector.load %arg12[%c0_339, %c0_340] : memref<8x128xf32, #tpu.memory_space<vmem>>, vector<8x128xf32>
    %631 = arith.mulf %619, %630 : vector<8x128xf32>
    %632 = arith.mulf %611, %621 : vector<8x128xf32>
    %633 = arith.addf %631, %632 : vector<8x128xf32>
    %634 = math.tanh %633 : vector<8x128xf32>
    %635 = arith.mulf %629, %634 : vector<8x128xf32>
    %636 = arith.index_cast %c13_i32 : i32 to index
    %c0_341 = arith.constant 0 : index
    %c0_342 = arith.constant 0 : index
    %637 = vector.load %arg7[%636, %c0_341, %c0_342] : memref<16x8x128xf32, #tpu.memory_space<vmem>>, vector<1x8x128xf32>
    %638 = vector.shape_cast %637 : vector<1x8x128xf32> to vector<8x128xf32>
    %639 = vector.shape_cast %635 : vector<8x128xf32> to vector<1x8x128xf32>
    tpu.vector_store %arg7[%636, %c0_341, %c0_342], %639 {strides = array<i32>} : memref<16x8x128xf32, #tpu.memory_space<vmem>>, vector<1x8x128xf32>,
    %c0_343 = arith.constant 0 : index
    %c0_344 = arith.constant 0 : index
    %640 = vector.load %arg13[%c0_343, %c0_344] : memref<8x128xf32, #tpu.memory_space<vmem>>, vector<8x128xf32>
    tpu.vector_store %arg13[%c0_343, %c0_344], %635 {strides = array<i32>} : memref<8x128xf32, #tpu.memory_space<vmem>>, vector<8x128xf32>,
    %c0_345 = arith.constant 0 : index
    %c0_346 = arith.constant 0 : index
    %641 = vector.load %arg11[%c0_345, %c0_346] : memref<8x128xf32, #tpu.memory_space<vmem>>, vector<8x128xf32>
    tpu.vector_store %arg11[%c0_345, %c0_346], %635 {strides = array<i32>} : memref<8x128xf32, #tpu.memory_space<vmem>>, vector<8x128xf32>,
    %c0_347 = arith.constant 0 : index
    %c0_348 = arith.constant 0 : index
    %642 = vector.load %arg12[%c0_347, %c0_348] : memref<8x128xf32, #tpu.memory_space<vmem>>, vector<8x128xf32>
    tpu.vector_store %arg12[%c0_347, %c0_348], %633 {strides = array<i32>} : memref<8x128xf32, #tpu.memory_space<vmem>>, vector<8x128xf32>,
    %c14_i32 = arith.constant 14 : i32
    %c0_349 = arith.constant 0 : index
    %c0_350 = arith.constant 0 : index
    %643 = vector.load %arg13[%c0_349, %c0_350] : memref<8x128xf32, #tpu.memory_space<vmem>>, vector<8x128xf32>
    %cst_351 = arith.constant dense<0.000000e+00> : vector<8x512xf32>
    %644 = tpu.matmul %643, %12, %cst_351 {dimension_numbers = #tpu.dot_dimension_numbers<[1], [0], [0], [1], [0, 0, 1, 1], [], []>} : vector<8x128xf32>, vector<128x512xf32>, vector<8x512xf32> -> vector<8x512xf32>
    %645 = arith.index_cast %c14_i32 : i32 to index
    %c0_352 = arith.constant 0 : index
    %c0_353 = arith.constant 0 : index
    %646 = vector.load %arg10[%645, %c0_352, %c0_353] : memref<16x8x512xf32, #tpu.memory_space<vmem>>, vector<1x8x512xf32>
    %647 = vector.shape_cast %646 : vector<1x8x512xf32> to vector<8x512xf32>
    %648 = arith.addf %644, %647 : vector<8x512xf32>
    %649 = vector.extract_strided_slice %648 {offsets = [0, 0], sizes = [8, 128], strides = [1, 1]} : vector<8x512xf32> to vector<8x128xf32>
    %cst_354 = arith.constant 5.000000e-01 : f32
    %650 = vector.broadcast %cst_354 : f32 to vector<8x128xf32>
    %651 = arith.mulf %650, %649 : vector<8x128xf32>
    %652 = math.tanh %651 : vector<8x128xf32>
    %cst_355 = arith.constant 5.000000e-01 : f32
    %653 = vector.broadcast %cst_355 : f32 to vector<8x128xf32>
    %654 = arith.mulf %653, %652 : vector<8x128xf32>
    %cst_356 = arith.constant 5.000000e-01 : f32
    %655 = vector.broadcast %cst_356 : f32 to vector<8x128xf32>
    %656 = arith.addf %654, %655 : vector<8x128xf32>
    %657 = vector.extract_strided_slice %648 {offsets = [0, 128], sizes = [8, 128], strides = [1, 1]} : vector<8x512xf32> to vector<8x128xf32>
    %cst_357 = arith.constant 5.000000e-01 : f32
    %658 = vector.broadcast %cst_357 : f32 to vector<8x128xf32>
    %659 = arith.mulf %658, %657 : vector<8x128xf32>
    %660 = math.tanh %659 : vector<8x128xf32>
    %cst_358 = arith.constant 5.000000e-01 : f32
    %661 = vector.broadcast %cst_358 : f32 to vector<8x128xf32>
    %662 = arith.mulf %661, %660 : vector<8x128xf32>
    %cst_359 = arith.constant 5.000000e-01 : f32
    %663 = vector.broadcast %cst_359 : f32 to vector<8x128xf32>
    %664 = arith.addf %662, %663 : vector<8x128xf32>
    %665 = vector.extract_strided_slice %648 {offsets = [0, 256], sizes = [8, 128], strides = [1, 1]} : vector<8x512xf32> to vector<8x128xf32>
    %666 = math.tanh %665 : vector<8x128xf32>
    %667 = vector.extract_strided_slice %648 {offsets = [0, 384], sizes = [8, 128], strides = [1, 1]} : vector<8x512xf32> to vector<8x128xf32>
    %cst_360 = arith.constant 5.000000e-01 : f32
    %668 = vector.broadcast %cst_360 : f32 to vector<8x128xf32>
    %669 = arith.mulf %668, %667 : vector<8x128xf32>
    %670 = math.tanh %669 : vector<8x128xf32>
    %cst_361 = arith.constant 5.000000e-01 : f32
    %671 = vector.broadcast %cst_361 : f32 to vector<8x128xf32>
    %672 = arith.mulf %671, %670 : vector<8x128xf32>
    %cst_362 = arith.constant 5.000000e-01 : f32
    %673 = vector.broadcast %cst_362 : f32 to vector<8x128xf32>
    %674 = arith.addf %672, %673 : vector<8x128xf32>
    %c0_363 = arith.constant 0 : index
    %c0_364 = arith.constant 0 : index
    %675 = vector.load %arg12[%c0_363, %c0_364] : memref<8x128xf32, #tpu.memory_space<vmem>>, vector<8x128xf32>
    %676 = arith.mulf %664, %675 : vector<8x128xf32>
    %677 = arith.mulf %656, %666 : vector<8x128xf32>
    %678 = arith.addf %676, %677 : vector<8x128xf32>
    %679 = math.tanh %678 : vector<8x128xf32>
    %680 = arith.mulf %674, %679 : vector<8x128xf32>
    %681 = arith.index_cast %c14_i32 : i32 to index
    %c0_365 = arith.constant 0 : index
    %c0_366 = arith.constant 0 : index
    %682 = vector.load %arg7[%681, %c0_365, %c0_366] : memref<16x8x128xf32, #tpu.memory_space<vmem>>, vector<1x8x128xf32>
    %683 = vector.shape_cast %682 : vector<1x8x128xf32> to vector<8x128xf32>
    %684 = vector.shape_cast %680 : vector<8x128xf32> to vector<1x8x128xf32>
    tpu.vector_store %arg7[%681, %c0_365, %c0_366], %684 {strides = array<i32>} : memref<16x8x128xf32, #tpu.memory_space<vmem>>, vector<1x8x128xf32>,
    %c0_367 = arith.constant 0 : index
    %c0_368 = arith.constant 0 : index
    %685 = vector.load %arg13[%c0_367, %c0_368] : memref<8x128xf32, #tpu.memory_space<vmem>>, vector<8x128xf32>
    tpu.vector_store %arg13[%c0_367, %c0_368], %680 {strides = array<i32>} : memref<8x128xf32, #tpu.memory_space<vmem>>, vector<8x128xf32>,
    %c0_369 = arith.constant 0 : index
    %c0_370 = arith.constant 0 : index
    %686 = vector.load %arg11[%c0_369, %c0_370] : memref<8x128xf32, #tpu.memory_space<vmem>>, vector<8x128xf32>
    tpu.vector_store %arg11[%c0_369, %c0_370], %680 {strides = array<i32>} : memref<8x128xf32, #tpu.memory_space<vmem>>, vector<8x128xf32>,
    %c0_371 = arith.constant 0 : index
    %c0_372 = arith.constant 0 : index
    %687 = vector.load %arg12[%c0_371, %c0_372] : memref<8x128xf32, #tpu.memory_space<vmem>>, vector<8x128xf32>
    tpu.vector_store %arg12[%c0_371, %c0_372], %678 {strides = array<i32>} : memref<8x128xf32, #tpu.memory_space<vmem>>, vector<8x128xf32>,
    %c15_i32 = arith.constant 15 : i32
    %c0_373 = arith.constant 0 : index
    %c0_374 = arith.constant 0 : index
    %688 = vector.load %arg13[%c0_373, %c0_374] : memref<8x128xf32, #tpu.memory_space<vmem>>, vector<8x128xf32>
    %cst_375 = arith.constant dense<0.000000e+00> : vector<8x512xf32>
    %689 = tpu.matmul %688, %12, %cst_375 {dimension_numbers = #tpu.dot_dimension_numbers<[1], [0], [0], [1], [0, 0, 1, 1], [], []>} : vector<8x128xf32>, vector<128x512xf32>, vector<8x512xf32> -> vector<8x512xf32>
    %690 = arith.index_cast %c15_i32 : i32 to index
    %c0_376 = arith.constant 0 : index
    %c0_377 = arith.constant 0 : index
    %691 = vector.load %arg10[%690, %c0_376, %c0_377] : memref<16x8x512xf32, #tpu.memory_space<vmem>>, vector<1x8x512xf32>
    %692 = vector.shape_cast %691 : vector<1x8x512xf32> to vector<8x512xf32>
    %693 = arith.addf %689, %692 : vector<8x512xf32>
    %694 = vector.extract_strided_slice %693 {offsets = [0, 0], sizes = [8, 128], strides = [1, 1]} : vector<8x512xf32> to vector<8x128xf32>
    %cst_378 = arith.constant 5.000000e-01 : f32
    %695 = vector.broadcast %cst_378 : f32 to vector<8x128xf32>
    %696 = arith.mulf %695, %694 : vector<8x128xf32>
    %697 = math.tanh %696 : vector<8x128xf32>
    %cst_379 = arith.constant 5.000000e-01 : f32
    %698 = vector.broadcast %cst_379 : f32 to vector<8x128xf32>
    %699 = arith.mulf %698, %697 : vector<8x128xf32>
    %cst_380 = arith.constant 5.000000e-01 : f32
    %700 = vector.broadcast %cst_380 : f32 to vector<8x128xf32>
    %701 = arith.addf %699, %700 : vector<8x128xf32>
    %702 = vector.extract_strided_slice %693 {offsets = [0, 128], sizes = [8, 128], strides = [1, 1]} : vector<8x512xf32> to vector<8x128xf32>
    %cst_381 = arith.constant 5.000000e-01 : f32
    %703 = vector.broadcast %cst_381 : f32 to vector<8x128xf32>
    %704 = arith.mulf %703, %702 : vector<8x128xf32>
    %705 = math.tanh %704 : vector<8x128xf32>
    %cst_382 = arith.constant 5.000000e-01 : f32
    %706 = vector.broadcast %cst_382 : f32 to vector<8x128xf32>
    %707 = arith.mulf %706, %705 : vector<8x128xf32>
    %cst_383 = arith.constant 5.000000e-01 : f32
    %708 = vector.broadcast %cst_383 : f32 to vector<8x128xf32>
    %709 = arith.addf %707, %708 : vector<8x128xf32>
    %710 = vector.extract_strided_slice %693 {offsets = [0, 256], sizes = [8, 128], strides = [1, 1]} : vector<8x512xf32> to vector<8x128xf32>
    %711 = math.tanh %710 : vector<8x128xf32>
    %712 = vector.extract_strided_slice %693 {offsets = [0, 384], sizes = [8, 128], strides = [1, 1]} : vector<8x512xf32> to vector<8x128xf32>
    %cst_384 = arith.constant 5.000000e-01 : f32
    %713 = vector.broadcast %cst_384 : f32 to vector<8x128xf32>
    %714 = arith.mulf %713, %712 : vector<8x128xf32>
    %715 = math.tanh %714 : vector<8x128xf32>
    %cst_385 = arith.constant 5.000000e-01 : f32
    %716 = vector.broadcast %cst_385 : f32 to vector<8x128xf32>
    %717 = arith.mulf %716, %715 : vector<8x128xf32>
    %cst_386 = arith.constant 5.000000e-01 : f32
    %718 = vector.broadcast %cst_386 : f32 to vector<8x128xf32>
    %719 = arith.addf %717, %718 : vector<8x128xf32>
    %c0_387 = arith.constant 0 : index
    %c0_388 = arith.constant 0 : index
    %720 = vector.load %arg12[%c0_387, %c0_388] : memref<8x128xf32, #tpu.memory_space<vmem>>, vector<8x128xf32>
    %721 = arith.mulf %709, %720 : vector<8x128xf32>
    %722 = arith.mulf %701, %711 : vector<8x128xf32>
    %723 = arith.addf %721, %722 : vector<8x128xf32>
    %724 = math.tanh %723 : vector<8x128xf32>
    %725 = arith.mulf %719, %724 : vector<8x128xf32>
    %726 = arith.index_cast %c15_i32 : i32 to index
    %c0_389 = arith.constant 0 : index
    %c0_390 = arith.constant 0 : index
    %727 = vector.load %arg7[%726, %c0_389, %c0_390] : memref<16x8x128xf32, #tpu.memory_space<vmem>>, vector<1x8x128xf32>
    %728 = vector.shape_cast %727 : vector<1x8x128xf32> to vector<8x128xf32>
    %729 = vector.shape_cast %725 : vector<8x128xf32> to vector<1x8x128xf32>
    tpu.vector_store %arg7[%726, %c0_389, %c0_390], %729 {strides = array<i32>} : memref<16x8x128xf32, #tpu.memory_space<vmem>>, vector<1x8x128xf32>,
    %c0_391 = arith.constant 0 : index
    %c0_392 = arith.constant 0 : index
    %730 = vector.load %arg13[%c0_391, %c0_392] : memref<8x128xf32, #tpu.memory_space<vmem>>, vector<8x128xf32>
    tpu.vector_store %arg13[%c0_391, %c0_392], %725 {strides = array<i32>} : memref<8x128xf32, #tpu.memory_space<vmem>>, vector<8x128xf32>,
    %c0_393 = arith.constant 0 : index
    %c0_394 = arith.constant 0 : index
    %731 = vector.load %arg11[%c0_393, %c0_394] : memref<8x128xf32, #tpu.memory_space<vmem>>, vector<8x128xf32>
    tpu.vector_store %arg11[%c0_393, %c0_394], %725 {strides = array<i32>} : memref<8x128xf32, #tpu.memory_space<vmem>>, vector<8x128xf32>,
    %c0_395 = arith.constant 0 : index
    %c0_396 = arith.constant 0 : index
    %732 = vector.load %arg12[%c0_395, %c0_396] : memref<8x128xf32, #tpu.memory_space<vmem>>, vector<8x128xf32>
    tpu.vector_store %arg12[%c0_395, %c0_396], %723 {strides = array<i32>} : memref<8x128xf32, #tpu.memory_space<vmem>>, vector<8x128xf32>,
    %c16_i32 = arith.constant 16 : i32
    %c0_i32_397 = arith.constant 0 : i32
    %733 = arith.cmpi eq, %arg0, %c0_i32_397 : i32
    %734 = arith.extui %733 : i1 to i32
    %c0_i32_398 = arith.constant 0 : i32
    %735 = arith.cmpi ne, %734, %c0_i32_398 : i32
    scf.if %735 {
      %c0_399 = arith.constant 0 : index
      %c0_400 = arith.constant 0 : index
      %736 = vector.load %arg11[%c0_399, %c0_400] : memref<8x128xf32, #tpu.memory_space<vmem>>, vector<8x128xf32>
      %c0_401 = arith.constant 0 : index
      %c0_402 = arith.constant 0 : index
      %737 = vector.load %arg8[%c0_401, %c0_402] : memref<8x128xf32, #tpu.memory_space<vmem>>, vector<8x128xf32>
      tpu.vector_store %arg8[%c0_401, %c0_402], %736 {strides = array<i32>} : memref<8x128xf32, #tpu.memory_space<vmem>>, vector<8x128xf32>,
      %c0_403 = arith.constant 0 : index
      %c0_404 = arith.constant 0 : index
      %738 = vector.load %arg12[%c0_403, %c0_404] : memref<8x128xf32, #tpu.memory_space<vmem>>, vector<8x128xf32>
      %c0_405 = arith.constant 0 : index
      %c0_406 = arith.constant 0 : index
      %739 = vector.load %arg9[%c0_405, %c0_406] : memref<8x128xf32, #tpu.memory_space<vmem>>, vector<8x128xf32>
      tpu.vector_store %arg9[%c0_405, %c0_406], %738 {strides = array<i32>} : memref<8x128xf32, #tpu.memory_space<vmem>>, vector<8x128xf32>,
    } else {
    }
    return
  }
  func.func @transform_0(%arg0: i32) -> (i32, i32, i32) {
    %c0_i32 = arith.constant 0 : i32
    %c0_i32_0 = arith.constant 0 : i32
    %c0_i32_1 = arith.constant 0 : i32
    return %arg0, %c0_i32, %c0_i32_0 : i32, i32, i32
  }
  func.func @transform_1(%arg0: i32) -> (i32, i32) {
    %c0_i32 = arith.constant 0 : i32
    %c0_i32_0 = arith.constant 0 : i32
    %c0_i32_1 = arith.constant 0 : i32
    return %c0_i32, %c0_i32_0 : i32, i32
  }
  func.func @transform_2(%arg0: i32) -> (i32, i32) {
    %c0_i32 = arith.constant 0 : i32
    %c0_i32_0 = arith.constant 0 : i32
    %c0_i32_1 = arith.constant 0 : i32
    return %c0_i32, %c0_i32_0 : i32, i32
  }
  func.func @transform_3(%arg0: i32) -> (i32, i32) {
    %c0_i32 = arith.constant 0 : i32
    %c0_i32_0 = arith.constant 0 : i32
    %c0_i32_1 = arith.constant 0 : i32
    return %c0_i32, %c0_i32_0 : i32, i32
  }
  func.func @transform_4(%arg0: i32) -> (i32, i32) {
    %c0_i32 = arith.constant 0 : i32
    %c0_i32_0 = arith.constant 0 : i32
    %c0_i32_1 = arith.constant 0 : i32
    return %c0_i32, %c0_i32_0 : i32, i32
  }
  func.func @transform_5(%arg0: i32) -> (i32, i32) {
    %c0_i32 = arith.constant 0 : i32
    %c0_i32_0 = arith.constant 0 : i32
    %c0_i32_1 = arith.constant 0 : i32
    return %c0_i32, %c0_i32_0 : i32, i32
  }
  func.func @transform_6(%arg0: i32) -> (i32, i32, i32) {
    %c0_i32 = arith.constant 0 : i32
    %c0_i32_0 = arith.constant 0 : i32
    %c0_i32_1 = arith.constant 0 : i32
    return %arg0, %c0_i32, %c0_i32_0 : i32, i32, i32
  }
  func.func @transform_7(%arg0: i32) -> (i32, i32) {
    %c0_i32 = arith.constant 0 : i32
    %c0_i32_0 = arith.constant 0 : i32
    %c0_i32_1 = arith.constant 0 : i32
    return %c0_i32, %c0_i32_0 : i32, i32
  }
  func.func @transform_8(%arg0: i32) -> (i32, i32) {
    %c0_i32 = arith.constant 0 : i32
    %c0_i32_0 = arith.constant 0 : i32
    %c0_i32_1 = arith.constant 0 : i32
    return %c0_i32, %c0_i32_0 : i32, i32
  }
}

</mosaic_0001>

<bundles_post_ra>
// kernel: tpu_custom_call.1
= control target key start
LH: loop header
LB: loop body
LE: loop exit
PB: predicated region body
PF: predicated region fallthrough
CT: control target
= control target key end

     0   :  { %14 = vsyncpa [#allocation7], 0  ;;  %s6055_s0 = inlined_call_operand.hbm [shape: f32[16,8,32], index: 0, kind: input, shape index: {}]   ;;  %s6056_s1 = inlined_call_operand.hbm [shape: f32[8,128], index: 1, kind: input, shape index: {}]   ;;  %s6057_s2 = inlined_call_operand.hbm [shape: f32[8,128], index: 2, kind: input, shape index: {}]   ;;  %s6058_s3 = inlined_call_operand.hbm [shape: f32[32,512], index: 3, kind: input, shape index: {}]   ;;  %s6059_s4 = inlined_call_operand.hbm [shape: f32[128,512], index: 4, kind: input, shape index: {}]   ;;  %s6060_s5 = inlined_call_operand.hbm [shape: f32[1,512], index: 5, kind: input, shape index: {}]   ;;  %s6061_s6 = inlined_call_operand.hbm [shape: f32[16,8,128], index: 6, kind: output, shape index: {0}]   ;;  %s6062_s7 = inlined_call_operand.hbm [shape: f32[8,128], index: 7, kind: output, shape index: {1}]   ;;  %s6063_s8 = inlined_call_operand.hbm [shape: f32[8,128], index: 8, kind: output, shape index: {2}]  }
   0x1   :  { %15 = vsyncpa [#allocation10], 0 }
   0x2   :  { %16 = vsyncpa [#allocation13], 0 }
   0x3   :  { %17 = vsyncpa [#allocation16], 0 }
   0x4   :  { %18 = vsyncpa [#allocation8], 0 }
   0x5   :  { %19 = vsyncpa [#allocation19], 0  ;;  %s5055_s27 = smov [#allocation9]   ;;  %s5056_s29 = smov [#allocation12]  }
   0x6   :  { %s38_s28 = sshll.u32 %s5055_s27, 4  ;;  %s57_s30 = sshll.u32 %s5056_s29, 4  ;;  %s39_s28 = int_to_ptr.vmem [resolvable:$true] %s38_s28  ;;  %s5114_s30 = int_to_ptr.vmem [resolvable:$true] %s57_s30 }
   0x7   :  { %s4845_s11 = scalar_lea.hbm %s6056_s1, 128 }
   0x8   :  { %p4846_p0 = scmp.ne.s32.totalorder %s6056_s1, %s4845_s11  ;;  %p4849_p1 = scmp.lt.u32.totalorder %s4845_s11, %s6056_s1 }
   0xa   :  { %p4851_p2 = pnand %p4849_p1, %p4846_p0 }
   0xc   :  { %4854 = shalt.err (!%p4851_p2)
}
   0xd   :  { %s4855_s16 = scalar_lea.vmem %s39_s28, 128  ;;  %p4860_p4 = scmp.lt.s32.totalorder %s39_s28, %s39_s28 }
   0xe   :  { %p4856_p3 = scmp.ne.s32.totalorder %s39_s28, %s4855_s16  ;;  %p4861_p5 = scmp.lt.s32.totalorder %s4855_s16, %s4855_s16 }
  0x10   :  { %p4862_p6 = por %p4861_p5, %p4860_p4 }
  0x12   :  { %p4863_p7 = pnand %p4862_p6, %p4856_p3 }
  0x14   :  { %4866 = shalt.err (!%p4863_p7)
}
  0x15   :  { %41 = dma.hbm_to_vmem [thread:$0]  %s6056_s1, 128, %s39_s28, [#allocation10]  }
  0x16   :  { %s4867_s21 = scalar_lea.hbm %s6058_s3, 2048 }
  0x17   :  { %p4868_p8 = scmp.ne.s32.totalorder %s6058_s3, %s4867_s21  ;;  %p4871_p9 = scmp.lt.u32.totalorder %s4867_s21, %s6058_s3 }
  0x19   :  { %p4873_p10 = pnand %p4871_p9, %p4868_p8 }
  0x1b   :  { %4876 = shalt.err (!%p4873_p10)
}
  0x1c   :  { %s4877_s26 = scalar_lea.vmem %s5114_s30, 2048  ;;  %p4882_p12 = scmp.lt.s32.totalorder %s5114_s30, %s5114_s30 }
  0x1d   :  { %p4878_p11 = scmp.ne.s32.totalorder %s5114_s30, %s4877_s26  ;;  %p4883_p13 = scmp.lt.s32.totalorder %s4877_s26, %s4877_s26 }
  0x1f   :  { %p4884_p0 = por %p4883_p13, %p4882_p12 }
  0x21   :  { %p4885_p1 = pnand %p4884_p0, %p4878_p11 }
  0x23   :  { %4888 = shalt.err (!%p4885_p1)
}
  0x24   :  { %s5057_s1 = smov 512   ;;  %s5058_s27 = smov 32  }
  0x25   :  { %63 = dma.hbm_to_vmem [thread:$0]  %s6058_s3, 2048, %s5114_s30, [#allocation13], %s5057_s1, %s5057_s1, %s5058_s27  }
  0x26   :  { %s5059_s9 = smov [#allocation6]   ;;  %s4889_s13 = scalar_lea.hbm %s6055_s0, 2048 }
  0x27   :  { %s25_s10 = sshll.u32 %s5059_s9, 4  ;;  %p4890_p2 = scmp.ne.s32.totalorder %s6055_s0, %s4889_s13  ;;  %s26_s10 = int_to_ptr.vmem [resolvable:$true] %s25_s10 }
  0x28   :  { %p4893_p3 = scmp.lt.u32.totalorder %s4889_s13, %s6055_s0 }
  0x2a   :  { %p4895_p4 = pnand %p4893_p3, %p4890_p2 }
  0x2c   :  { %4898 = shalt.err (!%p4895_p4)
}
  0x2d   :  { %s4899_s18 = scalar_lea.vmem %s26_s10, 2048  ;;  %p4904_p6 = scmp.lt.s32.totalorder %s26_s10, %s26_s10 }
  0x2e   :  { %p4900_p5 = scmp.ne.s32.totalorder %s26_s10, %s4899_s18  ;;  %p4905_p7 = scmp.lt.s32.totalorder %s4899_s18, %s4899_s18 }
  0x30   :  { %p4906_p8 = por %p4905_p7, %p4904_p6 }
  0x32   :  { %p4907_p9 = pnand %p4906_p8, %p4900_p5 }
  0x34   :  { %4910 = shalt.err (!%p4907_p9)
}
  0x35   :  { %s5060_s3 = smov 128   ;;  %s5061_s30 = smov 8  }
  0x36   :  { %31 = dma.hbm_to_vmem [thread:$0]  %s6055_s0, 2048, %s26_s10, [#allocation7], %s5060_s3, %s5060_s3, %s5061_s30  }
  0x37   :  { %s5062_s21 = smov [#allocation11]   ;;  %s5063_s23 = smov [#allocation14]  }
  0x38   :  { %s48_s22 = sshll.u32 %s5062_s21, 4  ;;  %s69_s24 = sshll.u32 %s5063_s23, 4  ;;  %s49_s22 = int_to_ptr.vmem [resolvable:$true] %s48_s22  ;;  %s70_s24 = int_to_ptr.vmem [resolvable:$true] %s69_s24 }
  0x39   :  { %s4911_s28 = scalar_lea.hbm %s6057_s2, 128 }
  0x3a   :  { %p4912_p10 = scmp.ne.s32.totalorder %s6057_s2, %s4911_s28  ;;  %p4915_p11 = scmp.lt.u32.totalorder %s4911_s28, %s6057_s2 }
  0x3c   :  { %p4917_p12 = pnand %p4915_p11, %p4912_p10 }
  0x3e   :  { %4920 = shalt.err (!%p4917_p12)
}
  0x3f   :  { %s4921_s0 = scalar_lea.vmem %s49_s22, 128  ;;  %p4926_p0 = scmp.lt.s32.totalorder %s49_s22, %s49_s22 }
  0x40   :  { %p4922_p13 = scmp.ne.s32.totalorder %s49_s22, %s4921_s0  ;;  %p4927_p1 = scmp.lt.s32.totalorder %s4921_s0, %s4921_s0 }
  0x42   :  { %p4928_p2 = por %p4927_p1, %p4926_p0 }
  0x44   :  { %p4929_p3 = pnand %p4928_p2, %p4922_p13 }
  0x46   :  { %4932 = shalt.err (!%p4929_p3)
}
  0x47   :  { %51 = dma.hbm_to_vmem [thread:$0]  %s6057_s2, 128, %s49_s22, [#allocation10]  }
  0x48   :  { %s4933_s16 = scalar_lea.hbm %s6059_s4, 8192 }
  0x49   :  { %p4934_p4 = scmp.ne.s32.totalorder %s6059_s4, %s4933_s16  ;;  %p4937_p5 = scmp.lt.u32.totalorder %s4933_s16, %s6059_s4 }
  0x4b   :  { %p4939_p6 = pnand %p4937_p5, %p4934_p4 }
  0x4d   :  { %4942 = shalt.err (!%p4939_p6)
}
  0x4e   :  { %s4943_s21 = scalar_lea.vmem %s70_s24, 8192  ;;  %p4948_p8 = scmp.lt.s32.totalorder %s70_s24, %s70_s24 }
  0x4f   :  { %p4944_p7 = scmp.ne.s32.totalorder %s70_s24, %s4943_s21  ;;  %p4949_p9 = scmp.lt.s32.totalorder %s4943_s21, %s4943_s21 }
  0x51   :  { %p4950_p10 = por %p4949_p9, %p4948_p8 }
  0x53   :  { %p4951_p11 = pnand %p4950_p10, %p4944_p7 }
  0x55   :  { %4954 = shalt.err (!%p4951_p11)
}
  0x56   :  { %75 = dma.hbm_to_vmem [thread:$0]  %s6059_s4, 8192, %s70_s24, [#allocation13], %s5057_s1, %s5057_s1, %s5058_s27  }
  0x57   :  { %s5064_s23 = smov [#allocation15]   ;;  %s4955_s29 = scalar_lea.hbm %s6060_s5, 64 }
  0x58   :  { %s82_s25 = sshll.u32 %s5064_s23, 4  ;;  %p4956_p12 = scmp.ne.s32.totalorder %s6060_s5, %s4955_s29  ;;  %s83_s25 = int_to_ptr.vmem [resolvable:$true] %s82_s25 }
  0x59   :  { %p4959_p13 = scmp.lt.u32.totalorder %s4955_s29, %s6060_s5 }
  0x5b   :  { %p4961_p0 = pnand %p4959_p13, %p4956_p12 }
  0x5d   :  { %4964 = shalt.err (!%p4961_p0)
}
  0x5e   :  { %s4965_s10 = scalar_lea.vmem %s83_s25, 64  ;;  %p4970_p2 = scmp.lt.s32.totalorder %s83_s25, %s83_s25 }
  0x5f   :  { %p4966_p1 = scmp.ne.s32.totalorder %s83_s25, %s4965_s10  ;;  %p4971_p3 = scmp.lt.s32.totalorder %s4965_s10, %s4965_s10 }
  0x61   :  { %p4972_p4 = por %p4971_p3, %p4970_p2 }
  0x63   :  { %p4973_p5 = pnand %p4972_p4, %p4966_p1 }
  0x65   :  { %4976 = shalt.err (!%p4973_p5)
}
  0x66   :  { %85 = dma.hbm_to_vmem [thread:$0]  %s6060_s5, 64, %s83_s25, [#allocation16]  }
  0x67   :  { %5043 = dma.done.wait [#allocation7], 2048  }
  0x68   :  { %5044 = vsyncadd [#allocation7], 4294965248 }
  0x69   :  { %5045 = dma.done.wait [#allocation10], 256  }
  0x6a   :  { %5046 = vsyncadd [#allocation10], 4294967040 }
  0x6b   :  { %5047 = dma.done.wait [#allocation13], 10240  }
  0x6c   :  { %5048 = vsyncadd [#allocation13], 4294957056 }
  0x6d   :  { %5049 = dma.done.wait [#allocation16], 64  }
  0x6e   :  { %5050 = vsyncadd [#allocation16], 4294967232  ;;  %v5065_v0 = vmov 0.0   ;;  %v131_v1 = vld [vmem:[#allocation12 + $0x8] sm:$0xff]  ;;  %v133_v3 = vld [vmem:[#allocation12 + $0x18] sm:$0xff]  ;;  %vm168_vm0 = vcmask 261120  }
  0x6f   :  { %281 = vmatprep.mubr.f32.mxu0 %v5065_v0  ;;  %442 = vmatprep.mubr.f32.mxu1 %v5065_v0  ;;  %v135_v2 = vld [vmem:[#allocation12 + $0x28] sm:$0xff]  ;;  %v137_v5 = vld [vmem:[#allocation12 + $0x38] sm:$0xff]  ;;  %v130_v6 = vld [vmem:[#allocation12] sm:$0xff]  ;;  %s5066_s5 = smov [#allocation18]   ;;  %s5067_s24 = smov [#allocation17]  }
  0x70   :  { %v3503_v4 = vpack.c.bf16 %v135_v2, %v131_v1  ;;  %v134_v7 = vld [vmem:[#allocation12 + $0x20] sm:$0xff]  ;;  %v3511_v8 = vpack.c.bf16 %v137_v5, %v133_v3  ;;  %v132_v10 = vld [vmem:[#allocation12 + $0x10] sm:$0xff]  ;;  %v139_v12 = vld [vmem:[#allocation12 + $0x48] sm:$0xff]  ;;  %s3442_s27 = sshll.u32 %s5066_s5, 4  ;;  %s3429_s13 = sshll.u32 %s5067_s24, 4  ;;  %s3443_s27 = int_to_ptr.vmem [resolvable:$true] %s3442_s27  ;;  %s6002_s13 = int_to_ptr.vmem [resolvable:$true] %s3429_s13 }
  0x71   :  { %v3505_v9 = vpack.c.bf16 %v134_v7, %v130_v6  ;;  %v136_v11 = vld [vmem:[#allocation12 + $0x30] sm:$0xff]  ;;  %v143_v14 = vld [vmem:[#allocation12 + $0x68] sm:$0xff]  ;;  %v141_v15 = vld [vmem:[#allocation12 + $0x58] sm:$0xff]  ;;  %s5068_s14 = smov [#allocation20]   ;;  %s4977_s16 = scalar_lea.vmem %s3443_s27, 128 }
  0x72   :  { %3504 = vmatprep.subr.bf16.mxu0 %v3503_v4  ;;  %v3513_v13 = vpack.c.bf16 %v136_v11, %v132_v10  ;;  %v145_v16 = vld [vmem:[#allocation12 + $0x78] sm:$0xff]  ;;  %3512 = vmatprep.subr.bf16.mxu1 %v3511_v8  ;;  %v3507_v17 = vpack.c.bf16 %v143_v14, %v139_v12  ;;  %v138_v19 = vld [vmem:[#allocation12 + $0x40] sm:$0xff]  ;;  %v140_v21 = vld [vmem:[#allocation12 + $0x50] sm:$0xff]  ;;  %s3452_s15 = sshll.u32 %s5068_s14, 4  ;;  %p4978_p6 = scmp.ne.s32.totalorder %s3443_s27, %s4977_s16  ;;  %s6004_s15 = int_to_ptr.vmem [resolvable:$true] %s3452_s15 }
  0x73   :  { %3506 = vmatpush1.bf16.msra.mxu0 %v3505_v9  ;;  %v3515_v18 = vpack.c.bf16 %v145_v16, %v141_v15  ;;  %v142_v20 = vld [vmem:[#allocation12 + $0x60] sm:$0xff]  ;;  %v144_v23 = vld [vmem:[#allocation12 + $0x70] sm:$0xff]  ;;  %v604_v24 = vld [vmem:[#allocation14 + $0x8] sm:$0xff]  ;;  %p4982_p7 = scmp.lt.s32.totalorder %s3443_s27, %s3443_s27  ;;  %p4983_p8 = scmp.lt.s32.totalorder %s4977_s16, %s4977_s16 }
  0x74   :  { %3514 = vmatpush1.bf16.msra.mxu1 %v3513_v13  ;;  %v3509_v22 = vpack.c.bf16 %v142_v20, %v138_v19  ;;  %3508 = vmatprep.subr.bf16.mxu0 %v3507_v17  ;;  %v3517_v25 = vpack.c.bf16 %v144_v23, %v140_v21  ;;  %v608_v26 = vld [vmem:[#allocation14 + $0x28] sm:$0xff]  ;;  %v603_v27 = vld [vmem:[#allocation14] sm:$0xff]  ;;  %v606_v30 = vld [vmem:[#allocation14 + $0x18] sm:$0xff] }
  0x75   :  { %3516 = vmatprep.subr.bf16.mxu1 %v3515_v18  ;;  %v607_v28 = vld [vmem:[#allocation14 + $0x20] sm:$0xff]  ;;  %v5204_v29 = vpack.c.bf16 %v608_v26, %v604_v24  ;;  %v610_v31 = vld [vmem:[#allocation14 + $0x38] sm:$0xff]  ;;  %v114_v32 = vld [vmem:[#allocation6] sm:$0xff]  ;;  %p4984_p9 = por %p4983_p8, %p4982_p7 }
  0x76   :  { %v5206_v33 = vpack.c.bf16 %v607_v28, %v603_v27  ;;  %v5208_v34 = vpack.c.bf16 %v610_v31, %v606_v30  ;;  %v612_v35 = vld [vmem:[#allocation14 + $0x48] sm:$0xff]  ;;  %v605_v37 = vld [vmem:[#allocation14 + $0x10] sm:$0xff]  ;;  %v611_v41 = vld [vmem:[#allocation14 + $0x40] sm:$0xff] }
  0x77   :  { %3510 = vmatpush1.bf16.msra.mxu0 %v3509_v22  ;;  %v616_v36 = vld [vmem:[#allocation14 + $0x68] sm:$0xff]  ;;  %v609_v38 = vld [vmem:[#allocation14 + $0x30] sm:$0xff]  ;;  %v615_v42 = vld [vmem:[#allocation14 + $0x60] sm:$0xff]  ;;  %p4985_p10 = pnand %p4984_p9, %p4978_p6 }
  0x78   :  { %3518 = vmatpush1.bf16.msra.mxu1 %v3517_v25  ;;  %3520 = vmatprep.subr.bf16.mxu0 %v5204_v29  ;;  %v5212_v39 = vpack.c.bf16 %v616_v36, %v612_v35  ;;  %v5214_v40 = vpack.c.bf16 %v609_v38, %v605_v37  ;;  %v614_v43 = vld [vmem:[#allocation14 + $0x58] sm:$0xff]  ;;  %v620_v46 = vld [vmem:[#allocation14 + $0x88] sm:$0xff]  ;;  %v613_v49 = vld [vmem:[#allocation14 + $0x50] sm:$0xff]  ;;  %v5223_v51 = vpack.c.bf16 %v615_v42, %v611_v41 }
  0x79   :  { %3552 = vmatprep.subr.bf16.mxu1 %v5208_v34  ;;  %v115_v44 = vld [vmem:[#allocation6 + $0x8] sm:$0xff]  ;;  %v624_v48 = vld [vmem:[#allocation14 + $0xa8] sm:$0xff]  ;;  %v617_v50 = vld [vmem:[#allocation14 + $0x70] sm:$0xff] }
  0x7a   :  { %3471 = vmatmul.mubr.msk.f32.vlgmr.msra.gmra.mrb[0].mxu0 %vm168_vm0, %v114_v32  ;;  %v618_v45 = vld [vmem:[#allocation14 + $0x78] sm:$0xff]  ;;  %v619_v52 = vld [vmem:[#allocation14 + $0x80] sm:$0xff]  ;;  %v5227_v53 = vpack.c.bf16 %v624_v48, %v620_v46  ;;  %v5229_v54 = vpack.c.bf16 %v617_v50, %v613_v49  ;;  %v628_v59 = vld [vmem:[#allocation14 + $0xc8] sm:$0xff] }
  0x7b   :  { %3487 = vmatmul.mubr.msk.f32.vlgmr.msra.gmra.mrb[0].mxu1 %vm168_vm0, %v114_v32  ;;  %3522 = vmatpush1.bf16.msra.mxu0 %v5206_v33  ;;  %v5219_v47 = vpack.c.bf16 %v618_v45, %v614_v43  ;;  %v623_v55 = vld [vmem:[#allocation14 + $0xa0] sm:$0xff]  ;;  %v622_v56 = vld [vmem:[#allocation14 + $0x98] sm:$0xff]  ;;  %v632_v60 = vld [vmem:[#allocation14 + $0xe8] sm:$0xff] }
  0x7c   :  { %287 = vmatprep.mubr.f32.mxu0 %v5065_v0  ;;  %448 = vmatprep.mubr.f32.mxu1 %v5065_v0  ;;  %v626_v57 = vld [vmem:[#allocation14 + $0xb8] sm:$0xff]  ;;  %v621_v61 = vld [vmem:[#allocation14 + $0x90] sm:$0xff]  ;;  %v116_v62 = vld [vmem:[#allocation6 + $0x10] sm:$0xff]  ;;  %v5239_v1 = vpack.c.bf16 %v623_v55, %v619_v52  ;;  %v5243_v4 = vpack.c.bf16 %v632_v60, %v628_v59 }
  0x7d   :  { %3524 = vmatprep.subr.bf16.mxu0 %v5212_v39  ;;  %3554 = vmatpush1.bf16.msra.mxu1 %v5214_v40  ;;  %v5233_v58 = vpack.c.bf16 %v626_v57, %v622_v56  ;;  %v625_v63 = vld [vmem:[#allocation14 + $0xb0] sm:$0xff]  ;;  %v630_v2 = vld [vmem:[#allocation14 + $0xd8] sm:$0xff]  ;;  %v627_v6 = vld [vmem:[#allocation14 + $0xc0] sm:$0xff] }
  0x7e   :  { %3472 = vmatmul.mubr.msk.f32.gmra.mrb[2].mxu0 %vm168_vm0, %v115_v44  ;;  %3556 = vmatprep.subr.bf16.mxu1 %v5219_v47  ;;  %v634_v3 = vld [vmem:[#allocation14 + $0xf8] sm:$0xff]  ;;  %v5245_v5 = vpack.c.bf16 %v625_v63, %v621_v61  ;;  %v631_v7 = vld [vmem:[#allocation14 + $0xe0] sm:$0xff]  ;;  %v636_v8 = vld [vmem:[#allocation14 + $0x108] sm:$0xff] }
  0x7f   :  { %3488 = vmatmul.mubr.msk.f32.gmra.mrb[2].mxu1 %vm168_vm0, %v115_v44  ;;  %293 = vmatprep.mubr.f32.mxu0 %v5065_v0  ;;  %v5249_v9 = vpack.c.bf16 %v634_v3, %v630_v2  ;;  %v640_v10 = vld [vmem:[#allocation14 + $0x128] sm:$0xff]  ;;  %v629_v11 = vld [vmem:[#allocation14 + $0xd0] sm:$0xff]  ;;  %v638_v14 = vld [vmem:[#allocation14 + $0x118] sm:$0xff]  ;;  %v5255_v15 = vpack.c.bf16 %v631_v7, %v627_v6 }
  0x80   :  { %454 = vmatprep.mubr.f32.mxu1 %v5065_v0  ;;  %3526 = vmatpush1.bf16.msra.mxu0 %v5223_v51  ;;  %v633_v12 = vld [vmem:[#allocation14 + $0xf0] sm:$0xff]  ;;  %v117_v13 = vld [vmem:[#allocation6 + $0x18] sm:$0xff]  ;;  %v642_v16 = vld [vmem:[#allocation14 + $0x138] sm:$0xff]  ;;  %v5259_v17 = vpack.c.bf16 %v640_v10, %v636_v8 }
  0x81   :  { %3528 = vmatprep.subr.bf16.mxu0 %v5227_v53  ;;  %3558 = vmatpush1.bf16.msra.mxu1 %v5229_v54  ;;  %v5261_v18 = vpack.c.bf16 %v633_v12, %v629_v11  ;;  %v635_v19 = vld [vmem:[#allocation14 + $0x100] sm:$0xff]  ;;  %v644_v21 = vld [vmem:[#allocation14 + $0x148] sm:$0xff]  ;;  %v5265_v22 = vpack.c.bf16 %v642_v16, %v638_v14  ;;  %v637_v24 = vld [vmem:[#allocation14 + $0x110] sm:$0xff] }
  0x82   :  { %3473 = vmatmul.mubr.msk.f32.gmra.mrb[4].mxu0 %vm168_vm0, %v116_v62  ;;  %3560 = vmatprep.subr.bf16.mxu1 %v5233_v58  ;;  %v639_v20 = vld [vmem:[#allocation14 + $0x120] sm:$0xff]  ;;  %v648_v23 = vld [vmem:[#allocation14 + $0x168] sm:$0xff]  ;;  %v641_v25 = vld [vmem:[#allocation14 + $0x130] sm:$0xff] }
  0x83   :  { %3489 = vmatmul.mubr.msk.f32.gmra.mrb[4].mxu1 %vm168_vm0, %v116_v62  ;;  %299 = vmatprep.mubr.f32.mxu0 %v5065_v0  ;;  %v118_v26 = vld [vmem:[#allocation6 + $0x20] sm:$0xff]  ;;  %v646_v27 = vld [vmem:[#allocation14 + $0x158] sm:$0xff]  ;;  %v5271_v30 = vpack.c.bf16 %v639_v20, %v635_v19  ;;  %v5275_v31 = vpack.c.bf16 %v648_v23, %v644_v21  ;;  %v5277_v32 = vpack.c.bf16 %v641_v25, %v637_v24  ;;  %v643_v35 = vld [vmem:[#allocation14 + $0x140] sm:$0xff] }
  0x84   :  { %460 = vmatprep.mubr.f32.mxu1 %v5065_v0  ;;  %3530 = vmatpush1.bf16.msra.mxu0 %v5239_v1  ;;  %v650_v28 = vld [vmem:[#allocation14 + $0x178] sm:$0xff]  ;;  %v647_v36 = vld [vmem:[#allocation14 + $0x160] sm:$0xff]  ;;  %v652_v37 = vld [vmem:[#allocation14 + $0x188] sm:$0xff] }
  0x85   :  { %3532 = vmatprep.subr.bf16.mxu0 %v5243_v4  ;;  %3562 = vmatpush1.bf16.msra.mxu1 %v5245_v5  ;;  %v5281_v38 = vpack.c.bf16 %v650_v28, %v646_v27  ;;  %v656_v41 = vld [vmem:[#allocation14 + $0x1a8] sm:$0xff]  ;;  %v645_v42 = vld [vmem:[#allocation14 + $0x150] sm:$0xff]  ;;  %v119_v44 = vld [vmem:[#allocation6 + $0x28] sm:$0xff]  ;;  %v5287_v48 = vpack.c.bf16 %v647_v36, %v643_v35  ;;  %v148_v36 = vlaneseq }
  0x86   :  { %3474 = vmatmul.mubr.msk.f32.gmra.mrb[6].mxu0 %vm168_vm0, %v117_v13  ;;  %3564 = vmatprep.subr.bf16.mxu1 %v5249_v9  ;;  %v649_v43 = vld [vmem:[#allocation14 + $0x170] sm:$0xff]  ;;  %v654_v45 = vld [vmem:[#allocation14 + $0x198] sm:$0xff]  ;;  %v5291_v49 = vpack.c.bf16 %v656_v41, %v652_v37  ;;  %v651_v52 = vld [vmem:[#allocation14 + $0x180] sm:$0xff] }
  0x87   :  { %3490 = vmatmul.mubr.msk.f32.gmra.mrb[6].mxu1 %vm168_vm0, %v117_v13  ;;  %305 = vmatprep.mubr.f32.mxu0 %v5065_v0  ;;  %v658_v46 = vld [vmem:[#allocation14 + $0x1b8] sm:$0xff]  ;;  %v5293_v50 = vpack.c.bf16 %v649_v43, %v645_v42  ;;  %v655_v55 = vld [vmem:[#allocation14 + $0x1a0] sm:$0xff]  ;;  %v660_v56 = vld [vmem:[#allocation14 + $0x1c8] sm:$0xff]  ;;  %v149_v37 = vshrl.u32 %v148_v36, 7 }
  0x88   :  { %466 = vmatprep.mubr.f32.mxu1 %v5065_v0  ;;  %3534 = vmatpush1.bf16.msra.mxu0 %v5255_v15  ;;  %v5297_v57 = vpack.c.bf16 %v658_v46, %v654_v45  ;;  %v664_v59 = vld [vmem:[#allocation14 + $0x1e8] sm:$0xff]  ;;  %v653_v60 = vld [vmem:[#allocation14 + $0x190] sm:$0xff]  ;;  %v120_v62 = vld [vmem:[#allocation6 + $0x30] sm:$0xff]  ;;  %v5303_v3 = vpack.c.bf16 %v655_v55, %v651_v52 }
  0x89   :  { %3536 = vmatprep.subr.bf16.mxu0 %v5259_v17  ;;  %3566 = vmatpush1.bf16.msra.mxu1 %v5261_v18  ;;  %v657_v61 = vld [vmem:[#allocation14 + $0x1b0] sm:$0xff]  ;;  %v662_v63 = vld [vmem:[#allocation14 + $0x1d8] sm:$0xff]  ;;  %v5307_v6 = vpack.c.bf16 %v664_v59, %v660_v56  ;;  %v659_v8 = vld [vmem:[#allocation14 + $0x1c0] sm:$0xff]  ;;  %v150_v41 = vsub.s32 0, %v149_v37  ;;  %v154_v43 = vsub.s32 1, %v149_v37  ;;  %v158_v45 = vsub.s32 2, %v149_v37 }
  0x8a   :  { %3475 = vmatmul.mubr.msk.f32.gmra.mrb[8].mxu0 %vm168_vm0, %v118_v26  ;;  %3568 = vmatprep.subr.bf16.mxu1 %v5265_v22  ;;  %v666_v2 = vld [vmem:[#allocation14 + $0x1f8] sm:$0xff]  ;;  %v5309_v7 = vpack.c.bf16 %v657_v61, %v653_v60  ;;  %v663_v10 = vld [vmem:[#allocation14 + $0x1e0] sm:$0xff]  ;;  %v661_v12 = vld [vmem:[#allocation14 + $0x1d0] sm:$0xff]  ;;  %v162_v61 = vsub.s32 3, %v149_v37 }
  0x8b   :  { %3491 = vmatmul.mubr.msk.f32.gmra.mrb[8].mxu1 %vm168_vm0, %v118_v26  ;;  %311 = vmatprep.mubr.f32.mxu0 %v5065_v0  ;;  %v5313_v11 = vpack.c.bf16 %v666_v2, %v662_v63  ;;  %v665_v13 = vld [vmem:[#allocation14 + $0x1f0] sm:$0xff]  ;;  %v121_v14 = vld [vmem:[#allocation6 + $0x38] sm:$0xff]  ;;  %v5319_v16 = vpack.c.bf16 %v663_v10, %v659_v8  ;;  %v123_v21 = vld [vmem:[#allocation6 + $0x48] sm:$0xff] }
  0x8c   :  { %472 = vmatprep.mubr.f32.mxu1 %v5065_v0  ;;  %3538 = vmatpush1.bf16.msra.mxu0 %v5271_v30  ;;  %v5323_v19 = vpack.c.bf16 %v665_v13, %v661_v12  ;;  %v122_v20 = vld [vmem:[#allocation6 + $0x40] sm:$0xff]  ;;  %v124_v23 = vld [vmem:[#allocation6 + $0x50] sm:$0xff]  ;;  %v125_v24 = vld [vmem:[#allocation6 + $0x58] sm:$0xff] }
  0x8d   :  { %3540 = vmatprep.subr.bf16.mxu0 %v5275_v31  ;;  %3570 = vmatpush1.bf16.msra.mxu1 %v5277_v32  ;;  %v126_v25 = vld [vmem:[#allocation6 + $0x60] sm:$0xff]  ;;  %v127_v26 = vld [vmem:[#allocation6 + $0x68] sm:$0xff]  ;;  %v128_v27 = vld [vmem:[#allocation6 + $0x70] sm:$0xff] }
  0x8e   :  { %3476 = vmatmul.mubr.msk.f32.gmra.mrb[10].mxu0 %vm168_vm0, %v119_v44  ;;  %3572 = vmatprep.subr.bf16.mxu1 %v5281_v38  ;;  %v129_v28 = vld [vmem:[#allocation6 + $0x78] sm:$0xff]  ;;  %v112_v35 = vld [vmem:[#allocation9] sm:$0xff]  ;;  %v146_v42 = vld [vmem:[#allocation15] sm:$0xf] }
  0x8f   :  { %3492 = vmatmul.mubr.msk.f32.gmra.mrb[10].mxu1 %vm168_vm0, %v119_v44  ;;  %317 = vmatprep.mubr.f32.mxu0 %v5065_v0  ;;  %v5400_v44 = vrot.slane %v146_v42, %v150_v41  ;;  %v5402_v46 = vrot.slane %v146_v42, %v154_v43  ;;  %v5405_v56 = vrot.slane %v146_v42, %v158_v45 }
  0x90   :  { %478 = vmatprep.mubr.f32.mxu1 %v5065_v0  ;;  %3542 = vmatpush1.bf16.msra.mxu0 %v5287_v48  ;;  %v5409_v12 = vrot.slane %v146_v42, %v162_v61 }
  0x91   :  { %3544 = vmatprep.subr.bf16.mxu0 %v5291_v49  ;;  %3574 = vmatpush1.bf16.msra.mxu1 %v5293_v50 }
  0x92   :  { %3477 = vmatmul.mubr.msk.f32.gmra.mrb[12].mxu0 %vm168_vm0, %v120_v62  ;;  %3576 = vmatprep.subr.bf16.mxu1 %v5297_v57 }
  0x93   :  { %3493 = vmatmul.mubr.msk.f32.gmra.mrb[12].mxu1 %vm168_vm0, %v120_v62  ;;  %323 = vmatprep.mubr.f32.mxu0 %v5065_v0 }
  0x94   :  { %484 = vmatprep.mubr.f32.mxu1 %v5065_v0  ;;  %3546 = vmatpush1.bf16.msra.mxu0 %v5303_v3 }
  0x95   :  { %3548 = vmatprep.subr.bf16.mxu0 %v5307_v6  ;;  %3578 = vmatpush1.bf16.msra.mxu1 %v5309_v7 }
  0x96   :  { %3478 = vmatmul.mubr.msk.f32.gmra.mrb[14].mxu0 %vm168_vm0, %v121_v14  ;;  %3580 = vmatprep.subr.bf16.mxu1 %v5313_v11 }
  0x97   :  { %3494 = vmatmul.mubr.msk.f32.gmra.mrb[14].mxu1 %vm168_vm0, %v121_v14  ;;  %329 = vmatprep.mubr.f32.mxu0 %v5065_v0 }
  0x98   :  { %490 = vmatprep.mubr.f32.mxu1 %v5065_v0  ;;  %3550 = vmatpush1.bf16.msra.mxu0 %v5319_v16 }
  0x99   :  { %3582 = vmatpush1.bf16.msra.mxu1 %v5323_v19  ;;  %3584 = vmatprep.subr.bf16.mxu0 %v5204_v29 }
  0x9a   :  { %3479 = vmatmul.mubr.msk.f32.gmra.mrb[16].mxu0 %vm168_vm0, %v122_v20  ;;  %3616 = vmatprep.subr.bf16.mxu1 %v5208_v34 }
  0x9b   :  { %3495 = vmatmul.mubr.msk.f32.gmra.mrb[16].mxu1 %vm168_vm0, %v122_v20  ;;  %335 = vmatprep.mubr.f32.mxu0 %v5065_v0 }
  0x9c   :  { %496 = vmatprep.mubr.f32.mxu1 %v5065_v0 }
  0x9e   :  { %3480 = vmatmul.mubr.msk.f32.gmra.mrb[18].mxu0 %vm168_vm0, %v123_v21 }
  0x9f   :  { %3496 = vmatmul.mubr.msk.f32.gmra.mrb[18].mxu1 %vm168_vm0, %v123_v21  ;;  %341 = vmatprep.mubr.f32.mxu0 %v5065_v0 }
  0xa0   :  { %502 = vmatprep.mubr.f32.mxu1 %v5065_v0 }
  0xa2   :  { %3481 = vmatmul.mubr.msk.f32.gmra.mrb[20].mxu0 %vm168_vm0, %v124_v23 }
  0xa3   :  { %3497 = vmatmul.mubr.msk.f32.gmra.mrb[20].mxu1 %vm168_vm0, %v124_v23  ;;  %347 = vmatprep.mubr.f32.mxu0 %v5065_v0 }
  0xa4   :  { %508 = vmatprep.mubr.f32.mxu1 %v5065_v0 }
  0xa6   :  { %3482 = vmatmul.mubr.msk.f32.gmra.mrb[22].mxu0 %vm168_vm0, %v125_v24 }
  0xa7   :  { %3498 = vmatmul.mubr.msk.f32.gmra.mrb[22].mxu1 %vm168_vm0, %v125_v24  ;;  %353 = vmatprep.mubr.f32.mxu0 %v5065_v0 }
  0xa8   :  { %514 = vmatprep.mubr.f32.mxu1 %v5065_v0 }
  0xaa   :  { %3483 = vmatmul.mubr.msk.f32.gmra.mrb[24].mxu0 %vm168_vm0, %v126_v25 }
  0xab   :  { %3499 = vmatmul.mubr.msk.f32.gmra.mrb[24].mxu1 %vm168_vm0, %v126_v25  ;;  %359 = vmatprep.mubr.f32.mxu0 %v5065_v0 }
  0xac   :  { %520 = vmatprep.mubr.f32.mxu1 %v5065_v0 }
  0xae   :  { %3484 = vmatmul.mubr.msk.f32.gmra.mrb[26].mxu0 %vm168_vm0, %v127_v26 }
  0xaf   :  { %3500 = vmatmul.mubr.msk.f32.gmra.mrb[26].mxu1 %vm168_vm0, %v127_v26  ;;  %365 = vmatprep.mubr.f32.mxu0 %v5065_v0  ;;  %v110_v26 = vld [vmem:[#allocation11] sm:$0xff] }
  0xb0   :  { %526 = vmatprep.mubr.f32.mxu1 %v5065_v0 }
  0xb2   :  { %3485 = vmatmul.mubr.msk.f32.gmra.mrb[28].mxu0 %vm168_vm0, %v128_v27 }
  0xb3   :  { %3501 = vmatmul.mubr.msk.f32.gmra.mrb[28].mxu1 %vm168_vm0, %v128_v27  ;;  %371 = vmatprep.mubr.f32.mxu0 %v5065_v0 }
  0xb4   :  { %532 = vmatprep.mubr.f32.mxu1 %v5065_v0 }
  0xb6   :  { %3486 = vmatmul.mubr.msk.f32.gmra.mrb[30].mxu0 %vm168_vm0, %v129_v28 }
  0xb7   :  { %3502 = vmatmul.mubr.msk.f32.gmra.mrb[30].mxu1 %vm168_vm0, %v129_v28  ;;  %736 = vmatprep.mubr.f32.mxu0 %v5065_v0 }
  0xb8   :  { %807 = vmatprep.mubr.f32.mxu1 %v5065_v0 }
  0xba   :  { %737 = vmatmul.mubr.f32.vlgmr.msra.gmra.mrb[0].mxu0 %v112_v35 }
  0xbb   :  { %808 = vmatmul.mubr.f32.vlgmr.msra.gmra.mrb[0].mxu1 %v112_v35  ;;  %3586 = vmatpush1.bf16.msra.mxu0 %v5206_v33 }
  0xbc   :  { %3618 = vmatpush1.bf16.msra.mxu1 %v5214_v40  ;;  %3588 = vmatprep.subr.bf16.mxu0 %v5212_v39 }
  0xbd   :  { %3620 = vmatprep.subr.bf16.mxu1 %v5219_v47  ;;  %907 = vmatprep.mubr.f32.mxu0 %v5065_v0 }
  0xbe   :  { %978 = vmatprep.mubr.f32.mxu1 %v5065_v0 }
  0xbf   :  { %3590 = vmatpush1.bf16.msra.mxu0 %v5223_v51 }
  0xc0   :  { %3622 = vmatpush1.bf16.msra.mxu1 %v5229_v54  ;;  %3592 = vmatprep.subr.bf16.mxu0 %v5227_v53 }
  0xc1   :  { %3624 = vmatprep.subr.bf16.mxu1 %v5233_v58 }
  0xc3   :  { %3594 = vmatpush1.bf16.msra.mxu0 %v5239_v1 }
  0xc4   :  { %3626 = vmatpush1.bf16.msra.mxu1 %v5245_v5  ;;  %3596 = vmatprep.subr.bf16.mxu0 %v5243_v4 }
  0xc5   :  { %3628 = vmatprep.subr.bf16.mxu1 %v5249_v9 }
  0xc7   :  { %3598 = vmatpush1.bf16.msra.mxu0 %v5255_v15 }
  0xc8   :  { %3630 = vmatpush1.bf16.msra.mxu1 %v5261_v18  ;;  %3600 = vmatprep.subr.bf16.mxu0 %v5259_v17 }
  0xc9   :  { %3632 = vmatprep.subr.bf16.mxu1 %v5265_v22 }
  0xcb   :  { %3602 = vmatpush1.bf16.msra.mxu0 %v5271_v30 }
  0xcc   :  { %3634 = vmatpush1.bf16.msra.mxu1 %v5277_v32  ;;  %3604 = vmatprep.subr.bf16.mxu0 %v5275_v31 }
  0xcd   :  { %3636 = vmatprep.subr.bf16.mxu1 %v5281_v38 }
  0xcf   :  { %3606 = vmatpush1.bf16.msra.mxu0 %v5287_v48 }
  0xd0   :  { %3638 = vmatpush1.bf16.msra.mxu1 %v5293_v50  ;;  %3608 = vmatprep.subr.bf16.mxu0 %v5291_v49 }
  0xd1   :  { %3640 = vmatprep.subr.bf16.mxu1 %v5297_v57 }
  0xd3   :  { %3610 = vmatpush1.bf16.msra.mxu0 %v5303_v3 }
  0xd4   :  { %3642 = vmatpush1.bf16.msra.mxu1 %v5309_v7  ;;  %3612 = vmatprep.subr.bf16.mxu0 %v5307_v6 }
  0xd5   :  { %3644 = vmatprep.subr.bf16.mxu1 %v5313_v11 }
  0xd7   :  { %3614 = vmatpush1.bf16.msra.mxu0 %v5319_v16 }
  0xd8   :  { %3646 = vmatpush1.bf16.msra.mxu1 %v5323_v19  ;;  %3648 = vmatprep.subr.bf16.mxu0 %v5204_v29 }
  0xd9   :  { %3680 = vmatprep.subr.bf16.mxu1 %v5208_v34 }
 0x18d   :  { %v738_v52 = vpop.f32.mrb[0].mxu0 }
 0x18e   :  { %v4543_v55 = vadd.f32 %v738_v52, %v5400_v44  ;;  %v809_v59 = vpop.f32.mrb[0].mxu1  ;;  %v740_v60 = vpop.f32.mrb[1].mxu0 }
 0x18f   :  { %v4544_v62 = vadd.f32 %v740_v60, %v5402_v46  ;;  %v811_v63 = vpop.f32.mrb[1].mxu1  ;;  %v4575_v10 = vadd.f32 %v809_v59, %v5405_v56 }
 0x190   :  { %v814_v2 = vmul.f32 0.5, %v4543_v55  ;;  %v4576_v13 = vadd.f32 %v811_v63, %v5409_v12 }
 0x191   :  { %v818_v8 = vmul.f32 0.5, %v4544_v62 }
 0x192   :  { %4685 = vtanh.f32 %v814_v2  ;;  %v823_v14 = vmul.f32 0.5, %v4576_v13 }
 0x193   :  { %4687 = vtanh.f32 %v818_v8 }
 0x194   :  { %4689 = vtanh.f32 %v4575_v10 }
 0x195   :  { %4691 = vtanh.f32 %v823_v14 }
 0x19c   :  { %v4686_v20 = vpop.eup %4685 }
 0x19d   :  { %v4688_v21 = vpop.eup %4687  ;;  %v816_v23 = vmul.f32 0.5, %v4686_v20 }
 0x19e   :  { %v820_v24 = vmul.f32 0.5, %v4688_v21  ;;  %v4690_v27 = vpop.eup %4689 }
 0x19f   :  { %v817_v25 = vadd.f32 0.5, %v816_v23  ;;  %v4692_v41 = vpop.eup %4691 }
 0x1a0   :  { %v821_v28 = vadd.f32 0.5, %v820_v24  ;;  %v825_v42 = vmul.f32 0.5, %v4692_v41 }
 0x1a1   :  { %v829_v35 = vmul.f32 %v4690_v27, %v817_v25 }
 0x1a2   :  { %v828_v36 = vmul.f32 %v821_v28, %v110_v26  ;;  %v826_v43 = vadd.f32 0.5, %v825_v42 }
 0x1a4   :  { %v5412_v37 = vadd.f32 %v829_v35, %v828_v36 }
 0x1a6   :  { %4693 = vtanh.f32 %v5412_v37 }
 0x1b0   :  { %v4694_v45 = vpop.eup %4693 }
 0x1b1   :  { %v832_v52 = vmul.f32 %v4694_v45, %v826_v43 }
 0x1b3   :  { %833 = vst [vmem:[#allocation17] sm:$0xff] %v832_v52  ;;  %908 = vmatmul.mubr.f32.vlgmr.msra.gmra.mrb[2].mxu0 %v832_v52  ;;  %979 = vmatmul.mubr.f32.vlgmr.msra.gmra.mrb[2].mxu1 %v832_v52 }
 0x1b4   :  { %3650 = vmatpush1.bf16.msra.mxu0 %v5206_v33  ;;  %3682 = vmatpush1.bf16.msra.mxu1 %v5214_v40 }
 0x1b5   :  { %3652 = vmatprep.subr.bf16.mxu0 %v5212_v39  ;;  %3684 = vmatprep.subr.bf16.mxu1 %v5219_v47 }
 0x1b6   :  { %1079 = vmatprep.mubr.f32.mxu0 %v5065_v0  ;;  %1150 = vmatprep.mubr.f32.mxu1 %v5065_v0 }
 0x1b8   :  { %3654 = vmatpush1.bf16.msra.mxu0 %v5223_v51  ;;  %3686 = vmatpush1.bf16.msra.mxu1 %v5229_v54 }
 0x1b9   :  { %3656 = vmatprep.subr.bf16.mxu0 %v5227_v53  ;;  %3688 = vmatprep.subr.bf16.mxu1 %v5233_v58 }
 0x1bc   :  { %3658 = vmatpush1.bf16.msra.mxu0 %v5239_v1  ;;  %3690 = vmatpush1.bf16.msra.mxu1 %v5245_v5 }
 0x1bd   :  { %3660 = vmatprep.subr.bf16.mxu0 %v5243_v4  ;;  %3692 = vmatprep.subr.bf16.mxu1 %v5249_v9 }
 0x1c0   :  { %3662 = vmatpush1.bf16.msra.mxu0 %v5255_v15  ;;  %3694 = vmatpush1.bf16.msra.mxu1 %v5261_v18 }
 0x1c1   :  { %3664 = vmatprep.subr.bf16.mxu0 %v5259_v17  ;;  %3696 = vmatprep.subr.bf16.mxu1 %v5265_v22 }
 0x1c4   :  { %3666 = vmatpush1.bf16.msra.mxu0 %v5271_v30  ;;  %3698 = vmatpush1.bf16.msra.mxu1 %v5277_v32 }
 0x1c5   :  { %3668 = vmatprep.subr.bf16.mxu0 %v5275_v31  ;;  %3700 = vmatprep.subr.bf16.mxu1 %v5281_v38 }
 0x1c8   :  { %3670 = vmatpush1.bf16.msra.mxu0 %v5287_v48  ;;  %3702 = vmatpush1.bf16.msra.mxu1 %v5293_v50 }
 0x1c9   :  { %3672 = vmatprep.subr.bf16.mxu0 %v5291_v49  ;;  %3704 = vmatprep.subr.bf16.mxu1 %v5297_v57 }
 0x1cc   :  { %3674 = vmatpush1.bf16.msra.mxu0 %v5303_v3  ;;  %3706 = vmatpush1.bf16.msra.mxu1 %v5309_v7 }
 0x1cd   :  { %3676 = vmatprep.subr.bf16.mxu0 %v5307_v6  ;;  %3708 = vmatprep.subr.bf16.mxu1 %v5313_v11 }
 0x1d0   :  { %3678 = vmatpush1.bf16.msra.mxu0 %v5319_v16  ;;  %3710 = vmatpush1.bf16.msra.mxu1 %v5323_v19 }
 0x1d1   :  { %3712 = vmatprep.subr.bf16.mxu0 %v5204_v29  ;;  %3744 = vmatprep.subr.bf16.mxu1 %v5208_v34 }
 0x286   :  { %v909_v55 = vpop.f32.mrb[2].mxu0  ;;  %v980_v59 = vpop.f32.mrb[2].mxu1 }
 0x287   :  { %v4545_v60 = vadd.f32 %v909_v55, %v5400_v44  ;;  %v911_v61 = vpop.f32.mrb[3].mxu0  ;;  %v982_v62 = vpop.f32.mrb[3].mxu1  ;;  %v4577_v10 = vadd.f32 %v980_v59, %v5405_v56 }
 0x288   :  { %v4546_v63 = vadd.f32 %v911_v61, %v5402_v46  ;;  %v4578_v13 = vadd.f32 %v982_v62, %v5409_v12 }
 0x289   :  { %v985_v2 = vmul.f32 0.5, %v4545_v60 }
 0x28a   :  { %v989_v8 = vmul.f32 0.5, %v4546_v63  ;;  %v994_v14 = vmul.f32 0.5, %v4578_v13 }
 0x28b   :  { %4695 = vtanh.f32 %v985_v2 }
 0x28c   :  { %4697 = vtanh.f32 %v989_v8 }
 0x28d   :  { %4699 = vtanh.f32 %v4577_v10 }
 0x28e   :  { %4701 = vtanh.f32 %v994_v14 }
 0x295   :  { %v4696_v20 = vpop.eup %4695 }
 0x296   :  { %v4698_v21 = vpop.eup %4697  ;;  %v987_v23 = vmul.f32 0.5, %v4696_v20 }
 0x297   :  { %v991_v24 = vmul.f32 0.5, %v4698_v21  ;;  %v4700_v26 = vpop.eup %4699 }
 0x298   :  { %v988_v25 = vadd.f32 0.5, %v987_v23  ;;  %v4702_v41 = vpop.eup %4701 }
 0x299   :  { %v992_v27 = vadd.f32 0.5, %v991_v24  ;;  %v996_v42 = vmul.f32 0.5, %v4702_v41 }
 0x29a   :  { %v1000_v28 = vmul.f32 %v4700_v26, %v988_v25 }
 0x29b   :  { %v999_v35 = vmul.f32 %v992_v27, %v5412_v37  ;;  %v997_v43 = vadd.f32 0.5, %v996_v42 }
 0x29d   :  { %v5454_v36 = vadd.f32 %v1000_v28, %v999_v35 }
 0x29f   :  { %4703 = vtanh.f32 %v5454_v36 }
 0x2a9   :  { %v4704_v45 = vpop.eup %4703 }
 0x2aa   :  { %v1003_v52 = vmul.f32 %v4704_v45, %v997_v43 }
 0x2ac   :  { %1005 = vst [vmem:[#allocation17 + $0x8] sm:$0xff] %v1003_v52  ;;  %1080 = vmatmul.mubr.f32.vlgmr.msra.gmra.mrb[4].mxu0 %v1003_v52  ;;  %1151 = vmatmul.mubr.f32.vlgmr.msra.gmra.mrb[4].mxu1 %v1003_v52 }
 0x2ad   :  { %3714 = vmatpush1.bf16.msra.mxu0 %v5206_v33  ;;  %3746 = vmatpush1.bf16.msra.mxu1 %v5214_v40 }
 0x2ae   :  { %3716 = vmatprep.subr.bf16.mxu0 %v5212_v39  ;;  %3748 = vmatprep.subr.bf16.mxu1 %v5219_v47 }
 0x2af   :  { %1251 = vmatprep.mubr.f32.mxu0 %v5065_v0  ;;  %1322 = vmatprep.mubr.f32.mxu1 %v5065_v0 }
 0x2b1   :  { %3718 = vmatpush1.bf16.msra.mxu0 %v5223_v51  ;;  %3750 = vmatpush1.bf16.msra.mxu1 %v5229_v54 }
 0x2b2   :  { %3720 = vmatprep.subr.bf16.mxu0 %v5227_v53  ;;  %3752 = vmatprep.subr.bf16.mxu1 %v5233_v58 }
 0x2b5   :  { %3722 = vmatpush1.bf16.msra.mxu0 %v5239_v1  ;;  %3754 = vmatpush1.bf16.msra.mxu1 %v5245_v5 }
 0x2b6   :  { %3724 = vmatprep.subr.bf16.mxu0 %v5243_v4  ;;  %3756 = vmatprep.subr.bf16.mxu1 %v5249_v9 }
 0x2b9   :  { %3726 = vmatpush1.bf16.msra.mxu0 %v5255_v15  ;;  %3758 = vmatpush1.bf16.msra.mxu1 %v5261_v18 }
 0x2ba   :  { %3728 = vmatprep.subr.bf16.mxu0 %v5259_v17  ;;  %3760 = vmatprep.subr.bf16.mxu1 %v5265_v22 }
 0x2bd   :  { %3730 = vmatpush1.bf16.msra.mxu0 %v5271_v30  ;;  %3762 = vmatpush1.bf16.msra.mxu1 %v5277_v32 }
 0x2be   :  { %3732 = vmatprep.subr.bf16.mxu0 %v5275_v31  ;;  %3764 = vmatprep.subr.bf16.mxu1 %v5281_v38 }
 0x2c1   :  { %3734 = vmatpush1.bf16.msra.mxu0 %v5287_v48  ;;  %3766 = vmatpush1.bf16.msra.mxu1 %v5293_v50 }
 0x2c2   :  { %3736 = vmatprep.subr.bf16.mxu0 %v5291_v49  ;;  %3768 = vmatprep.subr.bf16.mxu1 %v5297_v57 }
 0x2c5   :  { %3738 = vmatpush1.bf16.msra.mxu0 %v5303_v3  ;;  %3770 = vmatpush1.bf16.msra.mxu1 %v5309_v7 }
 0x2c6   :  { %3740 = vmatprep.subr.bf16.mxu0 %v5307_v6  ;;  %3772 = vmatprep.subr.bf16.mxu1 %v5313_v11 }
 0x2c9   :  { %3742 = vmatpush1.bf16.msra.mxu0 %v5319_v16  ;;  %3774 = vmatpush1.bf16.msra.mxu1 %v5323_v19 }
 0x2ca   :  { %3776 = vmatprep.subr.bf16.mxu0 %v5204_v29  ;;  %3808 = vmatprep.subr.bf16.mxu1 %v5208_v34 }
 0x37f   :  { %v1081_v37 = vpop.f32.mrb[4].mxu0  ;;  %v1152_v55 = vpop.f32.mrb[4].mxu1 }
 0x380   :  { %v4547_v59 = vadd.f32 %v1081_v37, %v5400_v44  ;;  %v1083_v60 = vpop.f32.mrb[5].mxu0  ;;  %v1154_v61 = vpop.f32.mrb[5].mxu1  ;;  %v4579_v8 = vadd.f32 %v1152_v55, %v5405_v56 }
 0x381   :  { %v4548_v62 = vadd.f32 %v1083_v60, %v5402_v46  ;;  %v4580_v10 = vadd.f32 %v1154_v61, %v5409_v12 }
 0x382   :  { %v1157_v63 = vmul.f32 0.5, %v4547_v59 }
 0x383   :  { %v1161_v2 = vmul.f32 0.5, %v4548_v62  ;;  %v1166_v13 = vmul.f32 0.5, %v4580_v10 }
 0x384   :  { %4705 = vtanh.f32 %v1157_v63 }
 0x385   :  { %4707 = vtanh.f32 %v1161_v2 }
 0x386   :  { %4709 = vtanh.f32 %v4579_v8 }
 0x387   :  { %4711 = vtanh.f32 %v1166_v13 }
 0x38e   :  { %v4706_v14 = vpop.eup %4705 }
 0x38f   :  { %v4708_v20 = vpop.eup %4707  ;;  %v1159_v21 = vmul.f32 0.5, %v4706_v14 }
 0x390   :  { %v1163_v23 = vmul.f32 0.5, %v4708_v20  ;;  %v4710_v25 = vpop.eup %4709 }
 0x391   :  { %v1160_v24 = vadd.f32 0.5, %v1159_v21  ;;  %v4712_v41 = vpop.eup %4711 }
 0x392   :  { %v1164_v26 = vadd.f32 0.5, %v1163_v23  ;;  %v1168_v42 = vmul.f32 0.5, %v4712_v41 }
 0x393   :  { %v1172_v27 = vmul.f32 %v4710_v25, %v1160_v24 }
 0x394   :  { %v1171_v28 = vmul.f32 %v1164_v26, %v5454_v36  ;;  %v1169_v43 = vadd.f32 0.5, %v1168_v42 }
 0x396   :  { %v5496_v35 = vadd.f32 %v1172_v27, %v1171_v28 }
 0x398   :  { %4713 = vtanh.f32 %v5496_v35 }
 0x3a2   :  { %v4714_v45 = vpop.eup %4713 }
 0x3a3   :  { %v1175_v52 = vmul.f32 %v4714_v45, %v1169_v43 }
 0x3a5   :  { %1177 = vst [vmem:[#allocation17 + $0x10] sm:$0xff] %v1175_v52  ;;  %1252 = vmatmul.mubr.f32.vlgmr.msra.gmra.mrb[6].mxu0 %v1175_v52  ;;  %1323 = vmatmul.mubr.f32.vlgmr.msra.gmra.mrb[6].mxu1 %v1175_v52 }
 0x3a6   :  { %3778 = vmatpush1.bf16.msra.mxu0 %v5206_v33  ;;  %3810 = vmatpush1.bf16.msra.mxu1 %v5214_v40 }
 0x3a7   :  { %3780 = vmatprep.subr.bf16.mxu0 %v5212_v39  ;;  %3812 = vmatprep.subr.bf16.mxu1 %v5219_v47 }
 0x3a8   :  { %1423 = vmatprep.mubr.f32.mxu0 %v5065_v0  ;;  %1494 = vmatprep.mubr.f32.mxu1 %v5065_v0 }
 0x3aa   :  { %3782 = vmatpush1.bf16.msra.mxu0 %v5223_v51  ;;  %3814 = vmatpush1.bf16.msra.mxu1 %v5229_v54 }
 0x3ab   :  { %3784 = vmatprep.subr.bf16.mxu0 %v5227_v53  ;;  %3816 = vmatprep.subr.bf16.mxu1 %v5233_v58 }
 0x3ae   :  { %3786 = vmatpush1.bf16.msra.mxu0 %v5239_v1  ;;  %3818 = vmatpush1.bf16.msra.mxu1 %v5245_v5 }
 0x3af   :  { %3788 = vmatprep.subr.bf16.mxu0 %v5243_v4  ;;  %3820 = vmatprep.subr.bf16.mxu1 %v5249_v9 }
 0x3b2   :  { %3790 = vmatpush1.bf16.msra.mxu0 %v5255_v15  ;;  %3822 = vmatpush1.bf16.msra.mxu1 %v5261_v18 }
 0x3b3   :  { %3792 = vmatprep.subr.bf16.mxu0 %v5259_v17  ;;  %3824 = vmatprep.subr.bf16.mxu1 %v5265_v22 }
 0x3b6   :  { %3794 = vmatpush1.bf16.msra.mxu0 %v5271_v30  ;;  %3826 = vmatpush1.bf16.msra.mxu1 %v5277_v32 }
 0x3b7   :  { %3796 = vmatprep.subr.bf16.mxu0 %v5275_v31  ;;  %3828 = vmatprep.subr.bf16.mxu1 %v5281_v38 }
 0x3ba   :  { %3798 = vmatpush1.bf16.msra.mxu0 %v5287_v48  ;;  %3830 = vmatpush1.bf16.msra.mxu1 %v5293_v50 }
 0x3bb   :  { %3800 = vmatprep.subr.bf16.mxu0 %v5291_v49  ;;  %3832 = vmatprep.subr.bf16.mxu1 %v5297_v57 }
 0x3be   :  { %3802 = vmatpush1.bf16.msra.mxu0 %v5303_v3  ;;  %3834 = vmatpush1.bf16.msra.mxu1 %v5309_v7 }
 0x3bf   :  { %3804 = vmatprep.subr.bf16.mxu0 %v5307_v6  ;;  %3836 = vmatprep.subr.bf16.mxu1 %v5313_v11 }
 0x3c2   :  { %3806 = vmatpush1.bf16.msra.mxu0 %v5319_v16  ;;  %3838 = vmatpush1.bf16.msra.mxu1 %v5323_v19 }
 0x3c3   :  { %3840 = vmatprep.subr.bf16.mxu0 %v5204_v29  ;;  %3872 = vmatprep.subr.bf16.mxu1 %v5208_v34 }
 0x478   :  { %v1253_v36 = vpop.f32.mrb[6].mxu0  ;;  %v1324_v37 = vpop.f32.mrb[6].mxu1 }
 0x479   :  { %v4549_v55 = vadd.f32 %v1253_v36, %v5400_v44  ;;  %v1255_v59 = vpop.f32.mrb[7].mxu0  ;;  %v1326_v60 = vpop.f32.mrb[7].mxu1  ;;  %v4581_v2 = vadd.f32 %v1324_v37, %v5405_v56 }
 0x47a   :  { %v4550_v61 = vadd.f32 %v1255_v59, %v5402_v46  ;;  %v4582_v8 = vadd.f32 %v1326_v60, %v5409_v12 }
 0x47b   :  { %v1329_v62 = vmul.f32 0.5, %v4549_v55 }
 0x47c   :  { %v1333_v63 = vmul.f32 0.5, %v4550_v61  ;;  %v1338_v10 = vmul.f32 0.5, %v4582_v8 }
 0x47d   :  { %4715 = vtanh.f32 %v1329_v62 }
 0x47e   :  { %4717 = vtanh.f32 %v1333_v63 }
 0x47f   :  { %4719 = vtanh.f32 %v4581_v2 }
 0x480   :  { %4721 = vtanh.f32 %v1338_v10 }
 0x487   :  { %v4716_v13 = vpop.eup %4715 }
 0x488   :  { %v4718_v14 = vpop.eup %4717  ;;  %v1331_v20 = vmul.f32 0.5, %v4716_v13 }
 0x489   :  { %v1335_v21 = vmul.f32 0.5, %v4718_v14  ;;  %v4720_v24 = vpop.eup %4719 }
 0x48a   :  { %v1332_v23 = vadd.f32 0.5, %v1331_v20  ;;  %v4722_v41 = vpop.eup %4721 }
 0x48b   :  { %v1336_v25 = vadd.f32 0.5, %v1335_v21  ;;  %v1340_v42 = vmul.f32 0.5, %v4722_v41 }
 0x48c   :  { %v1344_v26 = vmul.f32 %v4720_v24, %v1332_v23 }
 0x48d   :  { %v1343_v27 = vmul.f32 %v1336_v25, %v5496_v35  ;;  %v1341_v43 = vadd.f32 0.5, %v1340_v42 }
 0x48f   :  { %v5538_v28 = vadd.f32 %v1344_v26, %v1343_v27 }
 0x491   :  { %4723 = vtanh.f32 %v5538_v28 }
 0x49b   :  { %v4724_v45 = vpop.eup %4723 }
 0x49c   :  { %v1347_v52 = vmul.f32 %v4724_v45, %v1341_v43 }
 0x49e   :  { %1349 = vst [vmem:[#allocation17 + $0x18] sm:$0xff] %v1347_v52  ;;  %1424 = vmatmul.mubr.f32.vlgmr.msra.gmra.mrb[8].mxu0 %v1347_v52  ;;  %1495 = vmatmul.mubr.f32.vlgmr.msra.gmra.mrb[8].mxu1 %v1347_v52 }
 0x49f   :  { %3842 = vmatpush1.bf16.msra.mxu0 %v5206_v33  ;;  %3874 = vmatpush1.bf16.msra.mxu1 %v5214_v40 }
 0x4a0   :  { %3844 = vmatprep.subr.bf16.mxu0 %v5212_v39  ;;  %3876 = vmatprep.subr.bf16.mxu1 %v5219_v47 }
 0x4a1   :  { %1595 = vmatprep.mubr.f32.mxu0 %v5065_v0  ;;  %1666 = vmatprep.mubr.f32.mxu1 %v5065_v0 }
 0x4a3   :  { %3846 = vmatpush1.bf16.msra.mxu0 %v5223_v51  ;;  %3878 = vmatpush1.bf16.msra.mxu1 %v5229_v54 }
 0x4a4   :  { %3848 = vmatprep.subr.bf16.mxu0 %v5227_v53  ;;  %3880 = vmatprep.subr.bf16.mxu1 %v5233_v58 }
 0x4a7   :  { %3850 = vmatpush1.bf16.msra.mxu0 %v5239_v1  ;;  %3882 = vmatpush1.bf16.msra.mxu1 %v5245_v5 }
 0x4a8   :  { %3852 = vmatprep.subr.bf16.mxu0 %v5243_v4  ;;  %3884 = vmatprep.subr.bf16.mxu1 %v5249_v9 }
 0x4ab   :  { %3854 = vmatpush1.bf16.msra.mxu0 %v5255_v15  ;;  %3886 = vmatpush1.bf16.msra.mxu1 %v5261_v18 }
 0x4ac   :  { %3856 = vmatprep.subr.bf16.mxu0 %v5259_v17  ;;  %3888 = vmatprep.subr.bf16.mxu1 %v5265_v22 }
 0x4af   :  { %3858 = vmatpush1.bf16.msra.mxu0 %v5271_v30  ;;  %3890 = vmatpush1.bf16.msra.mxu1 %v5277_v32 }
 0x4b0   :  { %3860 = vmatprep.subr.bf16.mxu0 %v5275_v31  ;;  %3892 = vmatprep.subr.bf16.mxu1 %v5281_v38 }
 0x4b3   :  { %3862 = vmatpush1.bf16.msra.mxu0 %v5287_v48  ;;  %3894 = vmatpush1.bf16.msra.mxu1 %v5293_v50 }
 0x4b4   :  { %3864 = vmatprep.subr.bf16.mxu0 %v5291_v49  ;;  %3896 = vmatprep.subr.bf16.mxu1 %v5297_v57 }
 0x4b7   :  { %3866 = vmatpush1.bf16.msra.mxu0 %v5303_v3  ;;  %3898 = vmatpush1.bf16.msra.mxu1 %v5309_v7 }
 0x4b8   :  { %3868 = vmatprep.subr.bf16.mxu0 %v5307_v6  ;;  %3900 = vmatprep.subr.bf16.mxu1 %v5313_v11 }
 0x4bb   :  { %3870 = vmatpush1.bf16.msra.mxu0 %v5319_v16  ;;  %3902 = vmatpush1.bf16.msra.mxu1 %v5323_v19 }
 0x4bc   :  { %3904 = vmatprep.subr.bf16.mxu0 %v5204_v29  ;;  %3936 = vmatprep.subr.bf16.mxu1 %v5208_v34 }
 0x571   :  { %v1425_v35 = vpop.f32.mrb[8].mxu0  ;;  %v1496_v36 = vpop.f32.mrb[8].mxu1 }
 0x572   :  { %v4551_v37 = vadd.f32 %v1425_v35, %v5400_v44  ;;  %v1427_v55 = vpop.f32.mrb[9].mxu0  ;;  %v1498_v59 = vpop.f32.mrb[9].mxu1  ;;  %v4583_v63 = vadd.f32 %v1496_v36, %v5405_v56 }
 0x573   :  { %v4552_v60 = vadd.f32 %v1427_v55, %v5402_v46  ;;  %v4584_v2 = vadd.f32 %v1498_v59, %v5409_v12 }
 0x574   :  { %v1501_v61 = vmul.f32 0.5, %v4551_v37 }
 0x575   :  { %v1505_v62 = vmul.f32 0.5, %v4552_v60  ;;  %v1510_v8 = vmul.f32 0.5, %v4584_v2 }
 0x576   :  { %4725 = vtanh.f32 %v1501_v61 }
 0x577   :  { %4727 = vtanh.f32 %v1505_v62 }
 0x578   :  { %4729 = vtanh.f32 %v4583_v63 }
 0x579   :  { %4731 = vtanh.f32 %v1510_v8 }
 0x580   :  { %v4726_v10 = vpop.eup %4725 }
 0x581   :  { %v4728_v13 = vpop.eup %4727  ;;  %v1503_v14 = vmul.f32 0.5, %v4726_v10 }
 0x582   :  { %v1507_v20 = vmul.f32 0.5, %v4728_v13  ;;  %v4730_v23 = vpop.eup %4729 }
 0x583   :  { %v1504_v21 = vadd.f32 0.5, %v1503_v14  ;;  %v4732_v41 = vpop.eup %4731 }
 0x584   :  { %v1508_v24 = vadd.f32 0.5, %v1507_v20  ;;  %v1512_v42 = vmul.f32 0.5, %v4732_v41 }
 0x585   :  { %v1516_v25 = vmul.f32 %v4730_v23, %v1504_v21 }
 0x586   :  { %v1515_v26 = vmul.f32 %v1508_v24, %v5538_v28  ;;  %v1513_v43 = vadd.f32 0.5, %v1512_v42 }
 0x588   :  { %v5580_v27 = vadd.f32 %v1516_v25, %v1515_v26 }
 0x58a   :  { %4733 = vtanh.f32 %v5580_v27 }
 0x594   :  { %v4734_v45 = vpop.eup %4733 }
 0x595   :  { %v1519_v52 = vmul.f32 %v4734_v45, %v1513_v43 }
 0x597   :  { %1521 = vst [vmem:[#allocation17 + $0x20] sm:$0xff] %v1519_v52  ;;  %1596 = vmatmul.mubr.f32.vlgmr.msra.gmra.mrb[10].mxu0 %v1519_v52  ;;  %1667 = vmatmul.mubr.f32.vlgmr.msra.gmra.mrb[10].mxu1 %v1519_v52 }
 0x598   :  { %3906 = vmatpush1.bf16.msra.mxu0 %v5206_v33  ;;  %3938 = vmatpush1.bf16.msra.mxu1 %v5214_v40 }
 0x599   :  { %3908 = vmatprep.subr.bf16.mxu0 %v5212_v39  ;;  %3940 = vmatprep.subr.bf16.mxu1 %v5219_v47 }
 0x59a   :  { %1767 = vmatprep.mubr.f32.mxu0 %v5065_v0  ;;  %1838 = vmatprep.mubr.f32.mxu1 %v5065_v0 }
 0x59c   :  { %3910 = vmatpush1.bf16.msra.mxu0 %v5223_v51  ;;  %3942 = vmatpush1.bf16.msra.mxu1 %v5229_v54 }
 0x59d   :  { %3912 = vmatprep.subr.bf16.mxu0 %v5227_v53  ;;  %3944 = vmatprep.subr.bf16.mxu1 %v5233_v58 }
 0x5a0   :  { %3914 = vmatpush1.bf16.msra.mxu0 %v5239_v1  ;;  %3946 = vmatpush1.bf16.msra.mxu1 %v5245_v5 }
 0x5a1   :  { %3916 = vmatprep.subr.bf16.mxu0 %v5243_v4  ;;  %3948 = vmatprep.subr.bf16.mxu1 %v5249_v9 }
 0x5a4   :  { %3918 = vmatpush1.bf16.msra.mxu0 %v5255_v15  ;;  %3950 = vmatpush1.bf16.msra.mxu1 %v5261_v18 }
 0x5a5   :  { %3920 = vmatprep.subr.bf16.mxu0 %v5259_v17  ;;  %3952 = vmatprep.subr.bf16.mxu1 %v5265_v22 }
 0x5a8   :  { %3922 = vmatpush1.bf16.msra.mxu0 %v5271_v30  ;;  %3954 = vmatpush1.bf16.msra.mxu1 %v5277_v32 }
 0x5a9   :  { %3924 = vmatprep.subr.bf16.mxu0 %v5275_v31  ;;  %3956 = vmatprep.subr.bf16.mxu1 %v5281_v38 }
 0x5ac   :  { %3926 = vmatpush1.bf16.msra.mxu0 %v5287_v48  ;;  %3958 = vmatpush1.bf16.msra.mxu1 %v5293_v50 }
 0x5ad   :  { %3928 = vmatprep.subr.bf16.mxu0 %v5291_v49  ;;  %3960 = vmatprep.subr.bf16.mxu1 %v5297_v57 }
 0x5b0   :  { %3930 = vmatpush1.bf16.msra.mxu0 %v5303_v3  ;;  %3962 = vmatpush1.bf16.msra.mxu1 %v5309_v7 }
 0x5b1   :  { %3932 = vmatprep.subr.bf16.mxu0 %v5307_v6  ;;  %3964 = vmatprep.subr.bf16.mxu1 %v5313_v11 }
 0x5b4   :  { %3934 = vmatpush1.bf16.msra.mxu0 %v5319_v16  ;;  %3966 = vmatpush1.bf16.msra.mxu1 %v5323_v19 }
 0x5b5   :  { %3968 = vmatprep.subr.bf16.mxu0 %v5204_v29  ;;  %4000 = vmatprep.subr.bf16.mxu1 %v5208_v34 }
 0x66a   :  { %v1597_v28 = vpop.f32.mrb[10].mxu0  ;;  %v1668_v35 = vpop.f32.mrb[10].mxu1 }
 0x66b   :  { %v4553_v36 = vadd.f32 %v1597_v28, %v5400_v44  ;;  %v1599_v37 = vpop.f32.mrb[11].mxu0  ;;  %v1670_v55 = vpop.f32.mrb[11].mxu1  ;;  %v4585_v62 = vadd.f32 %v1668_v35, %v5405_v56 }
 0x66c   :  { %v4554_v59 = vadd.f32 %v1599_v37, %v5402_v46  ;;  %v4586_v63 = vadd.f32 %v1670_v55, %v5409_v12 }
 0x66d   :  { %v1673_v60 = vmul.f32 0.5, %v4553_v36 }
 0x66e   :  { %v1677_v61 = vmul.f32 0.5, %v4554_v59  ;;  %v1682_v2 = vmul.f32 0.5, %v4586_v63 }
 0x66f   :  { %4735 = vtanh.f32 %v1673_v60 }
 0x670   :  { %4737 = vtanh.f32 %v1677_v61 }
 0x671   :  { %4739 = vtanh.f32 %v4585_v62 }
 0x672   :  { %4741 = vtanh.f32 %v1682_v2 }
 0x679   :  { %v4736_v8 = vpop.eup %4735 }
 0x67a   :  { %v4738_v10 = vpop.eup %4737  ;;  %v1675_v13 = vmul.f32 0.5, %v4736_v8 }
 0x67b   :  { %v1679_v14 = vmul.f32 0.5, %v4738_v10  ;;  %v4740_v21 = vpop.eup %4739 }
 0x67c   :  { %v1676_v20 = vadd.f32 0.5, %v1675_v13  ;;  %v4742_v41 = vpop.eup %4741 }
 0x67d   :  { %v1680_v23 = vadd.f32 0.5, %v1679_v14  ;;  %v1684_v42 = vmul.f32 0.5, %v4742_v41 }
 0x67e   :  { %v1688_v24 = vmul.f32 %v4740_v21, %v1676_v20 }
 0x67f   :  { %v1687_v25 = vmul.f32 %v1680_v23, %v5580_v27  ;;  %v1685_v43 = vadd.f32 0.5, %v1684_v42 }
 0x681   :  { %v5622_v26 = vadd.f32 %v1688_v24, %v1687_v25 }
 0x683   :  { %4743 = vtanh.f32 %v5622_v26 }
 0x68d   :  { %v4744_v45 = vpop.eup %4743 }
 0x68e   :  { %v1691_v52 = vmul.f32 %v4744_v45, %v1685_v43 }
 0x690   :  { %1693 = vst [vmem:[#allocation17 + $0x28] sm:$0xff] %v1691_v52  ;;  %1768 = vmatmul.mubr.f32.vlgmr.msra.gmra.mrb[12].mxu0 %v1691_v52  ;;  %1839 = vmatmul.mubr.f32.vlgmr.msra.gmra.mrb[12].mxu1 %v1691_v52 }
 0x691   :  { %3970 = vmatpush1.bf16.msra.mxu0 %v5206_v33  ;;  %4002 = vmatpush1.bf16.msra.mxu1 %v5214_v40 }
 0x692   :  { %3972 = vmatprep.subr.bf16.mxu0 %v5212_v39  ;;  %4004 = vmatprep.subr.bf16.mxu1 %v5219_v47 }
 0x693   :  { %1939 = vmatprep.mubr.f32.mxu0 %v5065_v0  ;;  %2010 = vmatprep.mubr.f32.mxu1 %v5065_v0 }
 0x695   :  { %3974 = vmatpush1.bf16.msra.mxu0 %v5223_v51  ;;  %4006 = vmatpush1.bf16.msra.mxu1 %v5229_v54 }
 0x696   :  { %3976 = vmatprep.subr.bf16.mxu0 %v5227_v53  ;;  %4008 = vmatprep.subr.bf16.mxu1 %v5233_v58 }
 0x699   :  { %3978 = vmatpush1.bf16.msra.mxu0 %v5239_v1  ;;  %4010 = vmatpush1.bf16.msra.mxu1 %v5245_v5 }
 0x69a   :  { %3980 = vmatprep.subr.bf16.mxu0 %v5243_v4  ;;  %4012 = vmatprep.subr.bf16.mxu1 %v5249_v9 }
 0x69d   :  { %3982 = vmatpush1.bf16.msra.mxu0 %v5255_v15  ;;  %4014 = vmatpush1.bf16.msra.mxu1 %v5261_v18 }
 0x69e   :  { %3984 = vmatprep.subr.bf16.mxu0 %v5259_v17  ;;  %4016 = vmatprep.subr.bf16.mxu1 %v5265_v22 }
 0x6a1   :  { %3986 = vmatpush1.bf16.msra.mxu0 %v5271_v30  ;;  %4018 = vmatpush1.bf16.msra.mxu1 %v5277_v32 }
 0x6a2   :  { %3988 = vmatprep.subr.bf16.mxu0 %v5275_v31  ;;  %4020 = vmatprep.subr.bf16.mxu1 %v5281_v38 }
 0x6a5   :  { %3990 = vmatpush1.bf16.msra.mxu0 %v5287_v48  ;;  %4022 = vmatpush1.bf16.msra.mxu1 %v5293_v50 }
 0x6a6   :  { %3992 = vmatprep.subr.bf16.mxu0 %v5291_v49  ;;  %4024 = vmatprep.subr.bf16.mxu1 %v5297_v57 }
 0x6a9   :  { %3994 = vmatpush1.bf16.msra.mxu0 %v5303_v3  ;;  %4026 = vmatpush1.bf16.msra.mxu1 %v5309_v7 }
 0x6aa   :  { %3996 = vmatprep.subr.bf16.mxu0 %v5307_v6  ;;  %4028 = vmatprep.subr.bf16.mxu1 %v5313_v11 }
 0x6ad   :  { %3998 = vmatpush1.bf16.msra.mxu0 %v5319_v16  ;;  %4030 = vmatpush1.bf16.msra.mxu1 %v5323_v19 }
 0x6ae   :  { %4032 = vmatprep.subr.bf16.mxu0 %v5204_v29  ;;  %4064 = vmatprep.subr.bf16.mxu1 %v5208_v34 }
 0x763   :  { %v1769_v27 = vpop.f32.mrb[12].mxu0  ;;  %v1840_v28 = vpop.f32.mrb[12].mxu1 }
 0x764   :  { %v4555_v35 = vadd.f32 %v1769_v27, %v5400_v44  ;;  %v1771_v36 = vpop.f32.mrb[13].mxu0  ;;  %v1842_v37 = vpop.f32.mrb[13].mxu1  ;;  %v4587_v61 = vadd.f32 %v1840_v28, %v5405_v56 }
 0x765   :  { %v4556_v55 = vadd.f32 %v1771_v36, %v5402_v46  ;;  %v4588_v62 = vadd.f32 %v1842_v37, %v5409_v12 }
 0x766   :  { %v1845_v59 = vmul.f32 0.5, %v4555_v35 }
 0x767   :  { %v1849_v60 = vmul.f32 0.5, %v4556_v55  ;;  %v1854_v63 = vmul.f32 0.5, %v4588_v62 }
 0x768   :  { %4745 = vtanh.f32 %v1845_v59 }
 0x769   :  { %4747 = vtanh.f32 %v1849_v60 }
 0x76a   :  { %4749 = vtanh.f32 %v4587_v61 }
 0x76b   :  { %4751 = vtanh.f32 %v1854_v63 }
 0x772   :  { %v4746_v2 = vpop.eup %4745 }
 0x773   :  { %v4748_v8 = vpop.eup %4747  ;;  %v1847_v10 = vmul.f32 0.5, %v4746_v2 }
 0x774   :  { %v1851_v13 = vmul.f32 0.5, %v4748_v8  ;;  %v4750_v20 = vpop.eup %4749 }
 0x775   :  { %v1848_v14 = vadd.f32 0.5, %v1847_v10  ;;  %v4752_v41 = vpop.eup %4751 }
 0x776   :  { %v1852_v21 = vadd.f32 0.5, %v1851_v13  ;;  %v1856_v42 = vmul.f32 0.5, %v4752_v41 }
 0x777   :  { %v1860_v23 = vmul.f32 %v4750_v20, %v1848_v14 }
 0x778   :  { %v1859_v24 = vmul.f32 %v1852_v21, %v5622_v26  ;;  %v1857_v43 = vadd.f32 0.5, %v1856_v42 }
 0x77a   :  { %v5664_v25 = vadd.f32 %v1860_v23, %v1859_v24 }
 0x77c   :  { %4753 = vtanh.f32 %v5664_v25 }
 0x786   :  { %v4754_v45 = vpop.eup %4753 }
 0x787   :  { %v1863_v52 = vmul.f32 %v4754_v45, %v1857_v43 }
 0x789   :  { %1865 = vst [vmem:[#allocation17 + $0x30] sm:$0xff] %v1863_v52  ;;  %1940 = vmatmul.mubr.f32.vlgmr.msra.gmra.mrb[14].mxu0 %v1863_v52  ;;  %2011 = vmatmul.mubr.f32.vlgmr.msra.gmra.mrb[14].mxu1 %v1863_v52 }
 0x78a   :  { %4034 = vmatpush1.bf16.msra.mxu0 %v5206_v33  ;;  %4066 = vmatpush1.bf16.msra.mxu1 %v5214_v40 }
 0x78b   :  { %4036 = vmatprep.subr.bf16.mxu0 %v5212_v39  ;;  %4068 = vmatprep.subr.bf16.mxu1 %v5219_v47 }
 0x78c   :  { %2111 = vmatprep.mubr.f32.mxu0 %v5065_v0  ;;  %2182 = vmatprep.mubr.f32.mxu1 %v5065_v0 }
 0x78e   :  { %4038 = vmatpush1.bf16.msra.mxu0 %v5223_v51  ;;  %4070 = vmatpush1.bf16.msra.mxu1 %v5229_v54 }
 0x78f   :  { %4040 = vmatprep.subr.bf16.mxu0 %v5227_v53  ;;  %4072 = vmatprep.subr.bf16.mxu1 %v5233_v58 }
 0x792   :  { %4042 = vmatpush1.bf16.msra.mxu0 %v5239_v1  ;;  %4074 = vmatpush1.bf16.msra.mxu1 %v5245_v5 }
 0x793   :  { %4044 = vmatprep.subr.bf16.mxu0 %v5243_v4  ;;  %4076 = vmatprep.subr.bf16.mxu1 %v5249_v9 }
 0x796   :  { %4046 = vmatpush1.bf16.msra.mxu0 %v5255_v15  ;;  %4078 = vmatpush1.bf16.msra.mxu1 %v5261_v18 }
 0x797   :  { %4048 = vmatprep.subr.bf16.mxu0 %v5259_v17  ;;  %4080 = vmatprep.subr.bf16.mxu1 %v5265_v22 }
 0x79a   :  { %4050 = vmatpush1.bf16.msra.mxu0 %v5271_v30  ;;  %4082 = vmatpush1.bf16.msra.mxu1 %v5277_v32 }
 0x79b   :  { %4052 = vmatprep.subr.bf16.mxu0 %v5275_v31  ;;  %4084 = vmatprep.subr.bf16.mxu1 %v5281_v38 }
 0x79e   :  { %4054 = vmatpush1.bf16.msra.mxu0 %v5287_v48  ;;  %4086 = vmatpush1.bf16.msra.mxu1 %v5293_v50 }
 0x79f   :  { %4056 = vmatprep.subr.bf16.mxu0 %v5291_v49  ;;  %4088 = vmatprep.subr.bf16.mxu1 %v5297_v57 }
 0x7a2   :  { %4058 = vmatpush1.bf16.msra.mxu0 %v5303_v3  ;;  %4090 = vmatpush1.bf16.msra.mxu1 %v5309_v7 }
 0x7a3   :  { %4060 = vmatprep.subr.bf16.mxu0 %v5307_v6  ;;  %4092 = vmatprep.subr.bf16.mxu1 %v5313_v11 }
 0x7a6   :  { %4062 = vmatpush1.bf16.msra.mxu0 %v5319_v16  ;;  %4094 = vmatpush1.bf16.msra.mxu1 %v5323_v19 }
 0x7a7   :  { %4096 = vmatprep.subr.bf16.mxu0 %v5204_v29  ;;  %4128 = vmatprep.subr.bf16.mxu1 %v5208_v34 }
 0x85c   :  { %v1941_v26 = vpop.f32.mrb[14].mxu0  ;;  %v2012_v27 = vpop.f32.mrb[14].mxu1 }
 0x85d   :  { %v4557_v28 = vadd.f32 %v1941_v26, %v5400_v44  ;;  %v1943_v35 = vpop.f32.mrb[15].mxu0  ;;  %v2014_v36 = vpop.f32.mrb[15].mxu1  ;;  %v4589_v60 = vadd.f32 %v2012_v27, %v5405_v56 }
 0x85e   :  { %v4558_v37 = vadd.f32 %v1943_v35, %v5402_v46  ;;  %v4590_v61 = vadd.f32 %v2014_v36, %v5409_v12 }
 0x85f   :  { %v2017_v55 = vmul.f32 0.5, %v4557_v28 }
 0x860   :  { %v2021_v59 = vmul.f32 0.5, %v4558_v37  ;;  %v2026_v62 = vmul.f32 0.5, %v4590_v61 }
 0x861   :  { %4755 = vtanh.f32 %v2017_v55 }
 0x862   :  { %4757 = vtanh.f32 %v2021_v59 }
 0x863   :  { %4759 = vtanh.f32 %v4589_v60 }
 0x864   :  { %4761 = vtanh.f32 %v2026_v62 }
 0x86b   :  { %v4756_v63 = vpop.eup %4755 }
 0x86c   :  { %v4758_v2 = vpop.eup %4757  ;;  %v2019_v8 = vmul.f32 0.5, %v4756_v63 }
 0x86d   :  { %v2023_v10 = vmul.f32 0.5, %v4758_v2  ;;  %v4760_v14 = vpop.eup %4759 }
 0x86e   :  { %v2020_v13 = vadd.f32 0.5, %v2019_v8  ;;  %v4762_v41 = vpop.eup %4761 }
 0x86f   :  { %v2024_v20 = vadd.f32 0.5, %v2023_v10  ;;  %v2028_v42 = vmul.f32 0.5, %v4762_v41 }
 0x870   :  { %v2032_v21 = vmul.f32 %v4760_v14, %v2020_v13 }
 0x871   :  { %v2031_v23 = vmul.f32 %v2024_v20, %v5664_v25  ;;  %v2029_v43 = vadd.f32 0.5, %v2028_v42 }
 0x873   :  { %v5706_v24 = vadd.f32 %v2032_v21, %v2031_v23 }
 0x875   :  { %4763 = vtanh.f32 %v5706_v24 }
 0x87f   :  { %v4764_v45 = vpop.eup %4763 }
 0x880   :  { %v2035_v52 = vmul.f32 %v4764_v45, %v2029_v43 }
 0x882   :  { %2037 = vst [vmem:[#allocation17 + $0x38] sm:$0xff] %v2035_v52  ;;  %2112 = vmatmul.mubr.f32.vlgmr.msra.gmra.mrb[16].mxu0 %v2035_v52  ;;  %2183 = vmatmul.mubr.f32.vlgmr.msra.gmra.mrb[16].mxu1 %v2035_v52 }
 0x883   :  { %4098 = vmatpush1.bf16.msra.mxu0 %v5206_v33  ;;  %4130 = vmatpush1.bf16.msra.mxu1 %v5214_v40 }
 0x884   :  { %4100 = vmatprep.subr.bf16.mxu0 %v5212_v39  ;;  %4132 = vmatprep.subr.bf16.mxu1 %v5219_v47 }
 0x885   :  { %2283 = vmatprep.mubr.f32.mxu0 %v5065_v0  ;;  %2354 = vmatprep.mubr.f32.mxu1 %v5065_v0 }
 0x887   :  { %4102 = vmatpush1.bf16.msra.mxu0 %v5223_v51  ;;  %4134 = vmatpush1.bf16.msra.mxu1 %v5229_v54 }
 0x888   :  { %4104 = vmatprep.subr.bf16.mxu0 %v5227_v53  ;;  %4136 = vmatprep.subr.bf16.mxu1 %v5233_v58 }
 0x88b   :  { %4106 = vmatpush1.bf16.msra.mxu0 %v5239_v1  ;;  %4138 = vmatpush1.bf16.msra.mxu1 %v5245_v5 }
 0x88c   :  { %4108 = vmatprep.subr.bf16.mxu0 %v5243_v4  ;;  %4140 = vmatprep.subr.bf16.mxu1 %v5249_v9 }
 0x88f   :  { %4110 = vmatpush1.bf16.msra.mxu0 %v5255_v15  ;;  %4142 = vmatpush1.bf16.msra.mxu1 %v5261_v18 }
 0x890   :  { %4112 = vmatprep.subr.bf16.mxu0 %v5259_v17  ;;  %4144 = vmatprep.subr.bf16.mxu1 %v5265_v22 }
 0x893   :  { %4114 = vmatpush1.bf16.msra.mxu0 %v5271_v30  ;;  %4146 = vmatpush1.bf16.msra.mxu1 %v5277_v32 }
 0x894   :  { %4116 = vmatprep.subr.bf16.mxu0 %v5275_v31  ;;  %4148 = vmatprep.subr.bf16.mxu1 %v5281_v38 }
 0x897   :  { %4118 = vmatpush1.bf16.msra.mxu0 %v5287_v48  ;;  %4150 = vmatpush1.bf16.msra.mxu1 %v5293_v50 }
 0x898   :  { %4120 = vmatprep.subr.bf16.mxu0 %v5291_v49  ;;  %4152 = vmatprep.subr.bf16.mxu1 %v5297_v57 }
 0x89b   :  { %4122 = vmatpush1.bf16.msra.mxu0 %v5303_v3  ;;  %4154 = vmatpush1.bf16.msra.mxu1 %v5309_v7 }
 0x89c   :  { %4124 = vmatprep.subr.bf16.mxu0 %v5307_v6  ;;  %4156 = vmatprep.subr.bf16.mxu1 %v5313_v11 }
 0x89f   :  { %4126 = vmatpush1.bf16.msra.mxu0 %v5319_v16  ;;  %4158 = vmatpush1.bf16.msra.mxu1 %v5323_v19 }
 0x8a0   :  { %4160 = vmatprep.subr.bf16.mxu0 %v5204_v29  ;;  %4192 = vmatprep.subr.bf16.mxu1 %v5208_v34 }
 0x955   :  { %v2113_v25 = vpop.f32.mrb[16].mxu0  ;;  %v2184_v26 = vpop.f32.mrb[16].mxu1 }
 0x956   :  { %v4559_v27 = vadd.f32 %v2113_v25, %v5400_v44  ;;  %v2115_v28 = vpop.f32.mrb[17].mxu0  ;;  %v2186_v35 = vpop.f32.mrb[17].mxu1  ;;  %v4591_v59 = vadd.f32 %v2184_v26, %v5405_v56 }
 0x957   :  { %v4560_v36 = vadd.f32 %v2115_v28, %v5402_v46  ;;  %v4592_v60 = vadd.f32 %v2186_v35, %v5409_v12 }
 0x958   :  { %v2189_v37 = vmul.f32 0.5, %v4559_v27 }
 0x959   :  { %v2193_v55 = vmul.f32 0.5, %v4560_v36  ;;  %v2198_v61 = vmul.f32 0.5, %v4592_v60 }
 0x95a   :  { %4765 = vtanh.f32 %v2189_v37 }
 0x95b   :  { %4767 = vtanh.f32 %v2193_v55 }
 0x95c   :  { %4769 = vtanh.f32 %v4591_v59 }
 0x95d   :  { %4771 = vtanh.f32 %v2198_v61 }
 0x964   :  { %v4766_v62 = vpop.eup %4765 }
 0x965   :  { %v4768_v63 = vpop.eup %4767  ;;  %v2191_v2 = vmul.f32 0.5, %v4766_v62 }
 0x966   :  { %v2195_v8 = vmul.f32 0.5, %v4768_v63  ;;  %v4770_v13 = vpop.eup %4769 }
 0x967   :  { %v2192_v10 = vadd.f32 0.5, %v2191_v2  ;;  %v4772_v41 = vpop.eup %4771 }
 0x968   :  { %v2196_v14 = vadd.f32 0.5, %v2195_v8  ;;  %v2200_v42 = vmul.f32 0.5, %v4772_v41 }
 0x969   :  { %v2204_v20 = vmul.f32 %v4770_v13, %v2192_v10 }
 0x96a   :  { %v2203_v21 = vmul.f32 %v2196_v14, %v5706_v24  ;;  %v2201_v43 = vadd.f32 0.5, %v2200_v42 }
 0x96c   :  { %v5748_v23 = vadd.f32 %v2204_v20, %v2203_v21 }
 0x96e   :  { %4773 = vtanh.f32 %v5748_v23 }
 0x978   :  { %v4774_v45 = vpop.eup %4773 }
 0x979   :  { %v2207_v52 = vmul.f32 %v4774_v45, %v2201_v43 }
 0x97b   :  { %2209 = vst [vmem:[#allocation17 + $0x40] sm:$0xff] %v2207_v52  ;;  %2284 = vmatmul.mubr.f32.vlgmr.msra.gmra.mrb[18].mxu0 %v2207_v52  ;;  %2355 = vmatmul.mubr.f32.vlgmr.msra.gmra.mrb[18].mxu1 %v2207_v52 }
 0x97c   :  { %4162 = vmatpush1.bf16.msra.mxu0 %v5206_v33  ;;  %4194 = vmatpush1.bf16.msra.mxu1 %v5214_v40 }
 0x97d   :  { %4164 = vmatprep.subr.bf16.mxu0 %v5212_v39  ;;  %4196 = vmatprep.subr.bf16.mxu1 %v5219_v47 }
 0x97e   :  { %2455 = vmatprep.mubr.f32.mxu0 %v5065_v0  ;;  %2526 = vmatprep.mubr.f32.mxu1 %v5065_v0 }
 0x980   :  { %4166 = vmatpush1.bf16.msra.mxu0 %v5223_v51  ;;  %4198 = vmatpush1.bf16.msra.mxu1 %v5229_v54 }
 0x981   :  { %4168 = vmatprep.subr.bf16.mxu0 %v5227_v53  ;;  %4200 = vmatprep.subr.bf16.mxu1 %v5233_v58 }
 0x984   :  { %4170 = vmatpush1.bf16.msra.mxu0 %v5239_v1  ;;  %4202 = vmatpush1.bf16.msra.mxu1 %v5245_v5 }
 0x985   :  { %4172 = vmatprep.subr.bf16.mxu0 %v5243_v4  ;;  %4204 = vmatprep.subr.bf16.mxu1 %v5249_v9 }
 0x988   :  { %4174 = vmatpush1.bf16.msra.mxu0 %v5255_v15  ;;  %4206 = vmatpush1.bf16.msra.mxu1 %v5261_v18 }
 0x989   :  { %4176 = vmatprep.subr.bf16.mxu0 %v5259_v17  ;;  %4208 = vmatprep.subr.bf16.mxu1 %v5265_v22 }
 0x98c   :  { %4178 = vmatpush1.bf16.msra.mxu0 %v5271_v30  ;;  %4210 = vmatpush1.bf16.msra.mxu1 %v5277_v32 }
 0x98d   :  { %4180 = vmatprep.subr.bf16.mxu0 %v5275_v31  ;;  %4212 = vmatprep.subr.bf16.mxu1 %v5281_v38 }
 0x990   :  { %4182 = vmatpush1.bf16.msra.mxu0 %v5287_v48  ;;  %4214 = vmatpush1.bf16.msra.mxu1 %v5293_v50 }
 0x991   :  { %4184 = vmatprep.subr.bf16.mxu0 %v5291_v49  ;;  %4216 = vmatprep.subr.bf16.mxu1 %v5297_v57 }
 0x994   :  { %4186 = vmatpush1.bf16.msra.mxu0 %v5303_v3  ;;  %4218 = vmatpush1.bf16.msra.mxu1 %v5309_v7 }
 0x995   :  { %4188 = vmatprep.subr.bf16.mxu0 %v5307_v6  ;;  %4220 = vmatprep.subr.bf16.mxu1 %v5313_v11 }
 0x998   :  { %4190 = vmatpush1.bf16.msra.mxu0 %v5319_v16  ;;  %4222 = vmatpush1.bf16.msra.mxu1 %v5323_v19 }
 0x999   :  { %4224 = vmatprep.subr.bf16.mxu0 %v5204_v29  ;;  %4256 = vmatprep.subr.bf16.mxu1 %v5208_v34 }
 0xa4e   :  { %v2285_v24 = vpop.f32.mrb[18].mxu0  ;;  %v2356_v25 = vpop.f32.mrb[18].mxu1 }
 0xa4f   :  { %v4561_v26 = vadd.f32 %v2285_v24, %v5400_v44  ;;  %v2287_v27 = vpop.f32.mrb[19].mxu0  ;;  %v2358_v28 = vpop.f32.mrb[19].mxu1  ;;  %v4593_v55 = vadd.f32 %v2356_v25, %v5405_v56 }
 0xa50   :  { %v4562_v35 = vadd.f32 %v2287_v27, %v5402_v46  ;;  %v4594_v59 = vadd.f32 %v2358_v28, %v5409_v12 }
 0xa51   :  { %v2361_v36 = vmul.f32 0.5, %v4561_v26 }
 0xa52   :  { %v2365_v37 = vmul.f32 0.5, %v4562_v35  ;;  %v2370_v60 = vmul.f32 0.5, %v4594_v59 }
 0xa53   :  { %4775 = vtanh.f32 %v2361_v36 }
 0xa54   :  { %4777 = vtanh.f32 %v2365_v37 }
 0xa55   :  { %4779 = vtanh.f32 %v4593_v55 }
 0xa56   :  { %4781 = vtanh.f32 %v2370_v60 }
 0xa5d   :  { %v4776_v61 = vpop.eup %4775 }
 0xa5e   :  { %v4778_v62 = vpop.eup %4777  ;;  %v2363_v63 = vmul.f32 0.5, %v4776_v61 }
 0xa5f   :  { %v2367_v2 = vmul.f32 0.5, %v4778_v62  ;;  %v4780_v10 = vpop.eup %4779 }
 0xa60   :  { %v2364_v8 = vadd.f32 0.5, %v2363_v63  ;;  %v4782_v41 = vpop.eup %4781 }
 0xa61   :  { %v2368_v13 = vadd.f32 0.5, %v2367_v2  ;;  %v2372_v42 = vmul.f32 0.5, %v4782_v41 }
 0xa62   :  { %v2376_v14 = vmul.f32 %v4780_v10, %v2364_v8 }
 0xa63   :  { %v2375_v20 = vmul.f32 %v2368_v13, %v5748_v23  ;;  %v2373_v43 = vadd.f32 0.5, %v2372_v42 }
 0xa65   :  { %v5790_v21 = vadd.f32 %v2376_v14, %v2375_v20 }
 0xa67   :  { %4783 = vtanh.f32 %v5790_v21 }
 0xa71   :  { %v4784_v45 = vpop.eup %4783 }
 0xa72   :  { %v2379_v52 = vmul.f32 %v4784_v45, %v2373_v43 }
 0xa74   :  { %2381 = vst [vmem:[#allocation17 + $0x48] sm:$0xff] %v2379_v52  ;;  %2456 = vmatmul.mubr.f32.vlgmr.msra.gmra.mrb[20].mxu0 %v2379_v52  ;;  %2527 = vmatmul.mubr.f32.vlgmr.msra.gmra.mrb[20].mxu1 %v2379_v52 }
 0xa75   :  { %4226 = vmatpush1.bf16.msra.mxu0 %v5206_v33  ;;  %4258 = vmatpush1.bf16.msra.mxu1 %v5214_v40 }
 0xa76   :  { %4228 = vmatprep.subr.bf16.mxu0 %v5212_v39  ;;  %4260 = vmatprep.subr.bf16.mxu1 %v5219_v47 }
 0xa77   :  { %2627 = vmatprep.mubr.f32.mxu0 %v5065_v0  ;;  %2698 = vmatprep.mubr.f32.mxu1 %v5065_v0 }
 0xa79   :  { %4230 = vmatpush1.bf16.msra.mxu0 %v5223_v51  ;;  %4262 = vmatpush1.bf16.msra.mxu1 %v5229_v54 }
 0xa7a   :  { %4232 = vmatprep.subr.bf16.mxu0 %v5227_v53  ;;  %4264 = vmatprep.subr.bf16.mxu1 %v5233_v58 }
 0xa7d   :  { %4234 = vmatpush1.bf16.msra.mxu0 %v5239_v1  ;;  %4266 = vmatpush1.bf16.msra.mxu1 %v5245_v5 }
 0xa7e   :  { %4236 = vmatprep.subr.bf16.mxu0 %v5243_v4  ;;  %4268 = vmatprep.subr.bf16.mxu1 %v5249_v9 }
 0xa81   :  { %4238 = vmatpush1.bf16.msra.mxu0 %v5255_v15  ;;  %4270 = vmatpush1.bf16.msra.mxu1 %v5261_v18 }
 0xa82   :  { %4240 = vmatprep.subr.bf16.mxu0 %v5259_v17  ;;  %4272 = vmatprep.subr.bf16.mxu1 %v5265_v22 }
 0xa85   :  { %4242 = vmatpush1.bf16.msra.mxu0 %v5271_v30  ;;  %4274 = vmatpush1.bf16.msra.mxu1 %v5277_v32 }
 0xa86   :  { %4244 = vmatprep.subr.bf16.mxu0 %v5275_v31  ;;  %4276 = vmatprep.subr.bf16.mxu1 %v5281_v38 }
 0xa89   :  { %4246 = vmatpush1.bf16.msra.mxu0 %v5287_v48  ;;  %4278 = vmatpush1.bf16.msra.mxu1 %v5293_v50 }
 0xa8a   :  { %4248 = vmatprep.subr.bf16.mxu0 %v5291_v49  ;;  %4280 = vmatprep.subr.bf16.mxu1 %v5297_v57 }
 0xa8d   :  { %4250 = vmatpush1.bf16.msra.mxu0 %v5303_v3  ;;  %4282 = vmatpush1.bf16.msra.mxu1 %v5309_v7 }
 0xa8e   :  { %4252 = vmatprep.subr.bf16.mxu0 %v5307_v6  ;;  %4284 = vmatprep.subr.bf16.mxu1 %v5313_v11 }
 0xa91   :  { %4254 = vmatpush1.bf16.msra.mxu0 %v5319_v16  ;;  %4286 = vmatpush1.bf16.msra.mxu1 %v5323_v19 }
 0xa92   :  { %4288 = vmatprep.subr.bf16.mxu0 %v5204_v29  ;;  %4320 = vmatprep.subr.bf16.mxu1 %v5208_v34 }
 0xb47   :  { %v2457_v23 = vpop.f32.mrb[20].mxu0  ;;  %v2528_v24 = vpop.f32.mrb[20].mxu1 }
 0xb48   :  { %v4563_v25 = vadd.f32 %v2457_v23, %v5400_v44  ;;  %v2459_v26 = vpop.f32.mrb[21].mxu0  ;;  %v2530_v27 = vpop.f32.mrb[21].mxu1  ;;  %v4595_v37 = vadd.f32 %v2528_v24, %v5405_v56 }
 0xb49   :  { %v4564_v28 = vadd.f32 %v2459_v26, %v5402_v46  ;;  %v4596_v55 = vadd.f32 %v2530_v27, %v5409_v12 }
 0xb4a   :  { %v2533_v35 = vmul.f32 0.5, %v4563_v25 }
 0xb4b   :  { %v2537_v36 = vmul.f32 0.5, %v4564_v28  ;;  %v2542_v59 = vmul.f32 0.5, %v4596_v55 }
 0xb4c   :  { %4785 = vtanh.f32 %v2533_v35 }
 0xb4d   :  { %4787 = vtanh.f32 %v2537_v36 }
 0xb4e   :  { %4789 = vtanh.f32 %v4595_v37 }
 0xb4f   :  { %4791 = vtanh.f32 %v2542_v59 }
 0xb56   :  { %v4786_v60 = vpop.eup %4785 }
 0xb57   :  { %v4788_v61 = vpop.eup %4787  ;;  %v2535_v62 = vmul.f32 0.5, %v4786_v60 }
 0xb58   :  { %v2539_v63 = vmul.f32 0.5, %v4788_v61  ;;  %v4790_v8 = vpop.eup %4789 }
 0xb59   :  { %v2536_v2 = vadd.f32 0.5, %v2535_v62  ;;  %v4792_v41 = vpop.eup %4791 }
 0xb5a   :  { %v2540_v10 = vadd.f32 0.5, %v2539_v63  ;;  %v2544_v42 = vmul.f32 0.5, %v4792_v41 }
 0xb5b   :  { %v2548_v13 = vmul.f32 %v4790_v8, %v2536_v2 }
 0xb5c   :  { %v2547_v14 = vmul.f32 %v2540_v10, %v5790_v21  ;;  %v2545_v43 = vadd.f32 0.5, %v2544_v42 }
 0xb5e   :  { %v5832_v20 = vadd.f32 %v2548_v13, %v2547_v14 }
 0xb60   :  { %4793 = vtanh.f32 %v5832_v20 }
 0xb6a   :  { %v4794_v45 = vpop.eup %4793 }
 0xb6b   :  { %v2551_v52 = vmul.f32 %v4794_v45, %v2545_v43 }
 0xb6d   :  { %2553 = vst [vmem:[#allocation17 + $0x50] sm:$0xff] %v2551_v52  ;;  %2628 = vmatmul.mubr.f32.vlgmr.msra.gmra.mrb[22].mxu0 %v2551_v52  ;;  %2699 = vmatmul.mubr.f32.vlgmr.msra.gmra.mrb[22].mxu1 %v2551_v52 }
 0xb6e   :  { %4290 = vmatpush1.bf16.msra.mxu0 %v5206_v33  ;;  %4322 = vmatpush1.bf16.msra.mxu1 %v5214_v40 }
 0xb6f   :  { %4292 = vmatprep.subr.bf16.mxu0 %v5212_v39  ;;  %4324 = vmatprep.subr.bf16.mxu1 %v5219_v47 }
 0xb70   :  { %2799 = vmatprep.mubr.f32.mxu0 %v5065_v0  ;;  %2870 = vmatprep.mubr.f32.mxu1 %v5065_v0 }
 0xb72   :  { %4294 = vmatpush1.bf16.msra.mxu0 %v5223_v51  ;;  %4326 = vmatpush1.bf16.msra.mxu1 %v5229_v54 }
 0xb73   :  { %4296 = vmatprep.subr.bf16.mxu0 %v5227_v53  ;;  %4328 = vmatprep.subr.bf16.mxu1 %v5233_v58 }
 0xb76   :  { %4298 = vmatpush1.bf16.msra.mxu0 %v5239_v1  ;;  %4330 = vmatpush1.bf16.msra.mxu1 %v5245_v5 }
 0xb77   :  { %4300 = vmatprep.subr.bf16.mxu0 %v5243_v4  ;;  %4332 = vmatprep.subr.bf16.mxu1 %v5249_v9 }
 0xb7a   :  { %4302 = vmatpush1.bf16.msra.mxu0 %v5255_v15  ;;  %4334 = vmatpush1.bf16.msra.mxu1 %v5261_v18 }
 0xb7b   :  { %4304 = vmatprep.subr.bf16.mxu0 %v5259_v17  ;;  %4336 = vmatprep.subr.bf16.mxu1 %v5265_v22 }
 0xb7e   :  { %4306 = vmatpush1.bf16.msra.mxu0 %v5271_v30  ;;  %4338 = vmatpush1.bf16.msra.mxu1 %v5277_v32 }
 0xb7f   :  { %4308 = vmatprep.subr.bf16.mxu0 %v5275_v31  ;;  %4340 = vmatprep.subr.bf16.mxu1 %v5281_v38 }
 0xb82   :  { %4310 = vmatpush1.bf16.msra.mxu0 %v5287_v48  ;;  %4342 = vmatpush1.bf16.msra.mxu1 %v5293_v50 }
 0xb83   :  { %4312 = vmatprep.subr.bf16.mxu0 %v5291_v49  ;;  %4344 = vmatprep.subr.bf16.mxu1 %v5297_v57 }
 0xb86   :  { %4314 = vmatpush1.bf16.msra.mxu0 %v5303_v3  ;;  %4346 = vmatpush1.bf16.msra.mxu1 %v5309_v7 }
 0xb87   :  { %4316 = vmatprep.subr.bf16.mxu0 %v5307_v6  ;;  %4348 = vmatprep.subr.bf16.mxu1 %v5313_v11 }
 0xb8a   :  { %4318 = vmatpush1.bf16.msra.mxu0 %v5319_v16  ;;  %4350 = vmatpush1.bf16.msra.mxu1 %v5323_v19 }
 0xb8b   :  { %4352 = vmatprep.subr.bf16.mxu0 %v5204_v29  ;;  %4384 = vmatprep.subr.bf16.mxu1 %v5208_v34 }
 0xc40   :  { %v2629_v21 = vpop.f32.mrb[22].mxu0  ;;  %v2700_v23 = vpop.f32.mrb[22].mxu1 }
 0xc41   :  { %v4565_v24 = vadd.f32 %v2629_v21, %v5400_v44  ;;  %v2631_v25 = vpop.f32.mrb[23].mxu0  ;;  %v2702_v26 = vpop.f32.mrb[23].mxu1  ;;  %v4597_v36 = vadd.f32 %v2700_v23, %v5405_v56 }
 0xc42   :  { %v4566_v27 = vadd.f32 %v2631_v25, %v5402_v46  ;;  %v4598_v37 = vadd.f32 %v2702_v26, %v5409_v12 }
 0xc43   :  { %v2705_v28 = vmul.f32 0.5, %v4565_v24 }
 0xc44   :  { %v2709_v35 = vmul.f32 0.5, %v4566_v27  ;;  %v2714_v55 = vmul.f32 0.5, %v4598_v37 }
 0xc45   :  { %4795 = vtanh.f32 %v2705_v28 }
 0xc46   :  { %4797 = vtanh.f32 %v2709_v35 }
 0xc47   :  { %4799 = vtanh.f32 %v4597_v36 }
 0xc48   :  { %4801 = vtanh.f32 %v2714_v55 }
 0xc4f   :  { %v4796_v59 = vpop.eup %4795 }
 0xc50   :  { %v4798_v60 = vpop.eup %4797  ;;  %v2707_v61 = vmul.f32 0.5, %v4796_v59 }
 0xc51   :  { %v2711_v62 = vmul.f32 0.5, %v4798_v60  ;;  %v4800_v2 = vpop.eup %4799 }
 0xc52   :  { %v2708_v63 = vadd.f32 0.5, %v2707_v61  ;;  %v4802_v41 = vpop.eup %4801 }
 0xc53   :  { %v2712_v8 = vadd.f32 0.5, %v2711_v62  ;;  %v2716_v42 = vmul.f32 0.5, %v4802_v41 }
 0xc54   :  { %v2720_v10 = vmul.f32 %v4800_v2, %v2708_v63 }
 0xc55   :  { %v2719_v13 = vmul.f32 %v2712_v8, %v5832_v20  ;;  %v2717_v43 = vadd.f32 0.5, %v2716_v42 }
 0xc57   :  { %v5874_v14 = vadd.f32 %v2720_v10, %v2719_v13 }
 0xc59   :  { %4803 = vtanh.f32 %v5874_v14 }
 0xc63   :  { %v4804_v45 = vpop.eup %4803 }
 0xc64   :  { %v2723_v52 = vmul.f32 %v4804_v45, %v2717_v43 }
 0xc66   :  { %2725 = vst [vmem:[#allocation17 + $0x58] sm:$0xff] %v2723_v52  ;;  %2800 = vmatmul.mubr.f32.vlgmr.msra.gmra.mrb[24].mxu0 %v2723_v52  ;;  %2871 = vmatmul.mubr.f32.vlgmr.msra.gmra.mrb[24].mxu1 %v2723_v52 }
 0xc67   :  { %4354 = vmatpush1.bf16.msra.mxu0 %v5206_v33  ;;  %4386 = vmatpush1.bf16.msra.mxu1 %v5214_v40 }
 0xc68   :  { %4356 = vmatprep.subr.bf16.mxu0 %v5212_v39  ;;  %4388 = vmatprep.subr.bf16.mxu1 %v5219_v47 }
 0xc69   :  { %2971 = vmatprep.mubr.f32.mxu0 %v5065_v0  ;;  %3042 = vmatprep.mubr.f32.mxu1 %v5065_v0 }
 0xc6b   :  { %4358 = vmatpush1.bf16.msra.mxu0 %v5223_v51  ;;  %4390 = vmatpush1.bf16.msra.mxu1 %v5229_v54 }
 0xc6c   :  { %4360 = vmatprep.subr.bf16.mxu0 %v5227_v53  ;;  %4392 = vmatprep.subr.bf16.mxu1 %v5233_v58 }
 0xc6f   :  { %4362 = vmatpush1.bf16.msra.mxu0 %v5239_v1  ;;  %4394 = vmatpush1.bf16.msra.mxu1 %v5245_v5 }
 0xc70   :  { %4364 = vmatprep.subr.bf16.mxu0 %v5243_v4  ;;  %4396 = vmatprep.subr.bf16.mxu1 %v5249_v9 }
 0xc73   :  { %4366 = vmatpush1.bf16.msra.mxu0 %v5255_v15  ;;  %4398 = vmatpush1.bf16.msra.mxu1 %v5261_v18 }
 0xc74   :  { %4368 = vmatprep.subr.bf16.mxu0 %v5259_v17  ;;  %4400 = vmatprep.subr.bf16.mxu1 %v5265_v22 }
 0xc77   :  { %4370 = vmatpush1.bf16.msra.mxu0 %v5271_v30  ;;  %4402 = vmatpush1.bf16.msra.mxu1 %v5277_v32 }
 0xc78   :  { %4372 = vmatprep.subr.bf16.mxu0 %v5275_v31  ;;  %4404 = vmatprep.subr.bf16.mxu1 %v5281_v38 }
 0xc7b   :  { %4374 = vmatpush1.bf16.msra.mxu0 %v5287_v48  ;;  %4406 = vmatpush1.bf16.msra.mxu1 %v5293_v50 }
 0xc7c   :  { %4376 = vmatprep.subr.bf16.mxu0 %v5291_v49  ;;  %4408 = vmatprep.subr.bf16.mxu1 %v5297_v57 }
 0xc7f   :  { %4378 = vmatpush1.bf16.msra.mxu0 %v5303_v3  ;;  %4410 = vmatpush1.bf16.msra.mxu1 %v5309_v7 }
 0xc80   :  { %4380 = vmatprep.subr.bf16.mxu0 %v5307_v6  ;;  %4412 = vmatprep.subr.bf16.mxu1 %v5313_v11 }
 0xc83   :  { %4382 = vmatpush1.bf16.msra.mxu0 %v5319_v16  ;;  %4414 = vmatpush1.bf16.msra.mxu1 %v5323_v19 }
 0xc84   :  { %4416 = vmatprep.subr.bf16.mxu0 %v5204_v29  ;;  %4448 = vmatprep.subr.bf16.mxu1 %v5208_v34 }
 0xd39   :  { %v2801_v20 = vpop.f32.mrb[24].mxu0  ;;  %v2872_v21 = vpop.f32.mrb[24].mxu1 }
 0xd3a   :  { %v4567_v23 = vadd.f32 %v2801_v20, %v5400_v44  ;;  %v2803_v24 = vpop.f32.mrb[25].mxu0  ;;  %v2874_v25 = vpop.f32.mrb[25].mxu1  ;;  %v4599_v35 = vadd.f32 %v2872_v21, %v5405_v56 }
 0xd3b   :  { %v4568_v26 = vadd.f32 %v2803_v24, %v5402_v46  ;;  %v4600_v36 = vadd.f32 %v2874_v25, %v5409_v12 }
 0xd3c   :  { %v2877_v27 = vmul.f32 0.5, %v4567_v23 }
 0xd3d   :  { %v2881_v28 = vmul.f32 0.5, %v4568_v26  ;;  %v2886_v37 = vmul.f32 0.5, %v4600_v36 }
 0xd3e   :  { %4805 = vtanh.f32 %v2877_v27 }
 0xd3f   :  { %4807 = vtanh.f32 %v2881_v28 }
 0xd40   :  { %4809 = vtanh.f32 %v4599_v35 }
 0xd41   :  { %4811 = vtanh.f32 %v2886_v37 }
 0xd48   :  { %v4806_v55 = vpop.eup %4805 }
 0xd49   :  { %v4808_v59 = vpop.eup %4807  ;;  %v2879_v60 = vmul.f32 0.5, %v4806_v55 }
 0xd4a   :  { %v2883_v61 = vmul.f32 0.5, %v4808_v59  ;;  %v4810_v63 = vpop.eup %4809 }
 0xd4b   :  { %v2880_v62 = vadd.f32 0.5, %v2879_v60  ;;  %v4812_v41 = vpop.eup %4811 }
 0xd4c   :  { %v2884_v2 = vadd.f32 0.5, %v2883_v61  ;;  %v2888_v42 = vmul.f32 0.5, %v4812_v41 }
 0xd4d   :  { %v2892_v8 = vmul.f32 %v4810_v63, %v2880_v62 }
 0xd4e   :  { %v2891_v10 = vmul.f32 %v2884_v2, %v5874_v14  ;;  %v2889_v43 = vadd.f32 0.5, %v2888_v42 }
 0xd50   :  { %v5916_v13 = vadd.f32 %v2892_v8, %v2891_v10 }
 0xd52   :  { %4813 = vtanh.f32 %v5916_v13 }
 0xd5c   :  { %v4814_v45 = vpop.eup %4813 }
 0xd5d   :  { %v2895_v52 = vmul.f32 %v4814_v45, %v2889_v43 }
 0xd5f   :  { %2897 = vst [vmem:[#allocation17 + $0x60] sm:$0xff] %v2895_v52  ;;  %2972 = vmatmul.mubr.f32.vlgmr.msra.gmra.mrb[26].mxu0 %v2895_v52  ;;  %3043 = vmatmul.mubr.f32.vlgmr.msra.gmra.mrb[26].mxu1 %v2895_v52 }
 0xd60   :  { %4418 = vmatpush1.bf16.msra.mxu0 %v5206_v33  ;;  %4450 = vmatpush1.bf16.msra.mxu1 %v5214_v40 }
 0xd61   :  { %4420 = vmatprep.subr.bf16.mxu0 %v5212_v39  ;;  %4452 = vmatprep.subr.bf16.mxu1 %v5219_v47 }
 0xd62   :  { %3143 = vmatprep.mubr.f32.mxu0 %v5065_v0  ;;  %3214 = vmatprep.mubr.f32.mxu1 %v5065_v0 }
 0xd64   :  { %4422 = vmatpush1.bf16.msra.mxu0 %v5223_v51  ;;  %4454 = vmatpush1.bf16.msra.mxu1 %v5229_v54 }
 0xd65   :  { %4424 = vmatprep.subr.bf16.mxu0 %v5227_v53  ;;  %4456 = vmatprep.subr.bf16.mxu1 %v5233_v58 }
 0xd68   :  { %4426 = vmatpush1.bf16.msra.mxu0 %v5239_v1  ;;  %4458 = vmatpush1.bf16.msra.mxu1 %v5245_v5 }
 0xd69   :  { %4428 = vmatprep.subr.bf16.mxu0 %v5243_v4  ;;  %4460 = vmatprep.subr.bf16.mxu1 %v5249_v9 }
 0xd6c   :  { %4430 = vmatpush1.bf16.msra.mxu0 %v5255_v15  ;;  %4462 = vmatpush1.bf16.msra.mxu1 %v5261_v18 }
 0xd6d   :  { %4432 = vmatprep.subr.bf16.mxu0 %v5259_v17  ;;  %4464 = vmatprep.subr.bf16.mxu1 %v5265_v22 }
 0xd70   :  { %4434 = vmatpush1.bf16.msra.mxu0 %v5271_v30  ;;  %4466 = vmatpush1.bf16.msra.mxu1 %v5277_v32 }
 0xd71   :  { %4436 = vmatprep.subr.bf16.mxu0 %v5275_v31  ;;  %4468 = vmatprep.subr.bf16.mxu1 %v5281_v38 }
 0xd74   :  { %4438 = vmatpush1.bf16.msra.mxu0 %v5287_v48  ;;  %4470 = vmatpush1.bf16.msra.mxu1 %v5293_v50 }
 0xd75   :  { %4440 = vmatprep.subr.bf16.mxu0 %v5291_v49  ;;  %4472 = vmatprep.subr.bf16.mxu1 %v5297_v57 }
 0xd78   :  { %4442 = vmatpush1.bf16.msra.mxu0 %v5303_v3  ;;  %4474 = vmatpush1.bf16.msra.mxu1 %v5309_v7 }
 0xd79   :  { %4444 = vmatprep.subr.bf16.mxu0 %v5307_v6  ;;  %4476 = vmatprep.subr.bf16.mxu1 %v5313_v11 }
 0xd7c   :  { %4446 = vmatpush1.bf16.msra.mxu0 %v5319_v16  ;;  %4478 = vmatpush1.bf16.msra.mxu1 %v5323_v19 }
 0xd7d   :  { %4480 = vmatprep.subr.bf16.mxu0 %v5204_v29  ;;  %4512 = vmatprep.subr.bf16.mxu1 %v5208_v34 }
 0xe32   :  { %v2973_v14 = vpop.f32.mrb[26].mxu0  ;;  %v3044_v20 = vpop.f32.mrb[26].mxu1 }
 0xe33   :  { %v4569_v21 = vadd.f32 %v2973_v14, %v5400_v44  ;;  %v2975_v23 = vpop.f32.mrb[27].mxu0  ;;  %v3046_v24 = vpop.f32.mrb[27].mxu1  ;;  %v4601_v28 = vadd.f32 %v3044_v20, %v5405_v56 }
 0xe34   :  { %v4570_v25 = vadd.f32 %v2975_v23, %v5402_v46  ;;  %v4602_v35 = vadd.f32 %v3046_v24, %v5409_v12 }
 0xe35   :  { %v3049_v26 = vmul.f32 0.5, %v4569_v21 }
 0xe36   :  { %v3053_v27 = vmul.f32 0.5, %v4570_v25  ;;  %v3058_v29 = vmul.f32 0.5, %v4602_v35 }
 0xe37   :  { %4815 = vtanh.f32 %v3049_v26 }
 0xe38   :  { %4817 = vtanh.f32 %v3053_v27 }
 0xe39   :  { %4819 = vtanh.f32 %v4601_v28 }
 0xe3a   :  { %4821 = vtanh.f32 %v3058_v29 }
 0xe41   :  { %v4816_v36 = vpop.eup %4815 }
 0xe42   :  { %v4818_v34 = vpop.eup %4817  ;;  %v3051_v37 = vmul.f32 0.5, %v4816_v36 }
 0xe43   :  { %v3055_v55 = vmul.f32 0.5, %v4818_v34  ;;  %v4820_v60 = vpop.eup %4819 }
 0xe44   :  { %v3052_v59 = vadd.f32 0.5, %v3051_v37  ;;  %v4822_v8 = vpop.eup %4821 }
 0xe45   :  { %v3056_v61 = vadd.f32 0.5, %v3055_v55  ;;  %v3060_v10 = vmul.f32 0.5, %v4822_v8 }
 0xe46   :  { %v3064_v62 = vmul.f32 %v4820_v60, %v3052_v59 }
 0xe47   :  { %v3063_v63 = vmul.f32 %v3056_v61, %v5916_v13  ;;  %v3061_v41 = vadd.f32 0.5, %v3060_v10 }
 0xe49   :  { %v5958_v2 = vadd.f32 %v3064_v62, %v3063_v63 }
 0xe4b   :  { %4823 = vtanh.f32 %v5958_v2 }
 0xe55   :  { %v4824_v42 = vpop.eup %4823 }
 0xe56   :  { %v3067_v43 = vmul.f32 %v4824_v42, %v3061_v41 }
 0xe58   :  { %3069 = vst [vmem:[#allocation17 + $0x68] sm:$0xff] %v3067_v43  ;;  %3144 = vmatmul.mubr.f32.vlgmr.msra.gmra.mrb[28].mxu0 %v3067_v43  ;;  %3215 = vmatmul.mubr.f32.vlgmr.msra.gmra.mrb[28].mxu1 %v3067_v43 }
 0xe59   :  { %4482 = vmatpush1.bf16.msra.mxu0 %v5206_v33  ;;  %4514 = vmatpush1.bf16.msra.mxu1 %v5214_v40 }
 0xe5a   :  { %4484 = vmatprep.subr.bf16.mxu0 %v5212_v39  ;;  %4516 = vmatprep.subr.bf16.mxu1 %v5219_v47 }
 0xe5b   :  { %3315 = vmatprep.mubr.f32.mxu0 %v5065_v0  ;;  %3386 = vmatprep.mubr.f32.mxu1 %v5065_v0 }
 0xe5d   :  { %4486 = vmatpush1.bf16.msra.mxu0 %v5223_v51  ;;  %4518 = vmatpush1.bf16.msra.mxu1 %v5229_v54 }
 0xe5e   :  { %4488 = vmatprep.subr.bf16.mxu0 %v5227_v53  ;;  %4520 = vmatprep.subr.bf16.mxu1 %v5233_v58 }
 0xe61   :  { %4490 = vmatpush1.bf16.msra.mxu0 %v5239_v1  ;;  %4522 = vmatpush1.bf16.msra.mxu1 %v5245_v5 }
 0xe62   :  { %4492 = vmatprep.subr.bf16.mxu0 %v5243_v4  ;;  %4524 = vmatprep.subr.bf16.mxu1 %v5249_v9 }
 0xe65   :  { %4494 = vmatpush1.bf16.msra.mxu0 %v5255_v15  ;;  %4526 = vmatpush1.bf16.msra.mxu1 %v5261_v18 }
 0xe66   :  { %4496 = vmatprep.subr.bf16.mxu0 %v5259_v17  ;;  %4528 = vmatprep.subr.bf16.mxu1 %v5265_v22 }
 0xe69   :  { %4498 = vmatpush1.bf16.msra.mxu0 %v5271_v30  ;;  %4530 = vmatpush1.bf16.msra.mxu1 %v5277_v32 }
 0xe6a   :  { %4500 = vmatprep.subr.bf16.mxu0 %v5275_v31  ;;  %4532 = vmatprep.subr.bf16.mxu1 %v5281_v38 }
 0xe6d   :  { %4502 = vmatpush1.bf16.msra.mxu0 %v5287_v48  ;;  %4534 = vmatpush1.bf16.msra.mxu1 %v5293_v50 }
 0xe6e   :  { %4504 = vmatprep.subr.bf16.mxu0 %v5291_v49  ;;  %4536 = vmatprep.subr.bf16.mxu1 %v5297_v57 }
 0xe71   :  { %4506 = vmatpush1.bf16.msra.mxu0 %v5303_v3  ;;  %4538 = vmatpush1.bf16.msra.mxu1 %v5309_v7 }
 0xe72   :  { %4508 = vmatprep.subr.bf16.mxu0 %v5307_v6  ;;  %4540 = vmatprep.subr.bf16.mxu1 %v5313_v11 }
 0xe75   :  { %4510 = vmatpush1.bf16.msra.mxu0 %v5319_v16  ;;  %4542 = vmatpush1.bf16.msra.mxu1 %v5323_v19 }
 0xf2b   :  { %v3145_v0 = vpop.f32.mrb[28].mxu0  ;;  %v3216_v33 = vpop.f32.mrb[28].mxu1 }
 0xf2c   :  { %v4571_v39 = vadd.f32 %v3145_v0, %v5400_v44  ;;  %v3147_v40 = vpop.f32.mrb[29].mxu0  ;;  %v3218_v47 = vpop.f32.mrb[29].mxu1  ;;  %v4603_v58 = vadd.f32 %v3216_v33, %v5405_v56 }
 0xf2d   :  { %v4572_v51 = vadd.f32 %v3147_v40, %v5402_v46  ;;  %v4604_v1 = vadd.f32 %v3218_v47, %v5409_v12 }
 0xf2e   :  { %v3221_v53 = vmul.f32 0.5, %v4571_v39 }
 0xf2f   :  { %v3225_v54 = vmul.f32 0.5, %v4572_v51  ;;  %v3230_v4 = vmul.f32 0.5, %v4604_v1 }
 0xf30   :  { %4825 = vtanh.f32 %v3221_v53 }
 0xf31   :  { %4827 = vtanh.f32 %v3225_v54 }
 0xf32   :  { %4829 = vtanh.f32 %v4603_v58 }
 0xf33   :  { %4831 = vtanh.f32 %v3230_v4 }
 0xf3a   :  { %v4826_v5 = vpop.eup %4825 }
 0xf3b   :  { %v4828_v9 = vpop.eup %4827  ;;  %v3223_v15 = vmul.f32 0.5, %v4826_v5 }
 0xf3c   :  { %v3227_v17 = vmul.f32 0.5, %v4828_v9  ;;  %v4830_v22 = vpop.eup %4829 }
 0xf3d   :  { %v3224_v18 = vadd.f32 0.5, %v3223_v15  ;;  %v4832_v48 = vpop.eup %4831 }
 0xf3e   :  { %v3228_v30 = vadd.f32 0.5, %v3227_v17  ;;  %v3232_v49 = vmul.f32 0.5, %v4832_v48 }
 0xf3f   :  { %v3236_v31 = vmul.f32 %v4830_v22, %v3224_v18 }
 0xf40   :  { %v3235_v32 = vmul.f32 %v3228_v30, %v5958_v2  ;;  %v3233_v50 = vadd.f32 0.5, %v3232_v49 }
 0xf42   :  { %v3237_v38 = vadd.f32 %v3236_v31, %v3235_v32 }
 0xf44   :  { %4833 = vtanh.f32 %v3237_v38 }
 0xf4e   :  { %v4834_v57 = vpop.eup %4833 }
 0xf4f   :  { %v3239_v3 = vmul.f32 %v4834_v57, %v3233_v50 }
 0xf51   :  { %3241 = vst [vmem:[#allocation17 + $0x70] sm:$0xff] %v3239_v3  ;;  %3316 = vmatmul.mubr.f32.vlgmr.msra.gmra.mrb[30].mxu0 %v3239_v3  ;;  %3387 = vmatmul.mubr.f32.vlgmr.msra.gmra.mrb[30].mxu1 %v3239_v3 }
0x1024   :  { %v3317_v6 = vpop.f32.mrb[30].mxu0  ;;  %v3388_v7 = vpop.f32.mrb[30].mxu1 }
0x1025   :  { %v4573_v11 = vadd.f32 %v3317_v6, %v5400_v44  ;;  %v3319_v16 = vpop.f32.mrb[31].mxu0  ;;  %v3390_v19 = vpop.f32.mrb[31].mxu1  ;;  %v4605_v14 = vadd.f32 %v3388_v7, %v5405_v56 }
0x1026   :  { %v4574_v13 = vadd.f32 %v3319_v16, %v5402_v46  ;;  %v4606_v20 = vadd.f32 %v3390_v19, %v5409_v12 }
0x1027   :  { %v3393_v45 = vmul.f32 0.5, %v4573_v11 }
0x1028   :  { %v3397_v52 = vmul.f32 0.5, %v4574_v13  ;;  %v3402_v21 = vmul.f32 0.5, %v4606_v20 }
0x1029   :  { %4835 = vtanh.f32 %v3393_v45 }
0x102a   :  { %4837 = vtanh.f32 %v3397_v52 }
0x102b   :  { %4839 = vtanh.f32 %v4605_v14 }
0x102c   :  { %4841 = vtanh.f32 %v3402_v21 }
0x1033   :  { %v4836_v23 = vpop.eup %4835 }
0x1034   :  { %v4838_v24 = vpop.eup %4837  ;;  %v3395_v25 = vmul.f32 0.5, %v4836_v23 }
0x1035   :  { %v3399_v26 = vmul.f32 0.5, %v4838_v24  ;;  %v4840_v27 = vpop.eup %4839 }
0x1036   :  { %v3396_v44 = vadd.f32 0.5, %v3395_v25  ;;  %v4842_v36 = vpop.eup %4841 }
0x1037   :  { %v3400_v28 = vadd.f32 0.5, %v3399_v26  ;;  %v3404_v56 = vmul.f32 0.5, %v4842_v36 }
0x1038   :  { %v3408_v35 = vmul.f32 %v4840_v27, %v3396_v44 }
0x1039   :  { %v3407_v46 = vmul.f32 %v3400_v28, %v3237_v38  ;;  %v3405_v34 = vadd.f32 0.5, %v3404_v56 }
0x103b   :  { %v3409_v29 = vadd.f32 %v3408_v35, %v3407_v46 }
0x103d   :  { %4843 = vtanh.f32 %v3409_v29  ;;  %3423 = vst [vmem:[#allocation20] sm:$0xff] %v3409_v29 }
0x1047   :  { %v4844_v12 = vpop.eup %4843 }
0x1048   :  { %v3411_v37 = vmul.f32 %v4844_v12, %v3405_v34 }
0x104a   :  { %3413 = vst [vmem:[#allocation17 + $0x78] sm:$0xff] %v3411_v37  ;;  %3421 = vst [vmem:[#allocation18] sm:$0xff] %v3411_v37 }
0x104b   :  { %4988 = shalt.err (!%p4985_p10)
}
0x104c   :  { %s4989_s19 = scalar_lea.hbm %s6062_s7, 128 }
0x104d   :  { %p4990_p11 = scmp.ne.s32.totalorder %s6062_s7, %s4989_s19  ;;  %p4993_p12 = scmp.lt.u32.totalorder %s4989_s19, %s6062_s7 }
0x104f   :  { %p4995_p13 = pnand %p4993_p12, %p4990_p11 }
0x1051   :  { %4998 = shalt.err (!%p4995_p13)
}
0x1052   :  { %3445 = dma.vmem_to_hbm [thread:$0]  %s3443_s27, 128, %s6062_s7, [#allocation19]  }
0x1053   :  { %s4999_s26 = scalar_lea.vmem %s6002_s13, 2048  ;;  %p5004_p1 = scmp.lt.s32.totalorder %s6002_s13, %s6002_s13 }
0x1054   :  { %p5000_p0 = scmp.ne.s32.totalorder %s6002_s13, %s4999_s26  ;;  %p5005_p2 = scmp.lt.s32.totalorder %s4999_s26, %s4999_s26 }
0x1056   :  { %p5006_p3 = por %p5005_p2, %p5004_p1 }
0x1058   :  { %p5007_p4 = pnand %p5006_p3, %p5000_p0 }
0x105a   :  { %5010 = shalt.err (!%p5007_p4)
}
0x105b   :  { %s5011_s9 = scalar_lea.hbm %s6061_s6, 2048 }
0x105c   :  { %p5012_p5 = scmp.ne.s32.totalorder %s6061_s6, %s5011_s9  ;;  %p5015_p6 = scmp.lt.u32.totalorder %s5011_s9, %s6061_s6 }
0x105e   :  { %p5017_p7 = pnand %p5015_p6, %p5012_p5 }
0x1060   :  { %5020 = shalt.err (!%p5017_p7)
}
0x1061   :  { %3435 = dma.vmem_to_hbm [thread:$0]  %s6002_s13, 2048, %s6061_s6, [#allocation8], %s5060_s3, %s5060_s3, %s5061_s30  }
0x1062   :  { %s5021_s1 = scalar_lea.vmem %s6004_s15, 128  ;;  %p5026_p9 = scmp.lt.s32.totalorder %s6004_s15, %s6004_s15 }
0x1063   :  { %p5022_p8 = scmp.ne.s32.totalorder %s6004_s15, %s5021_s1  ;;  %p5027_p10 = scmp.lt.s32.totalorder %s5021_s1, %s5021_s1 }
0x1065   :  { %p5028_p11 = por %p5027_p10, %p5026_p9 }
0x1067   :  { %p5029_p12 = pnand %p5028_p11, %p5022_p8 }
0x1069   :  { %5032 = shalt.err (!%p5029_p12)
}
0x106a   :  { %s5033_s24 = scalar_lea.hbm %s6063_s8, 128 }
0x106b   :  { %p5034_p13 = scmp.ne.s32.totalorder %s6063_s8, %s5033_s24  ;;  %p5037_p0 = scmp.lt.u32.totalorder %s5033_s24, %s6063_s8 }
0x106d   :  { %p5039_p1 = pnand %p5037_p0, %p5034_p13 }
0x106f   :  { %5042 = shalt.err (!%p5039_p1)
}
0x1070   :  { %3455 = dma.vmem_to_hbm [thread:$0]  %s6004_s15, 128, %s6063_s8, [#allocation19]  }
0x1071   :  { %5051 = dma.done.wait [#allocation8], 2048  }
0x1072   :  { %5052 = vsyncadd [#allocation8], 4294965248 }
0x1073   :  { %5053 = dma.done.wait [#allocation19], 256  }
0x1074   :  { %5054 = vsyncadd [#allocation19], 4294967040 }
0x1075   :  { %3465 = vsyncpa [#allocation7], 1 }
0x1076   :  { %3466 = vsyncpa [#allocation10], 1 }
0x1077   :  { %3467 = vsyncpa [#allocation13], 1 }
0x1078   :  { %3468 = vsyncpa [#allocation16], 1 }
0x1079   :  { %3469 = vsyncpa [#allocation8], 1 }
0x107a   :  { %3470 = vsyncpa [#allocation19], 1 }

</bundles_post_ra>
